<compile_context>
chip_gen: v6e
topology: v6e:2x2x1
jax: 0.10.0
libtpu: 0.0.40
codegen_flags: <defaults>
</compile_context>

<pallas_src>
import functools
import math

import jax
import jax.numpy as jnp
from jax.experimental import pallas as pl
from jax.experimental.pallas import tpu as pltpu


# ---------------------------------------------------------------------------
# In-kernel math helpers (only ops with known-good Mosaic lowerings)
# ---------------------------------------------------------------------------
def _layer_norm(x, g, b, eps=1e-5):
    """LayerNorm over the last dim, f32 statistics, learnable gamma/beta."""
    mu = jnp.mean(x, axis=-1, keepdims=True)
    xc = x - mu
    var = jnp.mean(xc * xc, axis=-1, keepdims=True)
    return xc * jax.lax.rsqrt(var + eps) * g + b


def _gelu_exact(x):
    """Exact (erf) GELU, matching PyTorch's default nn.GELU().

    erf is evaluated with the Abramowitz & Stegun 7.1.26 rational approximation
    (|abs error| <= 1.5e-7, i.e. float32-level), using only exp/div/select so it
    lowers cleanly in Mosaic and runs on EUP/VPU slots.
    """
    z = x * 0.7071067811865476
    az = jnp.abs(z)
    t = 1.0 / (1.0 + 0.3275911 * az)
    poly = t * (0.254829592 + t * (-0.284496736 + t * (1.421413741
               + t * (-1.453152027 + t * 1.061405429))))
    erf_az = 1.0 - poly * jnp.exp(-az * az)
    erf_z = jnp.where(z >= 0.0, erf_az, -erf_az)
    return 0.5 * x * (1.0 + erf_z)


def _mha(q_in, kv_in, w_qkv_ref, b_qkv_ref, w_o3_ref, b_o_ref, *,
         num_heads, self_attn):
    """nn.MultiheadAttention(batch_first=True), eval mode, one batch element.

    q_in:  (Lq, D) f32   kv_in: (Lk, D) f32
    w_qkv: (D, 3D) bf16 fused Q|K|V weight; 1/sqrt(dh) is pre-folded into the
           Q columns (and into b_qkv's Q columns) at parameter-prep time.
    w_o3:  (H, dh, D) bf16 output projection, pre-reshaped so the per-head
           recombination `sum_h o_h @ w_o3[h]` needs no concatenate/transpose.
    """
    Lq, D = q_in.shape
    Lk = kv_in.shape[0]
    dh = D // num_heads

    w_qkv = w_qkv_ref[...]                     # (D, 3D) bf16
    b_qkv = b_qkv_ref[...]                     # (1, 3D) f32
    b_o = b_o_ref[...]                         # (1, D)  f32

    # One fused QKV projection (N = 3D keeps the MXU fed, reads the input once).
    kv_proj = jnp.dot(kv_in.astype(jnp.bfloat16), w_qkv,
                      preferred_element_type=jnp.float32) + b_qkv   # (Lk, 3D)

    if Lk == 1:
        # Softmax over a single key/value token is identically 1, so attention
        # collapses exactly to out_proj(v_proj(kv)) broadcast over Lq:
        # QK^T, softmax and P@V are skipped entirely.
        acc = b_o
        for h in range(num_heads):
            v_h = kv_proj[:, 2 * D + h * dh:2 * D + (h + 1) * dh]
            acc = acc + jnp.dot(v_h.astype(jnp.bfloat16), w_o3_ref[h],
                                preferred_element_type=jnp.float32)
        return jnp.broadcast_to(acc, (Lq, D))

    if self_attn:
        q_proj = kv_proj[:, :D]                # lane-aligned slice, pre-scaled
    else:
        q_proj = jnp.dot(q_in.astype(jnp.bfloat16), w_qkv[:, :D],
                         preferred_element_type=jnp.float32) + b_qkv[:, :D]

    acc = jnp.zeros((Lq, D), jnp.float32)
    for h in range(num_heads):                 # static unroll over heads
        lo, hi = h * dh, (h + 1) * dh
        q_h = q_proj[:, lo:hi].astype(jnp.bfloat16)                 # (Lq, dh)
        k_h = kv_proj[:, D + lo:D + hi].astype(jnp.bfloat16)        # (Lk, dh)
        v_h = kv_proj[:, 2 * D + lo:2 * D + hi].astype(jnp.bfloat16)
        s = jnp.dot(q_h, k_h.T, preferred_element_type=jnp.float32)  # (Lq, Lk)
        s = s - jnp.max(s, axis=-1, keepdims=True)
        p = jnp.exp(s)
        p = p * pl.reciprocal(jnp.sum(p, axis=-1, keepdims=True), approx=True)
        o_h = jnp.dot(p.astype(jnp.bfloat16), v_h,
                      preferred_element_type=jnp.float32)            # (Lq, dh)
        # Output projection fused into the head recombination (no concat).
        acc = acc + jnp.dot(o_h.astype(jnp.bfloat16), w_o3_ref[h],
                            preferred_element_type=jnp.float32)
    return acc + b_o


# ---------------------------------------------------------------------------
# Fused transformer-block kernel: one grid step == one batch element
# ---------------------------------------------------------------------------
def _block_kernel(x_ref, pkv_ref,
                  wqkv_s, bqkv_s, wo3_s, bo_s,          # self-attention
                  wqkv_c, bqkv_c, wo3_c, bo_c,          # cross-attention
                  wf1, bf1, wf2, bf2,                    # FFN
                  g1, be1, g2, be2, g3, be3,             # LayerNorms
                  o_ref, *, num_heads):
    x = x_ref[0].astype(jnp.float32)       # (L, D)
    pkv = pkv_ref[0].astype(jnp.float32)   # (Lp, D)

    # Self-attention + residual + norm1   (dropout == identity in eval mode)
    a = _mha(x, x, wqkv_s, bqkv_s, wo3_s, bo_s,
             num_heads=num_heads, self_attn=True)
    x1 = _layer_norm(x + a, g1[...], be1[...])

    # Cross-attention over the parameter tokens + residual + norm2
    c = _mha(x1, pkv, wqkv_c, bqkv_c, wo3_c, bo_c,
             num_heads=num_heads, self_attn=False)
    x2 = _layer_norm(x1 + c, g2[...], be2[...])

    # FFN: Linear -> GELU(exact) -> Linear, fused with residual + norm3
    f = jnp.dot(x2.astype(jnp.bfloat16), wf1[...],
                preferred_element_type=jnp.float32) + bf1[...]
    f = _gelu_exact(f)
    f = jnp.dot(f.astype(jnp.bfloat16), wf2[...],
                preferred_element_type=jnp.float32) + bf2[...]
    x3 = _layer_norm(x2 + f, g3[...], be3[...])

    o_ref[0] = x3.astype(o_ref.dtype)


def transformer_block_forward(x, params_kv, P, num_heads):
    """TransformerBlockWithCrossAttention.forward (eval mode) — one pallas_call."""
    B, L, D = x.shape
    Lp = params_kv.shape[1]

    def _full(arr):
        nd = arr.ndim
        return pl.BlockSpec(arr.shape, lambda b, _nd=nd: (0,) * _nd)

    weights = (
        P["self"]["w_qkv"], P["self"]["b_qkv"], P["self"]["w_o3"], P["self"]["b_o"],
        P["cross"]["w_qkv"], P["cross"]["b_qkv"], P["cross"]["w_o3"], P["cross"]["b_o"],
        P["ffn"]["w1"], P["ffn"]["b1"], P["ffn"]["w2"], P["ffn"]["b2"],
        P["norm1"]["g"], P["norm1"]["b"], P["norm2"]["g"], P["norm2"]["b"],
        P["norm3"]["g"], P["norm3"]["b"],
    )

    in_specs = [
        pl.BlockSpec((1, L, D), lambda b: (b, 0, 0)),
        pl.BlockSpec((1, Lp, D), lambda b: (b, 0, 0)),
    ] + [_full(w) for w in weights]

    return pl.pallas_call(
        functools.partial(_block_kernel, num_heads=num_heads),
        out_shape=jax.ShapeDtypeStruct((B, L, D), jnp.float32),
        grid=(B,),
        in_specs=in_specs,
        out_specs=pl.BlockSpec((1, L, D), lambda b: (b, 0, 0)),
        compiler_params=pltpu.CompilerParams(
            dimension_semantics=("parallel",),   # B=2 blocks -> both v7x TCs
            vmem_limit_bytes=32 * 1024 * 1024,   # > v5e 16 MiB default, < v7x 64 MiB
        ),
    )(x, params_kv, *weights)


# ---------------------------------------------------------------------------
# Parameters: raw f32 init + one-time (outside-jit) fusion / bf16 prep
# ---------------------------------------------------------------------------
def init_block_params(key, d_model, d_ff):
    """Raw parameters, f32, weights stored (in, out)."""
    state = [key]

    def nxt():
        state[0], sub = jax.random.split(state[0])
        return sub

    def lin(din, dout):
        return {"w": 0.02 * jax.random.normal(nxt(), (din, dout), jnp.float32),
                "b": jnp.zeros((1, dout), jnp.float32)}

    def mha(d):
        p = {}
        for n in ("q", "k", "v", "o"):
            p["w" + n] = 0.02 * jax.random.normal(nxt(), (d, d), jnp.float32)
            p["b" + n] = jnp.zeros((1, d), jnp.float32)
        return p

    def ln(d):
        return {"g": jnp.ones((1, d), jnp.float32), "b": jnp.zeros((1, d), jnp.float32)}

    return {"self": mha(d_model), "cross": mha(d_model),
            "ffn1": lin(d_model, d_ff), "ffn2": lin(d_ff, d_model),
            "norm1": ln(d_model), "norm2": ln(d_model), "norm3": ln(d_model)}


def prepare_params(raw, d_model, n_heads):
    """One-time prep: fuse Q|K|V, fold 1/sqrt(dh) into the Q columns, reshape
    the out-projection to (H, dh, D) and pre-cast matmul weights to bf16."""
    dh = d_model // n_heads
    scale = 1.0 / math.sqrt(dh)

    def mha(p):
        w_qkv = jnp.concatenate([p["wq"] * scale, p["wk"], p["wv"]], axis=1)
        b_qkv = jnp.concatenate([p["bq"] * scale, p["bk"], p["bv"]], axis=1)
        return {"w_qkv": w_qkv.astype(jnp.bfloat16),
                "b_qkv": b_qkv.astype(jnp.float32),
                "w_o3": p["wo"].reshape(n_heads, dh, d_model).astype(jnp.bfloat16),
                "b_o": p["bo"].astype(jnp.float32)}

    return {"self": mha(raw["self"]), "cross": mha(raw["cross"]),
            "ffn": {"w1": raw["ffn1"]["w"].astype(jnp.bfloat16),
                    "b1": raw["ffn1"]["b"].astype(jnp.float32),
                    "w2": raw["ffn2"]["w"].astype(jnp.bfloat16),
                    "b2": raw["ffn2"]["b"].astype(jnp.float32)},
            "norm1": raw["norm1"], "norm2": raw["norm2"], "norm3": raw["norm3"]}


# ---------------------------------------------------------------------------
# Pure-JAX f32 reference (eval-mode PyTorch semantics) for a sanity check
# ---------------------------------------------------------------------------
def reference_forward(x, params_kv, raw, num_heads):
    def ln(x, p, eps=1e-5):
        mu = jnp.mean(x, -1, keepdims=True)
        var = jnp.mean((x - mu) ** 2, -1, keepdims=True)
        return (x - mu) / jnp.sqrt(var + eps) * p["g"] + p["b"]

    def mha(xq, xkv, p):
        B, Lq, D = xq.shape
        Lk = xkv.shape[1]
        H, dh = num_heads, D // num_heads
        q = (xq @ p["wq"] + p["bq"]).reshape(B, Lq, H, dh).transpose(0, 2, 1, 3)
        k = (xkv @ p["wk"] + p["bk"]).reshape(B, Lk, H, dh).transpose(0, 2, 1, 3)
        v = (xkv @ p["wv"] + p["bv"]).reshape(B, Lk, H, dh).transpose(0, 2, 1, 3)
        s = jnp.einsum("bhqd,bhkd->bhqk", q, k) / math.sqrt(dh)
        o = jnp.einsum("bhqk,bhkd->bhqd", jax.nn.softmax(s, axis=-1), v)
        o = o.transpose(0, 2, 1, 3).reshape(B, Lq, D)
        return o @ p["wo"] + p["bo"]

    x = ln(x + mha(x, x, raw["self"]), raw["norm1"])
    x = ln(x + mha(x, params_kv, raw["cross"]), raw["norm2"])
    f = x @ raw["ffn1"]["w"] + raw["ffn1"]["b"]
    f = jax.nn.gelu(f, approximate=False)
    f = f @ raw["ffn2"]["w"] + raw["ffn2"]["b"]
    return ln(x + f, raw["norm3"])


if __name__ == "__main__":
    d_model, n_heads, d_ff = 256, 8, 1024
    B, L, Lp = 2, 16, 1     # Lp=1 matches the ensemble's usage (single param token)

    key = jax.random.PRNGKey(0)
    kx, kp, kw = jax.random.split(key, 3)
    x = jax.random.normal(kx, (B, L, d_model), jnp.float32)
    params_kv = jax.random.normal(kp, (B, Lp, d_model), jnp.float32)

    raw = init_block_params(kw, d_model, d_ff)
    P = prepare_params(raw, d_model, n_heads)   # one-time bf16 cast / QKV fusion

    fwd = jax.jit(functools.partial(transformer_block_forward, num_heads=n_heads))
    out = jax.block_until_ready(fwd(x, params_kv, P))

    assert out.shape == (B, L, d_model)
    assert bool(jnp.all(jnp.isfinite(out)))

    ref = reference_forward(x, params_kv, raw, n_heads)
    max_err = float(jnp.max(jnp.abs(out - ref)))
    assert max_err < 5e-2, f"max abs error vs f32 reference too large: {max_err}"
    # TODO(synk): Dropout(0.1) is treated as identity (inference/eval mode only).
    print("KERNEL_OK")
</pallas_src>

<mosaic_0001>
module attributes {stable_mosaic.version = 11 : i64} {
  func.func @_block_kernel(%arg0: i32, %arg1: memref<1x16x256xf32, #tpu.memory_space<vmem>>, %arg2: memref<1x1x256xf32, #tpu.memory_space<vmem>>, %arg3: memref<256x768xbf16, #tpu.memory_space<vmem>>, %arg4: memref<1x768xf32, #tpu.memory_space<vmem>>, %arg5: memref<8x32x256xbf16, #tpu.memory_space<vmem>>, %arg6: memref<1x256xf32, #tpu.memory_space<vmem>>, %arg7: memref<256x768xbf16, #tpu.memory_space<vmem>>, %arg8: memref<1x768xf32, #tpu.memory_space<vmem>>, %arg9: memref<8x32x256xbf16, #tpu.memory_space<vmem>>, %arg10: memref<1x256xf32, #tpu.memory_space<vmem>>, %arg11: memref<256x1024xbf16, #tpu.memory_space<vmem>>, %arg12: memref<1x1024xf32, #tpu.memory_space<vmem>>, %arg13: memref<1024x256xbf16, #tpu.memory_space<vmem>>, %arg14: memref<1x256xf32, #tpu.memory_space<vmem>>, %arg15: memref<1x256xf32, #tpu.memory_space<vmem>>, %arg16: memref<1x256xf32, #tpu.memory_space<vmem>>, %arg17: memref<1x256xf32, #tpu.memory_space<vmem>>, %arg18: memref<1x256xf32, #tpu.memory_space<vmem>>, %arg19: memref<1x256xf32, #tpu.memory_space<vmem>>, %arg20: memref<1x256xf32, #tpu.memory_space<vmem>>, %arg21: memref<1x16x256xf32, #tpu.memory_space<vmem>>) attributes {dimension_semantics = [#tpu.dimension_semantics<parallel>], iteration_bounds = array<i64: 2>, scalar_prefetch = 0 : i64, scratch_operands = 0 : i64, tpu.core_type = #tpu.core_type<tc>, window_params = [{transform_indices = @transform_0, window_bounds = array<i64: 1, 16, 256>}, {transform_indices = @transform_1, window_bounds = array<i64: 1, 1, 256>}, {pipeline_mode = #tpu.pipeline_mode<synchronous>, transform_indices = @transform_2, window_bounds = array<i64: 256, 768>}, {pipeline_mode = #tpu.pipeline_mode<synchronous>, transform_indices = @transform_3, window_bounds = array<i64: 1, 768>}, {pipeline_mode = #tpu.pipeline_mode<synchronous>, transform_indices = @transform_4, window_bounds = array<i64: 8, 32, 256>}, {pipeline_mode = #tpu.pipeline_mode<synchronous>, transform_indices = @transform_5, window_bounds = array<i64: 1, 256>}, {pipeline_mode = #tpu.pipeline_mode<synchronous>, transform_indices = @transform_6, window_bounds = array<i64: 256, 768>}, {pipeline_mode = #tpu.pipeline_mode<synchronous>, transform_indices = @transform_7, window_bounds = array<i64: 1, 768>}, {pipeline_mode = #tpu.pipeline_mode<synchronous>, transform_indices = @transform_8, window_bounds = array<i64: 8, 32, 256>}, {pipeline_mode = #tpu.pipeline_mode<synchronous>, transform_indices = @transform_9, window_bounds = array<i64: 1, 256>}, {pipeline_mode = #tpu.pipeline_mode<synchronous>, transform_indices = @transform_10, window_bounds = array<i64: 256, 1024>}, {pipeline_mode = #tpu.pipeline_mode<synchronous>, transform_indices = @transform_11, window_bounds = array<i64: 1, 1024>}, {pipeline_mode = #tpu.pipeline_mode<synchronous>, transform_indices = @transform_12, window_bounds = array<i64: 1024, 256>}, {pipeline_mode = #tpu.pipeline_mode<synchronous>, transform_indices = @transform_13, window_bounds = array<i64: 1, 256>}, {pipeline_mode = #tpu.pipeline_mode<synchronous>, transform_indices = @transform_14, window_bounds = array<i64: 1, 256>}, {pipeline_mode = #tpu.pipeline_mode<synchronous>, transform_indices = @transform_15, window_bounds = array<i64: 1, 256>}, {pipeline_mode = #tpu.pipeline_mode<synchronous>, transform_indices = @transform_16, window_bounds = array<i64: 1, 256>}, {pipeline_mode = #tpu.pipeline_mode<synchronous>, transform_indices = @transform_17, window_bounds = array<i64: 1, 256>}, {pipeline_mode = #tpu.pipeline_mode<synchronous>, transform_indices = @transform_18, window_bounds = array<i64: 1, 256>}, {pipeline_mode = #tpu.pipeline_mode<synchronous>, transform_indices = @transform_19, window_bounds = array<i64: 1, 256>}, {transform_indices = @transform_20, window_bounds = array<i64: 1, 16, 256>}]} {
    %c0 = arith.constant 0 : index
    %c0_0 = arith.constant 0 : index
    %c0_1 = arith.constant 0 : index
    %0 = vector.load %arg1[%c0, %c0_0, %c0_1] : memref<1x16x256xf32, #tpu.memory_space<vmem>>, vector<1x16x256xf32>
    %1 = vector.shape_cast %0 : vector<1x16x256xf32> to vector<16x256xf32>
    %c0_2 = arith.constant 0 : index
    %c0_3 = arith.constant 0 : index
    %c0_4 = arith.constant 0 : index
    %2 = vector.load %arg2[%c0_2, %c0_3, %c0_4] : memref<1x1x256xf32, #tpu.memory_space<vmem>>, vector<1x1x256xf32>
    %3 = vector.shape_cast %2 : vector<1x1x256xf32> to vector<1x256xf32>
    %c0_5 = arith.constant 0 : index
    %c0_6 = arith.constant 0 : index
    %4 = vector.load %arg3[%c0_5, %c0_6] : memref<256x768xbf16, #tpu.memory_space<vmem>>, vector<256x768xbf16>
    %c0_7 = arith.constant 0 : index
    %c0_8 = arith.constant 0 : index
    %5 = vector.load %arg4[%c0_7, %c0_8] : memref<1x768xf32, #tpu.memory_space<vmem>>, vector<1x768xf32>
    %c0_9 = arith.constant 0 : index
    %c0_10 = arith.constant 0 : index
    %6 = vector.load %arg6[%c0_9, %c0_10] : memref<1x256xf32, #tpu.memory_space<vmem>>, vector<1x256xf32>
    %7 = arith.truncf %1 : vector<16x256xf32> to vector<16x256xbf16>
    %cst = arith.constant dense<0.000000e+00> : vector<16x768xf32>
    %8 = tpu.matmul %7, %4, %cst {dimension_numbers = #tpu.dot_dimension_numbers<[1], [0], [0], [1], [0, 0, 1, 1], [], []>} : vector<16x256xbf16>, vector<256x768xbf16>, vector<16x768xf32> -> vector<16x768xf32>
    %9 = vector.broadcast %5 : vector<1x768xf32> to vector<16x768xf32>
    %10 = arith.addf %8, %9 : vector<16x768xf32>
    %11 = vector.extract_strided_slice %10 {offsets = [0, 0], sizes = [16, 256], strides = [1, 1]} : vector<16x768xf32> to vector<16x256xf32>
    %cst_11 = arith.constant 0.000000e+00 : f32
    %12 = vector.broadcast %cst_11 : f32 to vector<16x256xf32>
    %13 = vector.extract_strided_slice %11 {offsets = [0, 0], sizes = [16, 32], strides = [1, 1]} : vector<16x256xf32> to vector<16x32xf32>
    %14 = arith.truncf %13 : vector<16x32xf32> to vector<16x32xbf16>
    %15 = vector.extract_strided_slice %10 {offsets = [0, 256], sizes = [16, 32], strides = [1, 1]} : vector<16x768xf32> to vector<16x32xf32>
    %16 = arith.truncf %15 : vector<16x32xf32> to vector<16x32xbf16>
    %17 = vector.extract_strided_slice %10 {offsets = [0, 512], sizes = [16, 32], strides = [1, 1]} : vector<16x768xf32> to vector<16x32xf32>
    %18 = arith.truncf %17 : vector<16x32xf32> to vector<16x32xbf16>
    %19 = tpu.transpose %16, [1, 0] : vector<16x32xbf16> -> vector<32x16xbf16>
    %cst_12 = arith.constant dense<0.000000e+00> : vector<16x16xf32>
    %20 = tpu.matmul %14, %19, %cst_12 {dimension_numbers = #tpu.dot_dimension_numbers<[1], [0], [0], [1], [0, 0, 1, 1], [], []>} : vector<16x32xbf16>, vector<32x16xbf16>, vector<16x16xf32> -> vector<16x16xf32>
    %cst_13 = arith.constant dense<0xFF800000> : vector<16xf32>
    %21 = vector.multi_reduction <maximumf>, %20, %cst_13 [1] : vector<16x16xf32> to vector<16xf32>
    %22 = vector.shape_cast %21 : vector<16xf32> to vector<16x1xf32>
    %23 = vector.broadcast %22 : vector<16x1xf32> to vector<16x16xf32>
    %24 = arith.subf %20, %23 : vector<16x16xf32>
    %25 = math.exp %24 : vector<16x16xf32>
    %cst_14 = arith.constant dense<0.000000e+00> : vector<16xf32>
    %26 = vector.multi_reduction <add>, %25, %cst_14 [1] : vector<16x16xf32> to vector<16xf32>
    %27 = vector.shape_cast %26 : vector<16xf32> to vector<16x1xf32>
    %28 = tpu.reciprocal %27 {approx = true} : vector<16x1xf32> -> vector<16x1xf32>
    %29 = vector.broadcast %28 : vector<16x1xf32> to vector<16x16xf32>
    %30 = arith.mulf %25, %29 : vector<16x16xf32>
    %31 = arith.truncf %30 : vector<16x16xf32> to vector<16x16xbf16>
    %cst_15 = arith.constant dense<0.000000e+00> : vector<16x32xf32>
    %32 = tpu.matmul %31, %18, %cst_15 {dimension_numbers = #tpu.dot_dimension_numbers<[1], [0], [0], [1], [0, 0, 1, 1], [], []>} : vector<16x16xbf16>, vector<16x32xbf16>, vector<16x32xf32> -> vector<16x32xf32>
    %33 = arith.truncf %32 : vector<16x32xf32> to vector<16x32xbf16>
    %c0_16 = arith.constant 0 : index
    %c0_17 = arith.constant 0 : index
    %c0_18 = arith.constant 0 : index
    %34 = vector.load %arg5[%c0_16, %c0_17, %c0_18] : memref<8x32x256xbf16, #tpu.memory_space<vmem>>, vector<1x32x256xbf16>
    %35 = vector.shape_cast %34 : vector<1x32x256xbf16> to vector<32x256xbf16>
    %cst_19 = arith.constant dense<0.000000e+00> : vector<16x256xf32>
    %36 = tpu.matmul %33, %35, %cst_19 {dimension_numbers = #tpu.dot_dimension_numbers<[1], [0], [0], [1], [0, 0, 1, 1], [], []>} : vector<16x32xbf16>, vector<32x256xbf16>, vector<16x256xf32> -> vector<16x256xf32>
    %37 = arith.addf %12, %36 : vector<16x256xf32>
    %38 = vector.extract_strided_slice %11 {offsets = [0, 32], sizes = [16, 32], strides = [1, 1]} : vector<16x256xf32> to vector<16x32xf32>
    %39 = arith.truncf %38 : vector<16x32xf32> to vector<16x32xbf16>
    %40 = vector.extract_strided_slice %10 {offsets = [0, 288], sizes = [16, 32], strides = [1, 1]} : vector<16x768xf32> to vector<16x32xf32>
    %41 = arith.truncf %40 : vector<16x32xf32> to vector<16x32xbf16>
    %42 = vector.extract_strided_slice %10 {offsets = [0, 544], sizes = [16, 32], strides = [1, 1]} : vector<16x768xf32> to vector<16x32xf32>
    %43 = arith.truncf %42 : vector<16x32xf32> to vector<16x32xbf16>
    %44 = tpu.transpose %41, [1, 0] : vector<16x32xbf16> -> vector<32x16xbf16>
    %cst_20 = arith.constant dense<0.000000e+00> : vector<16x16xf32>
    %45 = tpu.matmul %39, %44, %cst_20 {dimension_numbers = #tpu.dot_dimension_numbers<[1], [0], [0], [1], [0, 0, 1, 1], [], []>} : vector<16x32xbf16>, vector<32x16xbf16>, vector<16x16xf32> -> vector<16x16xf32>
    %cst_21 = arith.constant dense<0xFF800000> : vector<16xf32>
    %46 = vector.multi_reduction <maximumf>, %45, %cst_21 [1] : vector<16x16xf32> to vector<16xf32>
    %47 = vector.shape_cast %46 : vector<16xf32> to vector<16x1xf32>
    %48 = vector.broadcast %47 : vector<16x1xf32> to vector<16x16xf32>
    %49 = arith.subf %45, %48 : vector<16x16xf32>
    %50 = math.exp %49 : vector<16x16xf32>
    %cst_22 = arith.constant dense<0.000000e+00> : vector<16xf32>
    %51 = vector.multi_reduction <add>, %50, %cst_22 [1] : vector<16x16xf32> to vector<16xf32>
    %52 = vector.shape_cast %51 : vector<16xf32> to vector<16x1xf32>
    %53 = tpu.reciprocal %52 {approx = true} : vector<16x1xf32> -> vector<16x1xf32>
    %54 = vector.broadcast %53 : vector<16x1xf32> to vector<16x16xf32>
    %55 = arith.mulf %50, %54 : vector<16x16xf32>
    %56 = arith.truncf %55 : vector<16x16xf32> to vector<16x16xbf16>
    %cst_23 = arith.constant dense<0.000000e+00> : vector<16x32xf32>
    %57 = tpu.matmul %56, %43, %cst_23 {dimension_numbers = #tpu.dot_dimension_numbers<[1], [0], [0], [1], [0, 0, 1, 1], [], []>} : vector<16x16xbf16>, vector<16x32xbf16>, vector<16x32xf32> -> vector<16x32xf32>
    %58 = arith.truncf %57 : vector<16x32xf32> to vector<16x32xbf16>
    %c1 = arith.constant 1 : index
    %c0_24 = arith.constant 0 : index
    %c0_25 = arith.constant 0 : index
    %59 = vector.load %arg5[%c1, %c0_24, %c0_25] : memref<8x32x256xbf16, #tpu.memory_space<vmem>>, vector<1x32x256xbf16>
    %60 = vector.shape_cast %59 : vector<1x32x256xbf16> to vector<32x256xbf16>
    %cst_26 = arith.constant dense<0.000000e+00> : vector<16x256xf32>
    %61 = tpu.matmul %58, %60, %cst_26 {dimension_numbers = #tpu.dot_dimension_numbers<[1], [0], [0], [1], [0, 0, 1, 1], [], []>} : vector<16x32xbf16>, vector<32x256xbf16>, vector<16x256xf32> -> vector<16x256xf32>
    %62 = arith.addf %37, %61 : vector<16x256xf32>
    %63 = vector.extract_strided_slice %11 {offsets = [0, 64], sizes = [16, 32], strides = [1, 1]} : vector<16x256xf32> to vector<16x32xf32>
    %64 = arith.truncf %63 : vector<16x32xf32> to vector<16x32xbf16>
    %65 = vector.extract_strided_slice %10 {offsets = [0, 320], sizes = [16, 32], strides = [1, 1]} : vector<16x768xf32> to vector<16x32xf32>
    %66 = arith.truncf %65 : vector<16x32xf32> to vector<16x32xbf16>
    %67 = vector.extract_strided_slice %10 {offsets = [0, 576], sizes = [16, 32], strides = [1, 1]} : vector<16x768xf32> to vector<16x32xf32>
    %68 = arith.truncf %67 : vector<16x32xf32> to vector<16x32xbf16>
    %69 = tpu.transpose %66, [1, 0] : vector<16x32xbf16> -> vector<32x16xbf16>
    %cst_27 = arith.constant dense<0.000000e+00> : vector<16x16xf32>
    %70 = tpu.matmul %64, %69, %cst_27 {dimension_numbers = #tpu.dot_dimension_numbers<[1], [0], [0], [1], [0, 0, 1, 1], [], []>} : vector<16x32xbf16>, vector<32x16xbf16>, vector<16x16xf32> -> vector<16x16xf32>
    %cst_28 = arith.constant dense<0xFF800000> : vector<16xf32>
    %71 = vector.multi_reduction <maximumf>, %70, %cst_28 [1] : vector<16x16xf32> to vector<16xf32>
    %72 = vector.shape_cast %71 : vector<16xf32> to vector<16x1xf32>
    %73 = vector.broadcast %72 : vector<16x1xf32> to vector<16x16xf32>
    %74 = arith.subf %70, %73 : vector<16x16xf32>
    %75 = math.exp %74 : vector<16x16xf32>
    %cst_29 = arith.constant dense<0.000000e+00> : vector<16xf32>
    %76 = vector.multi_reduction <add>, %75, %cst_29 [1] : vector<16x16xf32> to vector<16xf32>
    %77 = vector.shape_cast %76 : vector<16xf32> to vector<16x1xf32>
    %78 = tpu.reciprocal %77 {approx = true} : vector<16x1xf32> -> vector<16x1xf32>
    %79 = vector.broadcast %78 : vector<16x1xf32> to vector<16x16xf32>
    %80 = arith.mulf %75, %79 : vector<16x16xf32>
    %81 = arith.truncf %80 : vector<16x16xf32> to vector<16x16xbf16>
    %cst_30 = arith.constant dense<0.000000e+00> : vector<16x32xf32>
    %82 = tpu.matmul %81, %68, %cst_30 {dimension_numbers = #tpu.dot_dimension_numbers<[1], [0], [0], [1], [0, 0, 1, 1], [], []>} : vector<16x16xbf16>, vector<16x32xbf16>, vector<16x32xf32> -> vector<16x32xf32>
    %83 = arith.truncf %82 : vector<16x32xf32> to vector<16x32xbf16>
    %c2 = arith.constant 2 : index
    %c0_31 = arith.constant 0 : index
    %c0_32 = arith.constant 0 : index
    %84 = vector.load %arg5[%c2, %c0_31, %c0_32] : memref<8x32x256xbf16, #tpu.memory_space<vmem>>, vector<1x32x256xbf16>
    %85 = vector.shape_cast %84 : vector<1x32x256xbf16> to vector<32x256xbf16>
    %cst_33 = arith.constant dense<0.000000e+00> : vector<16x256xf32>
    %86 = tpu.matmul %83, %85, %cst_33 {dimension_numbers = #tpu.dot_dimension_numbers<[1], [0], [0], [1], [0, 0, 1, 1], [], []>} : vector<16x32xbf16>, vector<32x256xbf16>, vector<16x256xf32> -> vector<16x256xf32>
    %87 = arith.addf %62, %86 : vector<16x256xf32>
    %88 = vector.extract_strided_slice %11 {offsets = [0, 96], sizes = [16, 32], strides = [1, 1]} : vector<16x256xf32> to vector<16x32xf32>
    %89 = arith.truncf %88 : vector<16x32xf32> to vector<16x32xbf16>
    %90 = vector.extract_strided_slice %10 {offsets = [0, 352], sizes = [16, 32], strides = [1, 1]} : vector<16x768xf32> to vector<16x32xf32>
    %91 = arith.truncf %90 : vector<16x32xf32> to vector<16x32xbf16>
    %92 = vector.extract_strided_slice %10 {offsets = [0, 608], sizes = [16, 32], strides = [1, 1]} : vector<16x768xf32> to vector<16x32xf32>
    %93 = arith.truncf %92 : vector<16x32xf32> to vector<16x32xbf16>
    %94 = tpu.transpose %91, [1, 0] : vector<16x32xbf16> -> vector<32x16xbf16>
    %cst_34 = arith.constant dense<0.000000e+00> : vector<16x16xf32>
    %95 = tpu.matmul %89, %94, %cst_34 {dimension_numbers = #tpu.dot_dimension_numbers<[1], [0], [0], [1], [0, 0, 1, 1], [], []>} : vector<16x32xbf16>, vector<32x16xbf16>, vector<16x16xf32> -> vector<16x16xf32>
    %cst_35 = arith.constant dense<0xFF800000> : vector<16xf32>
    %96 = vector.multi_reduction <maximumf>, %95, %cst_35 [1] : vector<16x16xf32> to vector<16xf32>
    %97 = vector.shape_cast %96 : vector<16xf32> to vector<16x1xf32>
    %98 = vector.broadcast %97 : vector<16x1xf32> to vector<16x16xf32>
    %99 = arith.subf %95, %98 : vector<16x16xf32>
    %100 = math.exp %99 : vector<16x16xf32>
    %cst_36 = arith.constant dense<0.000000e+00> : vector<16xf32>
    %101 = vector.multi_reduction <add>, %100, %cst_36 [1] : vector<16x16xf32> to vector<16xf32>
    %102 = vector.shape_cast %101 : vector<16xf32> to vector<16x1xf32>
    %103 = tpu.reciprocal %102 {approx = true} : vector<16x1xf32> -> vector<16x1xf32>
    %104 = vector.broadcast %103 : vector<16x1xf32> to vector<16x16xf32>
    %105 = arith.mulf %100, %104 : vector<16x16xf32>
    %106 = arith.truncf %105 : vector<16x16xf32> to vector<16x16xbf16>
    %cst_37 = arith.constant dense<0.000000e+00> : vector<16x32xf32>
    %107 = tpu.matmul %106, %93, %cst_37 {dimension_numbers = #tpu.dot_dimension_numbers<[1], [0], [0], [1], [0, 0, 1, 1], [], []>} : vector<16x16xbf16>, vector<16x32xbf16>, vector<16x32xf32> -> vector<16x32xf32>
    %108 = arith.truncf %107 : vector<16x32xf32> to vector<16x32xbf16>
    %c3 = arith.constant 3 : index
    %c0_38 = arith.constant 0 : index
    %c0_39 = arith.constant 0 : index
    %109 = vector.load %arg5[%c3, %c0_38, %c0_39] : memref<8x32x256xbf16, #tpu.memory_space<vmem>>, vector<1x32x256xbf16>
    %110 = vector.shape_cast %109 : vector<1x32x256xbf16> to vector<32x256xbf16>
    %cst_40 = arith.constant dense<0.000000e+00> : vector<16x256xf32>
    %111 = tpu.matmul %108, %110, %cst_40 {dimension_numbers = #tpu.dot_dimension_numbers<[1], [0], [0], [1], [0, 0, 1, 1], [], []>} : vector<16x32xbf16>, vector<32x256xbf16>, vector<16x256xf32> -> vector<16x256xf32>
    %112 = arith.addf %87, %111 : vector<16x256xf32>
    %113 = vector.extract_strided_slice %11 {offsets = [0, 128], sizes = [16, 32], strides = [1, 1]} : vector<16x256xf32> to vector<16x32xf32>
    %114 = arith.truncf %113 : vector<16x32xf32> to vector<16x32xbf16>
    %115 = vector.extract_strided_slice %10 {offsets = [0, 384], sizes = [16, 32], strides = [1, 1]} : vector<16x768xf32> to vector<16x32xf32>
    %116 = arith.truncf %115 : vector<16x32xf32> to vector<16x32xbf16>
    %117 = vector.extract_strided_slice %10 {offsets = [0, 640], sizes = [16, 32], strides = [1, 1]} : vector<16x768xf32> to vector<16x32xf32>
    %118 = arith.truncf %117 : vector<16x32xf32> to vector<16x32xbf16>
    %119 = tpu.transpose %116, [1, 0] : vector<16x32xbf16> -> vector<32x16xbf16>
    %cst_41 = arith.constant dense<0.000000e+00> : vector<16x16xf32>
    %120 = tpu.matmul %114, %119, %cst_41 {dimension_numbers = #tpu.dot_dimension_numbers<[1], [0], [0], [1], [0, 0, 1, 1], [], []>} : vector<16x32xbf16>, vector<32x16xbf16>, vector<16x16xf32> -> vector<16x16xf32>
    %cst_42 = arith.constant dense<0xFF800000> : vector<16xf32>
    %121 = vector.multi_reduction <maximumf>, %120, %cst_42 [1] : vector<16x16xf32> to vector<16xf32>
    %122 = vector.shape_cast %121 : vector<16xf32> to vector<16x1xf32>
    %123 = vector.broadcast %122 : vector<16x1xf32> to vector<16x16xf32>
    %124 = arith.subf %120, %123 : vector<16x16xf32>
    %125 = math.exp %124 : vector<16x16xf32>
    %cst_43 = arith.constant dense<0.000000e+00> : vector<16xf32>
    %126 = vector.multi_reduction <add>, %125, %cst_43 [1] : vector<16x16xf32> to vector<16xf32>
    %127 = vector.shape_cast %126 : vector<16xf32> to vector<16x1xf32>
    %128 = tpu.reciprocal %127 {approx = true} : vector<16x1xf32> -> vector<16x1xf32>
    %129 = vector.broadcast %128 : vector<16x1xf32> to vector<16x16xf32>
    %130 = arith.mulf %125, %129 : vector<16x16xf32>
    %131 = arith.truncf %130 : vector<16x16xf32> to vector<16x16xbf16>
    %cst_44 = arith.constant dense<0.000000e+00> : vector<16x32xf32>
    %132 = tpu.matmul %131, %118, %cst_44 {dimension_numbers = #tpu.dot_dimension_numbers<[1], [0], [0], [1], [0, 0, 1, 1], [], []>} : vector<16x16xbf16>, vector<16x32xbf16>, vector<16x32xf32> -> vector<16x32xf32>
    %133 = arith.truncf %132 : vector<16x32xf32> to vector<16x32xbf16>
    %c4 = arith.constant 4 : index
    %c0_45 = arith.constant 0 : index
    %c0_46 = arith.constant 0 : index
    %134 = vector.load %arg5[%c4, %c0_45, %c0_46] : memref<8x32x256xbf16, #tpu.memory_space<vmem>>, vector<1x32x256xbf16>
    %135 = vector.shape_cast %134 : vector<1x32x256xbf16> to vector<32x256xbf16>
    %cst_47 = arith.constant dense<0.000000e+00> : vector<16x256xf32>
    %136 = tpu.matmul %133, %135, %cst_47 {dimension_numbers = #tpu.dot_dimension_numbers<[1], [0], [0], [1], [0, 0, 1, 1], [], []>} : vector<16x32xbf16>, vector<32x256xbf16>, vector<16x256xf32> -> vector<16x256xf32>
    %137 = arith.addf %112, %136 : vector<16x256xf32>
    %138 = vector.extract_strided_slice %11 {offsets = [0, 160], sizes = [16, 32], strides = [1, 1]} : vector<16x256xf32> to vector<16x32xf32>
    %139 = arith.truncf %138 : vector<16x32xf32> to vector<16x32xbf16>
    %140 = vector.extract_strided_slice %10 {offsets = [0, 416], sizes = [16, 32], strides = [1, 1]} : vector<16x768xf32> to vector<16x32xf32>
    %141 = arith.truncf %140 : vector<16x32xf32> to vector<16x32xbf16>
    %142 = vector.extract_strided_slice %10 {offsets = [0, 672], sizes = [16, 32], strides = [1, 1]} : vector<16x768xf32> to vector<16x32xf32>
    %143 = arith.truncf %142 : vector<16x32xf32> to vector<16x32xbf16>
    %144 = tpu.transpose %141, [1, 0] : vector<16x32xbf16> -> vector<32x16xbf16>
    %cst_48 = arith.constant dense<0.000000e+00> : vector<16x16xf32>
    %145 = tpu.matmul %139, %144, %cst_48 {dimension_numbers = #tpu.dot_dimension_numbers<[1], [0], [0], [1], [0, 0, 1, 1], [], []>} : vector<16x32xbf16>, vector<32x16xbf16>, vector<16x16xf32> -> vector<16x16xf32>
    %cst_49 = arith.constant dense<0xFF800000> : vector<16xf32>
    %146 = vector.multi_reduction <maximumf>, %145, %cst_49 [1] : vector<16x16xf32> to vector<16xf32>
    %147 = vector.shape_cast %146 : vector<16xf32> to vector<16x1xf32>
    %148 = vector.broadcast %147 : vector<16x1xf32> to vector<16x16xf32>
    %149 = arith.subf %145, %148 : vector<16x16xf32>
    %150 = math.exp %149 : vector<16x16xf32>
    %cst_50 = arith.constant dense<0.000000e+00> : vector<16xf32>
    %151 = vector.multi_reduction <add>, %150, %cst_50 [1] : vector<16x16xf32> to vector<16xf32>
    %152 = vector.shape_cast %151 : vector<16xf32> to vector<16x1xf32>
    %153 = tpu.reciprocal %152 {approx = true} : vector<16x1xf32> -> vector<16x1xf32>
    %154 = vector.broadcast %153 : vector<16x1xf32> to vector<16x16xf32>
    %155 = arith.mulf %150, %154 : vector<16x16xf32>
    %156 = arith.truncf %155 : vector<16x16xf32> to vector<16x16xbf16>
    %cst_51 = arith.constant dense<0.000000e+00> : vector<16x32xf32>
    %157 = tpu.matmul %156, %143, %cst_51 {dimension_numbers = #tpu.dot_dimension_numbers<[1], [0], [0], [1], [0, 0, 1, 1], [], []>} : vector<16x16xbf16>, vector<16x32xbf16>, vector<16x32xf32> -> vector<16x32xf32>
    %158 = arith.truncf %157 : vector<16x32xf32> to vector<16x32xbf16>
    %c5 = arith.constant 5 : index
    %c0_52 = arith.constant 0 : index
    %c0_53 = arith.constant 0 : index
    %159 = vector.load %arg5[%c5, %c0_52, %c0_53] : memref<8x32x256xbf16, #tpu.memory_space<vmem>>, vector<1x32x256xbf16>
    %160 = vector.shape_cast %159 : vector<1x32x256xbf16> to vector<32x256xbf16>
    %cst_54 = arith.constant dense<0.000000e+00> : vector<16x256xf32>
    %161 = tpu.matmul %158, %160, %cst_54 {dimension_numbers = #tpu.dot_dimension_numbers<[1], [0], [0], [1], [0, 0, 1, 1], [], []>} : vector<16x32xbf16>, vector<32x256xbf16>, vector<16x256xf32> -> vector<16x256xf32>
    %162 = arith.addf %137, %161 : vector<16x256xf32>
    %163 = vector.extract_strided_slice %11 {offsets = [0, 192], sizes = [16, 32], strides = [1, 1]} : vector<16x256xf32> to vector<16x32xf32>
    %164 = arith.truncf %163 : vector<16x32xf32> to vector<16x32xbf16>
    %165 = vector.extract_strided_slice %10 {offsets = [0, 448], sizes = [16, 32], strides = [1, 1]} : vector<16x768xf32> to vector<16x32xf32>
    %166 = arith.truncf %165 : vector<16x32xf32> to vector<16x32xbf16>
    %167 = vector.extract_strided_slice %10 {offsets = [0, 704], sizes = [16, 32], strides = [1, 1]} : vector<16x768xf32> to vector<16x32xf32>
    %168 = arith.truncf %167 : vector<16x32xf32> to vector<16x32xbf16>
    %169 = tpu.transpose %166, [1, 0] : vector<16x32xbf16> -> vector<32x16xbf16>
    %cst_55 = arith.constant dense<0.000000e+00> : vector<16x16xf32>
    %170 = tpu.matmul %164, %169, %cst_55 {dimension_numbers = #tpu.dot_dimension_numbers<[1], [0], [0], [1], [0, 0, 1, 1], [], []>} : vector<16x32xbf16>, vector<32x16xbf16>, vector<16x16xf32> -> vector<16x16xf32>
    %cst_56 = arith.constant dense<0xFF800000> : vector<16xf32>
    %171 = vector.multi_reduction <maximumf>, %170, %cst_56 [1] : vector<16x16xf32> to vector<16xf32>
    %172 = vector.shape_cast %171 : vector<16xf32> to vector<16x1xf32>
    %173 = vector.broadcast %172 : vector<16x1xf32> to vector<16x16xf32>
    %174 = arith.subf %170, %173 : vector<16x16xf32>
    %175 = math.exp %174 : vector<16x16xf32>
    %cst_57 = arith.constant dense<0.000000e+00> : vector<16xf32>
    %176 = vector.multi_reduction <add>, %175, %cst_57 [1] : vector<16x16xf32> to vector<16xf32>
    %177 = vector.shape_cast %176 : vector<16xf32> to vector<16x1xf32>
    %178 = tpu.reciprocal %177 {approx = true} : vector<16x1xf32> -> vector<16x1xf32>
    %179 = vector.broadcast %178 : vector<16x1xf32> to vector<16x16xf32>
    %180 = arith.mulf %175, %179 : vector<16x16xf32>
    %181 = arith.truncf %180 : vector<16x16xf32> to vector<16x16xbf16>
    %cst_58 = arith.constant dense<0.000000e+00> : vector<16x32xf32>
    %182 = tpu.matmul %181, %168, %cst_58 {dimension_numbers = #tpu.dot_dimension_numbers<[1], [0], [0], [1], [0, 0, 1, 1], [], []>} : vector<16x16xbf16>, vector<16x32xbf16>, vector<16x32xf32> -> vector<16x32xf32>
    %183 = arith.truncf %182 : vector<16x32xf32> to vector<16x32xbf16>
    %c6 = arith.constant 6 : index
    %c0_59 = arith.constant 0 : index
    %c0_60 = arith.constant 0 : index
    %184 = vector.load %arg5[%c6, %c0_59, %c0_60] : memref<8x32x256xbf16, #tpu.memory_space<vmem>>, vector<1x32x256xbf16>
    %185 = vector.shape_cast %184 : vector<1x32x256xbf16> to vector<32x256xbf16>
    %cst_61 = arith.constant dense<0.000000e+00> : vector<16x256xf32>
    %186 = tpu.matmul %183, %185, %cst_61 {dimension_numbers = #tpu.dot_dimension_numbers<[1], [0], [0], [1], [0, 0, 1, 1], [], []>} : vector<16x32xbf16>, vector<32x256xbf16>, vector<16x256xf32> -> vector<16x256xf32>
    %187 = arith.addf %162, %186 : vector<16x256xf32>
    %188 = vector.extract_strided_slice %11 {offsets = [0, 224], sizes = [16, 32], strides = [1, 1]} : vector<16x256xf32> to vector<16x32xf32>
    %189 = arith.truncf %188 : vector<16x32xf32> to vector<16x32xbf16>
    %190 = vector.extract_strided_slice %10 {offsets = [0, 480], sizes = [16, 32], strides = [1, 1]} : vector<16x768xf32> to vector<16x32xf32>
    %191 = arith.truncf %190 : vector<16x32xf32> to vector<16x32xbf16>
    %192 = vector.extract_strided_slice %10 {offsets = [0, 736], sizes = [16, 32], strides = [1, 1]} : vector<16x768xf32> to vector<16x32xf32>
    %193 = arith.truncf %192 : vector<16x32xf32> to vector<16x32xbf16>
    %194 = tpu.transpose %191, [1, 0] : vector<16x32xbf16> -> vector<32x16xbf16>
    %cst_62 = arith.constant dense<0.000000e+00> : vector<16x16xf32>
    %195 = tpu.matmul %189, %194, %cst_62 {dimension_numbers = #tpu.dot_dimension_numbers<[1], [0], [0], [1], [0, 0, 1, 1], [], []>} : vector<16x32xbf16>, vector<32x16xbf16>, vector<16x16xf32> -> vector<16x16xf32>
    %cst_63 = arith.constant dense<0xFF800000> : vector<16xf32>
    %196 = vector.multi_reduction <maximumf>, %195, %cst_63 [1] : vector<16x16xf32> to vector<16xf32>
    %197 = vector.shape_cast %196 : vector<16xf32> to vector<16x1xf32>
    %198 = vector.broadcast %197 : vector<16x1xf32> to vector<16x16xf32>
    %199 = arith.subf %195, %198 : vector<16x16xf32>
    %200 = math.exp %199 : vector<16x16xf32>
    %cst_64 = arith.constant dense<0.000000e+00> : vector<16xf32>
    %201 = vector.multi_reduction <add>, %200, %cst_64 [1] : vector<16x16xf32> to vector<16xf32>
    %202 = vector.shape_cast %201 : vector<16xf32> to vector<16x1xf32>
    %203 = tpu.reciprocal %202 {approx = true} : vector<16x1xf32> -> vector<16x1xf32>
    %204 = vector.broadcast %203 : vector<16x1xf32> to vector<16x16xf32>
    %205 = arith.mulf %200, %204 : vector<16x16xf32>
    %206 = arith.truncf %205 : vector<16x16xf32> to vector<16x16xbf16>
    %cst_65 = arith.constant dense<0.000000e+00> : vector<16x32xf32>
    %207 = tpu.matmul %206, %193, %cst_65 {dimension_numbers = #tpu.dot_dimension_numbers<[1], [0], [0], [1], [0, 0, 1, 1], [], []>} : vector<16x16xbf16>, vector<16x32xbf16>, vector<16x32xf32> -> vector<16x32xf32>
    %208 = arith.truncf %207 : vector<16x32xf32> to vector<16x32xbf16>
    %c7 = arith.constant 7 : index
    %c0_66 = arith.constant 0 : index
    %c0_67 = arith.constant 0 : index
    %209 = vector.load %arg5[%c7, %c0_66, %c0_67] : memref<8x32x256xbf16, #tpu.memory_space<vmem>>, vector<1x32x256xbf16>
    %210 = vector.shape_cast %209 : vector<1x32x256xbf16> to vector<32x256xbf16>
    %cst_68 = arith.constant dense<0.000000e+00> : vector<16x256xf32>
    %211 = tpu.matmul %208, %210, %cst_68 {dimension_numbers = #tpu.dot_dimension_numbers<[1], [0], [0], [1], [0, 0, 1, 1], [], []>} : vector<16x32xbf16>, vector<32x256xbf16>, vector<16x256xf32> -> vector<16x256xf32>
    %212 = arith.addf %187, %211 : vector<16x256xf32>
    %213 = vector.broadcast %6 : vector<1x256xf32> to vector<16x256xf32>
    %214 = arith.addf %212, %213 : vector<16x256xf32>
    %215 = arith.addf %1, %214 : vector<16x256xf32>
    %c0_69 = arith.constant 0 : index
    %c0_70 = arith.constant 0 : index
    %216 = vector.load %arg15[%c0_69, %c0_70] : memref<1x256xf32, #tpu.memory_space<vmem>>, vector<1x256xf32>
    %c0_71 = arith.constant 0 : index
    %c0_72 = arith.constant 0 : index
    %217 = vector.load %arg16[%c0_71, %c0_72] : memref<1x256xf32, #tpu.memory_space<vmem>>, vector<1x256xf32>
    %cst_73 = arith.constant dense<0.000000e+00> : vector<16xf32>
    %218 = vector.multi_reduction <add>, %215, %cst_73 [1] : vector<16x256xf32> to vector<16xf32>
    %219 = vector.shape_cast %218 : vector<16xf32> to vector<16x1xf32>
    %cst_74 = arith.constant 2.560000e+02 : f32
    %220 = vector.broadcast %cst_74 : f32 to vector<16x1xf32>
    %221 = arith.divf %219, %220 : vector<16x1xf32>
    %222 = vector.broadcast %221 : vector<16x1xf32> to vector<16x256xf32>
    %223 = arith.subf %215, %222 : vector<16x256xf32>
    %224 = arith.mulf %223, %223 : vector<16x256xf32>
    %cst_75 = arith.constant dense<0.000000e+00> : vector<16xf32>
    %225 = vector.multi_reduction <add>, %224, %cst_75 [1] : vector<16x256xf32> to vector<16xf32>
    %226 = vector.shape_cast %225 : vector<16xf32> to vector<16x1xf32>
    %cst_76 = arith.constant 2.560000e+02 : f32
    %227 = vector.broadcast %cst_76 : f32 to vector<16x1xf32>
    %228 = arith.divf %226, %227 : vector<16x1xf32>
    %cst_77 = arith.constant 9.99999974E-6 : f32
    %229 = vector.broadcast %cst_77 : f32 to vector<16x1xf32>
    %230 = arith.addf %228, %229 : vector<16x1xf32>
    %231 = math.rsqrt %230 : vector<16x1xf32>
    %232 = vector.broadcast %231 : vector<16x1xf32> to vector<16x256xf32>
    %233 = arith.mulf %223, %232 : vector<16x256xf32>
    %234 = vector.broadcast %216 : vector<1x256xf32> to vector<16x256xf32>
    %235 = arith.mulf %233, %234 : vector<16x256xf32>
    %236 = vector.broadcast %217 : vector<1x256xf32> to vector<16x256xf32>
    %237 = arith.addf %235, %236 : vector<16x256xf32>
    %c0_78 = arith.constant 0 : index
    %c0_79 = arith.constant 0 : index
    %238 = vector.load %arg7[%c0_78, %c0_79] : memref<256x768xbf16, #tpu.memory_space<vmem>>, vector<256x768xbf16>
    %c0_80 = arith.constant 0 : index
    %c0_81 = arith.constant 0 : index
    %239 = vector.load %arg8[%c0_80, %c0_81] : memref<1x768xf32, #tpu.memory_space<vmem>>, vector<1x768xf32>
    %c0_82 = arith.constant 0 : index
    %c0_83 = arith.constant 0 : index
    %240 = vector.load %arg10[%c0_82, %c0_83] : memref<1x256xf32, #tpu.memory_space<vmem>>, vector<1x256xf32>
    %241 = arith.truncf %3 : vector<1x256xf32> to vector<1x256xbf16>
    %cst_84 = arith.constant dense<0.000000e+00> : vector<1x768xf32>
    %242 = tpu.matmul %241, %238, %cst_84 {dimension_numbers = #tpu.dot_dimension_numbers<[1], [0], [0], [1], [0, 0, 1, 1], [], []>} : vector<1x256xbf16>, vector<256x768xbf16>, vector<1x768xf32> -> vector<1x768xf32>
    %243 = arith.addf %242, %239 : vector<1x768xf32>
    %244 = vector.extract_strided_slice %243 {offsets = [0, 512], sizes = [1, 32], strides = [1, 1]} : vector<1x768xf32> to vector<1x32xf32>
    %245 = arith.truncf %244 : vector<1x32xf32> to vector<1x32xbf16>
    %c0_85 = arith.constant 0 : index
    %c0_86 = arith.constant 0 : index
    %c0_87 = arith.constant 0 : index
    %246 = vector.load %arg9[%c0_85, %c0_86, %c0_87] : memref<8x32x256xbf16, #tpu.memory_space<vmem>>, vector<1x32x256xbf16>
    %247 = vector.shape_cast %246 : vector<1x32x256xbf16> to vector<32x256xbf16>
    %cst_88 = arith.constant dense<0.000000e+00> : vector<1x256xf32>
    %248 = tpu.matmul %245, %247, %cst_88 {dimension_numbers = #tpu.dot_dimension_numbers<[1], [0], [0], [1], [0, 0, 1, 1], [], []>} : vector<1x32xbf16>, vector<32x256xbf16>, vector<1x256xf32> -> vector<1x256xf32>
    %249 = arith.addf %240, %248 : vector<1x256xf32>
    %250 = vector.extract_strided_slice %243 {offsets = [0, 544], sizes = [1, 32], strides = [1, 1]} : vector<1x768xf32> to vector<1x32xf32>
    %251 = arith.truncf %250 : vector<1x32xf32> to vector<1x32xbf16>
    %c1_89 = arith.constant 1 : index
    %c0_90 = arith.constant 0 : index
    %c0_91 = arith.constant 0 : index
    %252 = vector.load %arg9[%c1_89, %c0_90, %c0_91] : memref<8x32x256xbf16, #tpu.memory_space<vmem>>, vector<1x32x256xbf16>
    %253 = vector.shape_cast %252 : vector<1x32x256xbf16> to vector<32x256xbf16>
    %cst_92 = arith.constant dense<0.000000e+00> : vector<1x256xf32>
    %254 = tpu.matmul %251, %253, %cst_92 {dimension_numbers = #tpu.dot_dimension_numbers<[1], [0], [0], [1], [0, 0, 1, 1], [], []>} : vector<1x32xbf16>, vector<32x256xbf16>, vector<1x256xf32> -> vector<1x256xf32>
    %255 = arith.addf %249, %254 : vector<1x256xf32>
    %256 = vector.extract_strided_slice %243 {offsets = [0, 576], sizes = [1, 32], strides = [1, 1]} : vector<1x768xf32> to vector<1x32xf32>
    %257 = arith.truncf %256 : vector<1x32xf32> to vector<1x32xbf16>
    %c2_93 = arith.constant 2 : index
    %c0_94 = arith.constant 0 : index
    %c0_95 = arith.constant 0 : index
    %258 = vector.load %arg9[%c2_93, %c0_94, %c0_95] : memref<8x32x256xbf16, #tpu.memory_space<vmem>>, vector<1x32x256xbf16>
    %259 = vector.shape_cast %258 : vector<1x32x256xbf16> to vector<32x256xbf16>
    %cst_96 = arith.constant dense<0.000000e+00> : vector<1x256xf32>
    %260 = tpu.matmul %257, %259, %cst_96 {dimension_numbers = #tpu.dot_dimension_numbers<[1], [0], [0], [1], [0, 0, 1, 1], [], []>} : vector<1x32xbf16>, vector<32x256xbf16>, vector<1x256xf32> -> vector<1x256xf32>
    %261 = arith.addf %255, %260 : vector<1x256xf32>
    %262 = vector.extract_strided_slice %243 {offsets = [0, 608], sizes = [1, 32], strides = [1, 1]} : vector<1x768xf32> to vector<1x32xf32>
    %263 = arith.truncf %262 : vector<1x32xf32> to vector<1x32xbf16>
    %c3_97 = arith.constant 3 : index
    %c0_98 = arith.constant 0 : index
    %c0_99 = arith.constant 0 : index
    %264 = vector.load %arg9[%c3_97, %c0_98, %c0_99] : memref<8x32x256xbf16, #tpu.memory_space<vmem>>, vector<1x32x256xbf16>
    %265 = vector.shape_cast %264 : vector<1x32x256xbf16> to vector<32x256xbf16>
    %cst_100 = arith.constant dense<0.000000e+00> : vector<1x256xf32>
    %266 = tpu.matmul %263, %265, %cst_100 {dimension_numbers = #tpu.dot_dimension_numbers<[1], [0], [0], [1], [0, 0, 1, 1], [], []>} : vector<1x32xbf16>, vector<32x256xbf16>, vector<1x256xf32> -> vector<1x256xf32>
    %267 = arith.addf %261, %266 : vector<1x256xf32>
    %268 = vector.extract_strided_slice %243 {offsets = [0, 640], sizes = [1, 32], strides = [1, 1]} : vector<1x768xf32> to vector<1x32xf32>
    %269 = arith.truncf %268 : vector<1x32xf32> to vector<1x32xbf16>
    %c4_101 = arith.constant 4 : index
    %c0_102 = arith.constant 0 : index
    %c0_103 = arith.constant 0 : index
    %270 = vector.load %arg9[%c4_101, %c0_102, %c0_103] : memref<8x32x256xbf16, #tpu.memory_space<vmem>>, vector<1x32x256xbf16>
    %271 = vector.shape_cast %270 : vector<1x32x256xbf16> to vector<32x256xbf16>
    %cst_104 = arith.constant dense<0.000000e+00> : vector<1x256xf32>
    %272 = tpu.matmul %269, %271, %cst_104 {dimension_numbers = #tpu.dot_dimension_numbers<[1], [0], [0], [1], [0, 0, 1, 1], [], []>} : vector<1x32xbf16>, vector<32x256xbf16>, vector<1x256xf32> -> vector<1x256xf32>
    %273 = arith.addf %267, %272 : vector<1x256xf32>
    %274 = vector.extract_strided_slice %243 {offsets = [0, 672], sizes = [1, 32], strides = [1, 1]} : vector<1x768xf32> to vector<1x32xf32>
    %275 = arith.truncf %274 : vector<1x32xf32> to vector<1x32xbf16>
    %c5_105 = arith.constant 5 : index
    %c0_106 = arith.constant 0 : index
    %c0_107 = arith.constant 0 : index
    %276 = vector.load %arg9[%c5_105, %c0_106, %c0_107] : memref<8x32x256xbf16, #tpu.memory_space<vmem>>, vector<1x32x256xbf16>
    %277 = vector.shape_cast %276 : vector<1x32x256xbf16> to vector<32x256xbf16>
    %cst_108 = arith.constant dense<0.000000e+00> : vector<1x256xf32>
    %278 = tpu.matmul %275, %277, %cst_108 {dimension_numbers = #tpu.dot_dimension_numbers<[1], [0], [0], [1], [0, 0, 1, 1], [], []>} : vector<1x32xbf16>, vector<32x256xbf16>, vector<1x256xf32> -> vector<1x256xf32>
    %279 = arith.addf %273, %278 : vector<1x256xf32>
    %280 = vector.extract_strided_slice %243 {offsets = [0, 704], sizes = [1, 32], strides = [1, 1]} : vector<1x768xf32> to vector<1x32xf32>
    %281 = arith.truncf %280 : vector<1x32xf32> to vector<1x32xbf16>
    %c6_109 = arith.constant 6 : index
    %c0_110 = arith.constant 0 : index
    %c0_111 = arith.constant 0 : index
    %282 = vector.load %arg9[%c6_109, %c0_110, %c0_111] : memref<8x32x256xbf16, #tpu.memory_space<vmem>>, vector<1x32x256xbf16>
    %283 = vector.shape_cast %282 : vector<1x32x256xbf16> to vector<32x256xbf16>
    %cst_112 = arith.constant dense<0.000000e+00> : vector<1x256xf32>
    %284 = tpu.matmul %281, %283, %cst_112 {dimension_numbers = #tpu.dot_dimension_numbers<[1], [0], [0], [1], [0, 0, 1, 1], [], []>} : vector<1x32xbf16>, vector<32x256xbf16>, vector<1x256xf32> -> vector<1x256xf32>
    %285 = arith.addf %279, %284 : vector<1x256xf32>
    %286 = vector.extract_strided_slice %243 {offsets = [0, 736], sizes = [1, 32], strides = [1, 1]} : vector<1x768xf32> to vector<1x32xf32>
    %287 = arith.truncf %286 : vector<1x32xf32> to vector<1x32xbf16>
    %c7_113 = arith.constant 7 : index
    %c0_114 = arith.constant 0 : index
    %c0_115 = arith.constant 0 : index
    %288 = vector.load %arg9[%c7_113, %c0_114, %c0_115] : memref<8x32x256xbf16, #tpu.memory_space<vmem>>, vector<1x32x256xbf16>
    %289 = vector.shape_cast %288 : vector<1x32x256xbf16> to vector<32x256xbf16>
    %cst_116 = arith.constant dense<0.000000e+00> : vector<1x256xf32>
    %290 = tpu.matmul %287, %289, %cst_116 {dimension_numbers = #tpu.dot_dimension_numbers<[1], [0], [0], [1], [0, 0, 1, 1], [], []>} : vector<1x32xbf16>, vector<32x256xbf16>, vector<1x256xf32> -> vector<1x256xf32>
    %291 = arith.addf %285, %290 : vector<1x256xf32>
    %292 = vector.shape_cast %291 : vector<1x256xf32> to vector<1x256xf32>
    %293 = vector.broadcast %292 : vector<1x256xf32> to vector<16x256xf32>
    %294 = arith.addf %237, %293 : vector<16x256xf32>
    %c0_117 = arith.constant 0 : index
    %c0_118 = arith.constant 0 : index
    %295 = vector.load %arg17[%c0_117, %c0_118] : memref<1x256xf32, #tpu.memory_space<vmem>>, vector<1x256xf32>
    %c0_119 = arith.constant 0 : index
    %c0_120 = arith.constant 0 : index
    %296 = vector.load %arg18[%c0_119, %c0_120] : memref<1x256xf32, #tpu.memory_space<vmem>>, vector<1x256xf32>
    %cst_121 = arith.constant dense<0.000000e+00> : vector<16xf32>
    %297 = vector.multi_reduction <add>, %294, %cst_121 [1] : vector<16x256xf32> to vector<16xf32>
    %298 = vector.shape_cast %297 : vector<16xf32> to vector<16x1xf32>
    %cst_122 = arith.constant 2.560000e+02 : f32
    %299 = vector.broadcast %cst_122 : f32 to vector<16x1xf32>
    %300 = arith.divf %298, %299 : vector<16x1xf32>
    %301 = vector.broadcast %300 : vector<16x1xf32> to vector<16x256xf32>
    %302 = arith.subf %294, %301 : vector<16x256xf32>
    %303 = arith.mulf %302, %302 : vector<16x256xf32>
    %cst_123 = arith.constant dense<0.000000e+00> : vector<16xf32>
    %304 = vector.multi_reduction <add>, %303, %cst_123 [1] : vector<16x256xf32> to vector<16xf32>
    %305 = vector.shape_cast %304 : vector<16xf32> to vector<16x1xf32>
    %cst_124 = arith.constant 2.560000e+02 : f32
    %306 = vector.broadcast %cst_124 : f32 to vector<16x1xf32>
    %307 = arith.divf %305, %306 : vector<16x1xf32>
    %cst_125 = arith.constant 9.99999974E-6 : f32
    %308 = vector.broadcast %cst_125 : f32 to vector<16x1xf32>
    %309 = arith.addf %307, %308 : vector<16x1xf32>
    %310 = math.rsqrt %309 : vector<16x1xf32>
    %311 = vector.broadcast %310 : vector<16x1xf32> to vector<16x256xf32>
    %312 = arith.mulf %302, %311 : vector<16x256xf32>
    %313 = vector.broadcast %295 : vector<1x256xf32> to vector<16x256xf32>
    %314 = arith.mulf %312, %313 : vector<16x256xf32>
    %315 = vector.broadcast %296 : vector<1x256xf32> to vector<16x256xf32>
    %316 = arith.addf %314, %315 : vector<16x256xf32>
    %317 = arith.truncf %316 : vector<16x256xf32> to vector<16x256xbf16>
    %c0_126 = arith.constant 0 : index
    %c0_127 = arith.constant 0 : index
    %318 = vector.load %arg11[%c0_126, %c0_127] : memref<256x1024xbf16, #tpu.memory_space<vmem>>, vector<256x1024xbf16>
    %cst_128 = arith.constant dense<0.000000e+00> : vector<16x1024xf32>
    %319 = tpu.matmul %317, %318, %cst_128 {dimension_numbers = #tpu.dot_dimension_numbers<[1], [0], [0], [1], [0, 0, 1, 1], [], []>} : vector<16x256xbf16>, vector<256x1024xbf16>, vector<16x1024xf32> -> vector<16x1024xf32>
    %c0_129 = arith.constant 0 : index
    %c0_130 = arith.constant 0 : index
    %320 = vector.load %arg12[%c0_129, %c0_130] : memref<1x1024xf32, #tpu.memory_space<vmem>>, vector<1x1024xf32>
    %321 = vector.broadcast %320 : vector<1x1024xf32> to vector<16x1024xf32>
    %322 = arith.addf %319, %321 : vector<16x1024xf32>
    %cst_131 = arith.constant 0.707106769 : f32
    %323 = vector.broadcast %cst_131 : f32 to vector<16x1024xf32>
    %324 = arith.mulf %322, %323 : vector<16x1024xf32>
    %325 = math.absf %324 : vector<16x1024xf32>
    %cst_132 = arith.constant 0.327591091 : f32
    %326 = vector.broadcast %cst_132 : f32 to vector<16x1024xf32>
    %327 = arith.mulf %326, %325 : vector<16x1024xf32>
    %cst_133 = arith.constant 1.000000e+00 : f32
    %328 = vector.broadcast %cst_133 : f32 to vector<16x1024xf32>
    %329 = arith.addf %328, %327 : vector<16x1024xf32>
    %cst_134 = arith.constant 1.000000e+00 : f32
    %330 = vector.broadcast %cst_134 : f32 to vector<16x1024xf32>
    %331 = arith.divf %330, %329 : vector<16x1024xf32>
    %cst_135 = arith.constant 1.06140542 : f32
    %332 = vector.broadcast %cst_135 : f32 to vector<16x1024xf32>
    %333 = arith.mulf %331, %332 : vector<16x1024xf32>
    %cst_136 = arith.constant -1.45315206 : f32
    %334 = vector.broadcast %cst_136 : f32 to vector<16x1024xf32>
    %335 = arith.addf %334, %333 : vector<16x1024xf32>
    %336 = arith.mulf %331, %335 : vector<16x1024xf32>
    %cst_137 = arith.constant 1.42141378 : f32
    %337 = vector.broadcast %cst_137 : f32 to vector<16x1024xf32>
    %338 = arith.addf %337, %336 : vector<16x1024xf32>
    %339 = arith.mulf %331, %338 : vector<16x1024xf32>
    %cst_138 = arith.constant -0.284496725 : f32
    %340 = vector.broadcast %cst_138 : f32 to vector<16x1024xf32>
    %341 = arith.addf %340, %339 : vector<16x1024xf32>
    %342 = arith.mulf %331, %341 : vector<16x1024xf32>
    %cst_139 = arith.constant 0.254829586 : f32
    %343 = vector.broadcast %cst_139 : f32 to vector<16x1024xf32>
    %344 = arith.addf %343, %342 : vector<16x1024xf32>
    %345 = arith.mulf %331, %344 : vector<16x1024xf32>
    %cst_140 = arith.constant 0.000000e+00 : f32
    %346 = vector.broadcast %cst_140 : f32 to vector<16x1024xf32>
    %347 = arith.subf %346, %325 : vector<16x1024xf32>
    %348 = arith.mulf %347, %325 : vector<16x1024xf32>
    %349 = math.exp %348 : vector<16x1024xf32>
    %350 = arith.mulf %345, %349 : vector<16x1024xf32>
    %cst_141 = arith.constant 1.000000e+00 : f32
    %351 = vector.broadcast %cst_141 : f32 to vector<16x1024xf32>
    %352 = arith.subf %351, %350 : vector<16x1024xf32>
    %cst_142 = arith.constant 0.000000e+00 : f32
    %353 = vector.broadcast %cst_142 : f32 to vector<16x1024xf32>
    %354 = arith.cmpf oge, %324, %353 : vector<16x1024xf32>
    %cst_143 = arith.constant 0.000000e+00 : f32
    %355 = vector.broadcast %cst_143 : f32 to vector<16x1024xf32>
    %356 = arith.subf %355, %352 : vector<16x1024xf32>
    %357 = arith.select %354, %352, %356 : vector<16x1024xi1>, vector<16x1024xf32>
    %cst_144 = arith.constant 5.000000e-01 : f32
    %358 = vector.broadcast %cst_144 : f32 to vector<16x1024xf32>
    %359 = arith.mulf %358, %322 : vector<16x1024xf32>
    %cst_145 = arith.constant 1.000000e+00 : f32
    %360 = vector.broadcast %cst_145 : f32 to vector<16x1024xf32>
    %361 = arith.addf %360, %357 : vector<16x1024xf32>
    %362 = arith.mulf %359, %361 : vector<16x1024xf32>
    %363 = arith.truncf %362 : vector<16x1024xf32> to vector<16x1024xbf16>
    %c0_146 = arith.constant 0 : index
    %c0_147 = arith.constant 0 : index
    %364 = vector.load %arg13[%c0_146, %c0_147] : memref<1024x256xbf16, #tpu.memory_space<vmem>>, vector<1024x256xbf16>
    %cst_148 = arith.constant dense<0.000000e+00> : vector<16x256xf32>
    %365 = tpu.matmul %363, %364, %cst_148 {dimension_numbers = #tpu.dot_dimension_numbers<[1], [0], [0], [1], [0, 0, 1, 1], [], []>} : vector<16x1024xbf16>, vector<1024x256xbf16>, vector<16x256xf32> -> vector<16x256xf32>
    %c0_149 = arith.constant 0 : index
    %c0_150 = arith.constant 0 : index
    %366 = vector.load %arg14[%c0_149, %c0_150] : memref<1x256xf32, #tpu.memory_space<vmem>>, vector<1x256xf32>
    %367 = vector.broadcast %366 : vector<1x256xf32> to vector<16x256xf32>
    %368 = arith.addf %365, %367 : vector<16x256xf32>
    %369 = arith.addf %316, %368 : vector<16x256xf32>
    %c0_151 = arith.constant 0 : index
    %c0_152 = arith.constant 0 : index
    %370 = vector.load %arg19[%c0_151, %c0_152] : memref<1x256xf32, #tpu.memory_space<vmem>>, vector<1x256xf32>
    %c0_153 = arith.constant 0 : index
    %c0_154 = arith.constant 0 : index
    %371 = vector.load %arg20[%c0_153, %c0_154] : memref<1x256xf32, #tpu.memory_space<vmem>>, vector<1x256xf32>
    %cst_155 = arith.constant dense<0.000000e+00> : vector<16xf32>
    %372 = vector.multi_reduction <add>, %369, %cst_155 [1] : vector<16x256xf32> to vector<16xf32>
    %373 = vector.shape_cast %372 : vector<16xf32> to vector<16x1xf32>
    %cst_156 = arith.constant 2.560000e+02 : f32
    %374 = vector.broadcast %cst_156 : f32 to vector<16x1xf32>
    %375 = arith.divf %373, %374 : vector<16x1xf32>
    %376 = vector.broadcast %375 : vector<16x1xf32> to vector<16x256xf32>
    %377 = arith.subf %369, %376 : vector<16x256xf32>
    %378 = arith.mulf %377, %377 : vector<16x256xf32>
    %cst_157 = arith.constant dense<0.000000e+00> : vector<16xf32>
    %379 = vector.multi_reduction <add>, %378, %cst_157 [1] : vector<16x256xf32> to vector<16xf32>
    %380 = vector.shape_cast %379 : vector<16xf32> to vector<16x1xf32>
    %cst_158 = arith.constant 2.560000e+02 : f32
    %381 = vector.broadcast %cst_158 : f32 to vector<16x1xf32>
    %382 = arith.divf %380, %381 : vector<16x1xf32>
    %cst_159 = arith.constant 9.99999974E-6 : f32
    %383 = vector.broadcast %cst_159 : f32 to vector<16x1xf32>
    %384 = arith.addf %382, %383 : vector<16x1xf32>
    %385 = math.rsqrt %384 : vector<16x1xf32>
    %386 = vector.broadcast %385 : vector<16x1xf32> to vector<16x256xf32>
    %387 = arith.mulf %377, %386 : vector<16x256xf32>
    %388 = vector.broadcast %370 : vector<1x256xf32> to vector<16x256xf32>
    %389 = arith.mulf %387, %388 : vector<16x256xf32>
    %390 = vector.broadcast %371 : vector<1x256xf32> to vector<16x256xf32>
    %391 = arith.addf %389, %390 : vector<16x256xf32>
    %c0_160 = arith.constant 0 : index
    %c0_161 = arith.constant 0 : index
    %c0_162 = arith.constant 0 : index
    %392 = vector.load %arg21[%c0_160, %c0_161, %c0_162] : memref<1x16x256xf32, #tpu.memory_space<vmem>>, vector<1x16x256xf32>
    %393 = vector.shape_cast %392 : vector<1x16x256xf32> to vector<16x256xf32>
    %394 = vector.shape_cast %391 : vector<16x256xf32> to vector<1x16x256xf32>
    tpu.vector_store %arg21[%c0_160, %c0_161, %c0_162], %394 {strides = array<i32>} : memref<1x16x256xf32, #tpu.memory_space<vmem>>, vector<1x16x256xf32>,
    return
  }
  func.func @transform_0(%arg0: i32) -> (i32, i32, i32) {
    %c0_i32 = arith.constant 0 : i32
    %c0_i32_0 = arith.constant 0 : i32
    %c0_i32_1 = arith.constant 0 : i32
    return %arg0, %c0_i32, %c0_i32_0 : i32, i32, i32
  }
  func.func @transform_1(%arg0: i32) -> (i32, i32, i32) {
    %c0_i32 = arith.constant 0 : i32
    %c0_i32_0 = arith.constant 0 : i32
    %c0_i32_1 = arith.constant 0 : i32
    return %arg0, %c0_i32, %c0_i32_0 : i32, i32, i32
  }
  func.func @transform_2(%arg0: i32) -> (i32, i32) {
    %c0_i32 = arith.constant 0 : i32
    %c0_i32_0 = arith.constant 0 : i32
    %c0_i32_1 = arith.constant 0 : i32
    return %c0_i32, %c0_i32_0 : i32, i32
  }
  func.func @transform_3(%arg0: i32) -> (i32, i32) {
    %c0_i32 = arith.constant 0 : i32
    %c0_i32_0 = arith.constant 0 : i32
    %c0_i32_1 = arith.constant 0 : i32
    return %c0_i32, %c0_i32_0 : i32, i32
  }
  func.func @transform_4(%arg0: i32) -> (i32, i32, i32) {
    %c0_i32 = arith.constant 0 : i32
    %c0_i32_0 = arith.constant 0 : i32
    %c0_i32_1 = arith.constant 0 : i32
    %c0_i32_2 = arith.constant 0 : i32
    return %c0_i32, %c0_i32_0, %c0_i32_1 : i32, i32, i32
  }
  func.func @transform_5(%arg0: i32) -> (i32, i32) {
    %c0_i32 = arith.constant 0 : i32
    %c0_i32_0 = arith.constant 0 : i32
    %c0_i32_1 = arith.constant 0 : i32
    return %c0_i32, %c0_i32_0 : i32, i32
  }
  func.func @transform_6(%arg0: i32) -> (i32, i32) {
    %c0_i32 = arith.constant 0 : i32
    %c0_i32_0 = arith.constant 0 : i32
    %c0_i32_1 = arith.constant 0 : i32
    return %c0_i32, %c0_i32_0 : i32, i32
  }
  func.func @transform_7(%arg0: i32) -> (i32, i32) {
    %c0_i32 = arith.constant 0 : i32
    %c0_i32_0 = arith.constant 0 : i32
    %c0_i32_1 = arith.constant 0 : i32
    return %c0_i32, %c0_i32_0 : i32, i32
  }
  func.func @transform_8(%arg0: i32) -> (i32, i32, i32) {
    %c0_i32 = arith.constant 0 : i32
    %c0_i32_0 = arith.constant 0 : i32
    %c0_i32_1 = arith.constant 0 : i32
    %c0_i32_2 = arith.constant 0 : i32
    return %c0_i32, %c0_i32_0, %c0_i32_1 : i32, i32, i32
  }
  func.func @transform_9(%arg0: i32) -> (i32, i32) {
    %c0_i32 = arith.constant 0 : i32
    %c0_i32_0 = arith.constant 0 : i32
    %c0_i32_1 = arith.constant 0 : i32
    return %c0_i32, %c0_i32_0 : i32, i32
  }
  func.func @transform_10(%arg0: i32) -> (i32, i32) {
    %c0_i32 = arith.constant 0 : i32
    %c0_i32_0 = arith.constant 0 : i32
    %c0_i32_1 = arith.constant 0 : i32
    return %c0_i32, %c0_i32_0 : i32, i32
  }
  func.func @transform_11(%arg0: i32) -> (i32, i32) {
    %c0_i32 = arith.constant 0 : i32
    %c0_i32_0 = arith.constant 0 : i32
    %c0_i32_1 = arith.constant 0 : i32
    return %c0_i32, %c0_i32_0 : i32, i32
  }
  func.func @transform_12(%arg0: i32) -> (i32, i32) {
    %c0_i32 = arith.constant 0 : i32
    %c0_i32_0 = arith.constant 0 : i32
    %c0_i32_1 = arith.constant 0 : i32
    return %c0_i32, %c0_i32_0 : i32, i32
  }
  func.func @transform_13(%arg0: i32) -> (i32, i32) {
    %c0_i32 = arith.constant 0 : i32
    %c0_i32_0 = arith.constant 0 : i32
    %c0_i32_1 = arith.constant 0 : i32
    return %c0_i32, %c0_i32_0 : i32, i32
  }
  func.func @transform_14(%arg0: i32) -> (i32, i32) {
    %c0_i32 = arith.constant 0 : i32
    %c0_i32_0 = arith.constant 0 : i32
    %c0_i32_1 = arith.constant 0 : i32
    return %c0_i32, %c0_i32_0 : i32, i32
  }
  func.func @transform_15(%arg0: i32) -> (i32, i32) {
    %c0_i32 = arith.constant 0 : i32
    %c0_i32_0 = arith.constant 0 : i32
    %c0_i32_1 = arith.constant 0 : i32
    return %c0_i32, %c0_i32_0 : i32, i32
  }
  func.func @transform_16(%arg0: i32) -> (i32, i32) {
    %c0_i32 = arith.constant 0 : i32
    %c0_i32_0 = arith.constant 0 : i32
    %c0_i32_1 = arith.constant 0 : i32
    return %c0_i32, %c0_i32_0 : i32, i32
  }
  func.func @transform_17(%arg0: i32) -> (i32, i32) {
    %c0_i32 = arith.constant 0 : i32
    %c0_i32_0 = arith.constant 0 : i32
    %c0_i32_1 = arith.constant 0 : i32
    return %c0_i32, %c0_i32_0 : i32, i32
  }
  func.func @transform_18(%arg0: i32) -> (i32, i32) {
    %c0_i32 = arith.constant 0 : i32
    %c0_i32_0 = arith.constant 0 : i32
    %c0_i32_1 = arith.constant 0 : i32
    return %c0_i32, %c0_i32_0 : i32, i32
  }
  func.func @transform_19(%arg0: i32) -> (i32, i32) {
    %c0_i32 = arith.constant 0 : i32
    %c0_i32_0 = arith.constant 0 : i32
    %c0_i32_1 = arith.constant 0 : i32
    return %c0_i32, %c0_i32_0 : i32, i32
  }
  func.func @transform_20(%arg0: i32) -> (i32, i32, i32) {
    %c0_i32 = arith.constant 0 : i32
    %c0_i32_0 = arith.constant 0 : i32
    %c0_i32_1 = arith.constant 0 : i32
    return %arg0, %c0_i32, %c0_i32_0 : i32, i32, i32
  }
}

</mosaic_0001>

<bundles_post_ra>
// kernel: transformer_block_forward.1
= control target key start
LH: loop header
LB: loop body
LE: loop exit
PB: predicated region body
PF: predicated region fallthrough
CT: control target
= control target key end

     0   :  { %s10137_s0 = inlined_call_operand.hbm [shape: f32[2,16,256], index: 0, kind: input, shape index: {}]   ;;  %s10138_s1 = inlined_call_operand.hbm [shape: f32[2,1,256], index: 1, kind: input, shape index: {}]   ;;  %s10139_s2 = inlined_call_operand.hbm [shape: bf16[256,768], index: 2, kind: input, shape index: {}]   ;;  %s10140_s3 = inlined_call_operand.vmem [shape: f32[1,768], index: 3, kind: input, shape index: {}]   ;;  %s10141_s4 = inlined_call_operand.hbm [shape: bf16[8,32,256], index: 4, kind: input, shape index: {}]   ;;  %s10142_s5 = inlined_call_operand.vmem [shape: f32[1,256], index: 5, kind: input, shape index: {}]   ;;  %s10143_s6 = inlined_call_operand.hbm [shape: bf16[256,768], index: 6, kind: input, shape index: {}]   ;;  %s10144_s7 = inlined_call_operand.hbm [shape: f32[1,768], index: 7, kind: input, shape index: {}]   ;;  %s10145_s8 = inlined_call_operand.hbm [shape: bf16[8,32,256], index: 8, kind: input, shape index: {}]   ;;  %s10146_s9 = inlined_call_operand.hbm [shape: f32[1,256], index: 9, kind: input, shape index: {}]   ;;  %s10147_s10 = inlined_call_operand.hbm [shape: bf16[256,1024], index: 10, kind: input, shape index: {}]   ;;  %s10148_s11 = inlined_call_operand.vmem [shape: f32[1,1024], index: 11, kind: input, shape index: {}]   ;;  %s10149_s12 = inlined_call_operand.hbm [shape: bf16[1024,256], index: 12, kind: input, shape index: {}]   ;;  %s10150_s13 = inlined_call_operand.hbm [shape: f32[1,256], index: 13, kind: input, shape index: {}]   ;;  %s10151_s14 = inlined_call_operand.vmem [shape: f32[1,256], index: 14, kind: input, shape index: {}]   ;;  %s10152_s15 = inlined_call_operand.hbm [shape: f32[1,256], index: 15, kind: input, shape index: {}]   ;;  %s10153_s16 = inlined_call_operand.vmem [shape: f32[1,256], index: 16, kind: input, shape index: {}]   ;;  %s10154_s17 = inlined_call_operand.hbm [shape: f32[1,256], index: 17, kind: input, shape index: {}]   ;;  %s10155_s18 = inlined_call_operand.vmem [shape: f32[1,256], index: 18, kind: input, shape index: {}]   ;;  %s10156_s19 = inlined_call_operand.vmem [shape: f32[1,256], index: 19, kind: input, shape index: {}]   ;;  %s10157_s20 = inlined_call_operand.hbm [shape: f32[2,16,256], index: 20, kind: output, shape index: {}]  }
   0x1   :  { %10173 = sst [smem:[#allocation36_spill]] %s10137_s0 }
   0x2   :  { %10174 = sst [smem:[#allocation37_spill]] %s10138_s1 }
   0x3   :  { %10175 = sst [smem:[#allocation38_spill]] %s10139_s2 }
   0x4   :  { %10176 = sst [smem:[#allocation39_spill]] %s10140_s3 }
   0x5   :  { %10177 = sst [smem:[#allocation40_spill]] %s10141_s4 }
   0x6   :  { %10178 = sst [smem:[#allocation41_spill]] %s10143_s6 }
   0x7   :  { %10179 = sst [smem:[#allocation42_spill]] %s10144_s7 }
   0x8   :  { %10180 = sst [smem:[#allocation43_spill]] %s10145_s8 }
   0x9   :  { %10181 = sst [smem:[#allocation44_spill]] %s10146_s9 }
   0xa   :  { %10182 = sst [smem:[#allocation45_spill]] %s10147_s10 }
   0xb   :  { %10183 = sst [smem:[#allocation46_spill]] %s10148_s11 }
   0xc   :  { %10184 = sst [smem:[#allocation47_spill]] %s10149_s12 }
   0xd   :  { %10185 = sst [smem:[#allocation48_spill]] %s10150_s13 }
   0xe   :  { %10186 = sst [smem:[#allocation49_spill]] %s10152_s15 }
   0xf   :  { %10187 = sst [smem:[#allocation50_spill]] %s10154_s17 }
  0x10   :  { %10188 = sst [smem:[#allocation51_spill]] %s10155_s18 }
  0x11   :  { %10189 = sst [smem:[#allocation52_spill]] %s10156_s19 }
  0x12   :  { %10190 = sst [smem:[#allocation53_spill]] %s10157_s20 }
  0x13   :  { %25 = vsyncpa [#allocation3], 0 }
  0x14   :  { %27 = vsyncpa [#allocation3 + $0x1], 0 }
  0x15   :  { %28 = vsyncpa [#allocation6], 0 }
  0x16   :  { %30 = vsyncpa [#allocation6 + $0x1], 0 }
  0x17   :  { %31 = vsyncpa [#allocation9], 0 }
  0x18   :  { %32 = vsyncpa [#allocation12], 0 }
  0x19   :  { %33 = vsyncpa [#allocation15], 0 }
  0x1a   :  { %34 = vsyncpa [#allocation18], 0 }
  0x1b   :  { %35 = vsyncpa [#allocation21], 0 }
  0x1c   :  { %36 = vsyncpa [#allocation4], 0 }
  0x1d   :  { %38 = vsyncpa [#allocation4 + $0x1], 0  ;;  %s8977_s1 = smov 0   ;;  %s8979_s22 = smov 0  }
  0x1e   :  { %s8981_s23 = smov 0   ;;  %s8983_s24 = smov 0  }
  0x1f LB: > { %10191 = sst [smem:[#allocation33_spill]] %s8835_s23  ;;  %s8841_s2 = smov [#allocation7]   ;;  %s8839_s24 = sphi %s8983_s24, %s10242_s24   ;;  %s8835_s23 = sphi %s8981_s23, %s10244_s23   ;;  %s8831_s22 = sphi %s8979_s22, %s10246_s22   ;;  %s8827_s1 = sphi %s8977_s1, %s10245_s1  }
  0x20   : > { %s517_s25 = sshll.u32 %s8841_s2, 4  ;;  %s8998_s3 = sadd.s32 4294967295, %s8839_s24   ;;  %s518_s25 = int_to_ptr.vmem [resolvable:$true] %s517_s25 }
  0x21   : > { %p6952_p0 = scmp.ge.s32.totalorder %s8839_s24, 1  ;;  %p10163_p1 = scmp.eq.s32.totalorder %s8998_s3, 0 }
  0x22   : > { %p505_p2 = scmp.lt.s32.totalorder %s8839_s24, 3  ;;  %s8842_s27 = smov [#allocation8]  }
  0x23   : > { %s533_s28 = sshll.u32 %s8842_s27, 4  ;;  %s8843_s29 = smov [#allocation11]   ;;  %s9016_s28 = int_to_ptr.vmem [resolvable:$true] %s533_s28 }
  0x24   : > { %p9003_p3 = pnand %p6952_p0, %p505_p2  ;;  %s9018_s30 = sshll.u32 %s8843_s29, 4  ;;  %s564_s30 = int_to_ptr.vmem [resolvable:$true] %s9018_s30 }
  0x25   : > { %s8416_s21 = scalar_lea.vmem %s518_s25, 12288  ;;  %p8424_p11 = scmp.lt.s32.totalorder %s518_s25, %s518_s25 }
  0x26   : > { %s10192_s26 = scalar_select %p9003_p3, 1, 0 }
  0x27   : > { %p7652_p5 = pneg %p9003_p3  ;;  %p8417_p8 = scmp.ne.s32.totalorder %s518_s25, %s8416_s21 }
  0x28   : > { %p8425_p12 = scmp.lt.s32.totalorder %s8416_s21, %s8416_s21 }
  0x29   : > { %p9012_p6 = pnand %p7652_p5, %p10163_p1 }
  0x2a   : > { %p8426_p13 = por %p8425_p12, %p8424_p11 }
  0x2b   : > { %p9022_p7 = pneg %p9012_p6 }
  0x2d   : > { %p8419_p9 = pnand %p8417_p8, %p9022_p7 }
  0x2f   : > { %p8420_p10 = pneg %p8419_p9 }
  0x31   : > { %p8427_p0 = pnand %p8426_p13, %p8420_p10 }
  0x33   : > { %8430 = shalt.err (!%p8427_p0)
}
  0x34   : > { %s10161_s2 = smov 384   ;;  %s10162_s27 = smov 24  }
  0x35   : > { %s10195_s19 = sld [smem:[#allocation38_spill]]  ;;  %s8442_s18 = scalar_lea.vmem %s9016_s28, 4096 }
  0x36   : > { %p8443_p2 = scmp.ne.s32.totalorder %s9016_s28, %s8442_s18  ;;  %p8450_p9 = scmp.lt.s32.totalorder %s9016_s28, %s9016_s28 }
  0x37   : > { %p8451_p10 = scmp.lt.s32.totalorder %s8442_s18, %s8442_s18 }
  0x38   : > { %p8445_p5 = pnand %p8443_p2, %p9022_p7 }
  0x39   : > { %p8452_p11 = por %p8451_p10, %p8450_p9 }
  0x3a   : > { %p8446_p8 = pneg %p8445_p5 }
  0x3b   : > { %7655 = dma.hbm_to_vmem [thread:$0]  (!%p9012_p6), %s10195_s19, 12288, %s518_s25, [#allocation6], %s10161_s2, %s10161_s2, %s10162_s27  }
  0x3c   : > { %p8453_p12 = pnand %p8452_p11, %p8446_p8 }
  0x3e   : > { %8456 = shalt.err (!%p8453_p12)
}
  0x3f   : > { %s10165_s21 = smov 128   ;;  %s10166_s11 = smov 8  }
  0x40   : > { %s10196_s25 = sld [smem:[#allocation40_spill]]  ;;  %s8468_s29 = scalar_lea.vmem %s564_s30, 96 }
  0x41   : > { %p8469_p13 = scmp.ne.s32.totalorder %s564_s30, %s8468_s29  ;;  %p8476_p5 = scmp.lt.s32.totalorder %s564_s30, %s564_s30 }
  0x42   : > { %p8477_p8 = scmp.lt.s32.totalorder %s8468_s29, %s8468_s29 }
  0x43   : > { %p8471_p0 = pnand %p8469_p13, %p9022_p7 }
  0x44   : > { %p8478_p9 = por %p8477_p8, %p8476_p5 }
  0x45   : > { %p8472_p2 = pneg %p8471_p0 }
  0x46   : > { %7658 = dma.hbm_to_vmem [thread:$0]  (!%p9012_p6), %s10196_s25, 4096, %s9016_s28, [#allocation9], %s10165_s21, %s10165_s21, %s10166_s11  }
  0x47   : > { %p8479_p10 = pnand %p8478_p9, %p8472_p2 }
  0x49   : > { %8482 = shalt.err (!%p8479_p10)
}
  0x4a   : > { %s10197_s7 = sld [smem:[#allocation42_spill]]  ;;  %s8848_s19 = smov [#allocation14]  }
  0x4b   : > { %s587_s28 = sshll.u32 %s8848_s19, 4  ;;  %s8849_s20 = smov [#allocation17]   ;;  %s588_s28 = int_to_ptr.vmem [resolvable:$true] %s587_s28 }
  0x4c   : > { %s613_s25 = sshll.u32 %s8849_s20, 4  ;;  %s8494_s27 = scalar_lea.vmem %s588_s28, 32  ;;  %s614_s25 = int_to_ptr.vmem [resolvable:$true] %s613_s25 }
  0x4d   : > { %p8495_p11 = scmp.ne.s32.totalorder %s588_s28, %s8494_s27  ;;  %p8502_p0 = scmp.lt.s32.totalorder %s588_s28, %s588_s28 }
  0x4e   : > { %p8503_p2 = scmp.lt.s32.totalorder %s8494_s27, %s8494_s27 }
  0x4f   : > { %p8497_p12 = pnand %p8495_p11, %p9022_p7 }
  0x50   : > { %7664 = dma.hbm_to_vmem [thread:$0]  (!%p9012_p6), %s10197_s7, 96, %s564_s30, [#allocation12]  }
  0x51   : > { %p8498_p13 = pneg %p8497_p12  ;;  %p8504_p5 = por %p8503_p2, %p8502_p0 }
  0x53   : > { %p8505_p8 = pnand %p8504_p5, %p8498_p13 }
  0x55   : > { %8508 = shalt.err (!%p8505_p8)
}
  0x56   : > { %s10198_s9 = sld [smem:[#allocation44_spill]]  ;;  %s8520_s30 = scalar_lea.vmem %s614_s25, 16384 }
  0x57   : > { %p8521_p9 = scmp.ne.s32.totalorder %s614_s25, %s8520_s30  ;;  %p8528_p11 = scmp.lt.s32.totalorder %s614_s25, %s614_s25 }
  0x58   : > { %p8529_p12 = scmp.lt.s32.totalorder %s8520_s30, %s8520_s30 }
  0x59   : > { %p8523_p10 = pnand %p8521_p9, %p9022_p7 }
  0x5a   : > { %p8530_p1 = por %p8529_p12, %p8528_p11 }
  0x5b   : > { %p8524_p4 = pneg %p8523_p10 }
  0x5c   : > { %7670 = dma.hbm_to_vmem [thread:$0]  (!%p9012_p6), %s10198_s9, 32, %s588_s28, [#allocation15]  }
  0x5d   : > { %p8531_p3 = pnand %p8530_p1, %p8524_p4 }
  0x5f   : > { %8534 = shalt.err (!%p8531_p3)
}
  0x60   : > { %s10199_s12 = sld [smem:[#allocation47_spill]]  ;;  %s8850_s19 = smov [#allocation20]  }
  0x61   : > { %s641_s28 = sshll.u32 %s8850_s19, 4  ;;  %s8851_s20 = smov [#allocation10]   ;;  %s642_s28 = int_to_ptr.vmem [resolvable:$true] %s641_s28 }
  0x62   : > { %s549_s2 = sshll.u32 %s8851_s20, 4  ;;  %s8546_s29 = scalar_lea.vmem %s642_s28, 32  ;;  %s550_s2 = int_to_ptr.vmem [resolvable:$true] %s549_s2 }
  0x63   : > { %p8547_p13 = scmp.ne.s32.totalorder %s642_s28, %s8546_s29  ;;  %p8554_p4 = scmp.lt.s32.totalorder %s642_s28, %s642_s28 }
  0x64   : > { %p8555_p0 = scmp.lt.s32.totalorder %s8546_s29, %s8546_s29 }
  0x65   : > { %p8549_p1 = pnand %p8547_p13, %p9022_p7 }
  0x66   : > { %7676 = dma.hbm_to_vmem [thread:$0]  (!%p9012_p6), %s10199_s12, 16384, %s614_s25, [#allocation18], %s10165_s21, %s10165_s21, %s10166_s11  }
  0x67   : > { %p8550_p3 = pneg %p8549_p1  ;;  %p8556_p2 = por %p8555_p0, %p8554_p4 }
  0x69   : > { %p8557_p5 = pnand %p8556_p2, %p8550_p3 }
  0x6b   : > { %8560 = shalt.err (!%p8557_p5)
}
  0x6c   : > { %s10200_s15 = sld [smem:[#allocation49_spill]]  ;;  %s8572_s25 = scalar_lea.vmem %s550_s2, 12288 }
  0x6d   : > { %p8573_p8 = scmp.ne.s32.totalorder %s550_s2, %s8572_s25  ;;  %p8580_p11 = scmp.lt.s32.totalorder %s550_s2, %s550_s2 }
  0x6e   : > { %p8581_p12 = scmp.lt.s32.totalorder %s8572_s25, %s8572_s25 }
  0x6f   : > { %p8575_p9 = pnand %p8573_p8, %p9022_p7 }
  0x70   : > { %p8582_p13 = por %p8581_p12, %p8580_p11 }
  0x71   : > { %p8576_p10 = pneg %p8575_p9 }
  0x72   : > { %7682 = dma.hbm_to_vmem [thread:$0]  (!%p9012_p6), %s10200_s15, 32, %s642_s28, [#allocation21]  }
  0x73   : > { %p8583_p1 = pnand %p8582_p13, %p8576_p10 }
  0x75   : > { %8586 = shalt.err (!%p8583_p1)
}
  0x76   : > { %s10201_s18 = smov 24   ;;  %s10202_s19 = smov 384  }
  0x77   : > { %s10203_s6 = sld [smem:[#allocation41_spill]]  ;;  %s8852_s28 = smov [#allocation13]  }
  0x78   : > { %s573_s30 = sshll.u32 %s8852_s28, 4  ;;  %s8853_s27 = smov [#allocation16]   ;;  %s574_s30 = int_to_ptr.vmem [resolvable:$true] %s573_s30 }
  0x79   : > { %s597_s21 = sshll.u32 %s8853_s27, 4  ;;  %s8598_s11 = scalar_lea.vmem %s574_s30, 4096  ;;  %s598_s21 = int_to_ptr.vmem [resolvable:$true] %s597_s21 }
  0x7a   : > { %p8599_p3 = scmp.ne.s32.totalorder %s574_s30, %s8598_s11  ;;  %p8606_p2 = scmp.lt.s32.totalorder %s574_s30, %s574_s30 }
  0x7b   : > { %p8607_p5 = scmp.lt.s32.totalorder %s8598_s11, %s8598_s11 }
  0x7c   : > { %p8601_p4 = pnand %p8599_p3, %p9022_p7 }
  0x7d   : > { %7661 = dma.hbm_to_vmem [thread:$0]  (!%p9012_p6), %s10203_s6, 12288, %s550_s2, [#allocation9], %s10202_s19, %s10202_s19, %s10201_s18  }
  0x7e   : > { %p8602_p0 = pneg %p8601_p4  ;;  %p8608_p8 = por %p8607_p5, %p8606_p2 }
  0x80   : > { %p8609_p9 = pnand %p8608_p8, %p8602_p0 }
  0x82   : > { %8612 = shalt.err (!%p8609_p9)
}
  0x83   : > { %s10204_s25 = smov 8   ;;  %s10205_s20 = smov 128  }
  0x84   : > { %s10206_s8 = sld [smem:[#allocation43_spill]]  ;;  %s8624_s19 = scalar_lea.vmem %s598_s21, 16384 }
  0x85   : > { %p8625_p10 = scmp.ne.s32.totalorder %s598_s21, %s8624_s19  ;;  %p8632_p13 = scmp.lt.s32.totalorder %s598_s21, %s598_s21 }
  0x86   : > { %p8633_p1 = scmp.lt.s32.totalorder %s8624_s19, %s8624_s19 }
  0x87   : > { %p8627_p11 = pnand %p8625_p10, %p9022_p7 }
  0x88   : > { %p8634_p3 = por %p8633_p1, %p8632_p13 }
  0x89   : > { %p8628_p12 = pneg %p8627_p11 }
  0x8a   : > { %7667 = dma.hbm_to_vmem [thread:$0]  (!%p9012_p6), %s10206_s8, 4096, %s574_s30, [#allocation12], %s10205_s20, %s10205_s20, %s10204_s25  }
  0x8b   : > { %p8635_p4 = pnand %p8634_p3, %p8628_p12 }
  0x8d   : > { %8638 = shalt.err (!%p8635_p4)
}
  0x8e   : > { %s8854_s11 = smov 512   ;;  %s8855_s29 = smov 32  }
  0x8f   : > { %s10207_s10 = sld [smem:[#allocation45_spill]]  ;;  %s8856_s30 = smov [#allocation19]  }
  0x90   : > { %s627_s25 = sshll.u32 %s8856_s30, 4  ;;  %s8857_s20 = smov [#allocation22]   ;;  %s628_s25 = int_to_ptr.vmem [resolvable:$true] %s627_s25 }
  0x91   : > { %s655_s2 = sshll.u32 %s8857_s20, 4  ;;  %s8650_s18 = scalar_lea.vmem %s628_s25, 32  ;;  %s656_s2 = int_to_ptr.vmem [resolvable:$true] %s655_s2 }
  0x92   : > { %p8651_p0 = scmp.ne.s32.totalorder %s628_s25, %s8650_s18  ;;  %p8658_p8 = scmp.lt.s32.totalorder %s628_s25, %s628_s25 }
  0x93   : > { %p8659_p9 = scmp.lt.s32.totalorder %s8650_s18, %s8650_s18 }
  0x94   : > { %p8653_p2 = pnand %p8651_p0, %p9022_p7 }
  0x95   : > { %7673 = dma.hbm_to_vmem [thread:$0]  (!%p9012_p6), %s10207_s10, 16384, %s598_s21, [#allocation15], %s8854_s11, %s8854_s11, %s8855_s29  }
  0x96   : > { %p8654_p5 = pneg %p8653_p2  ;;  %p8660_p10 = por %p8659_p9, %p8658_p8 }
  0x98   : > { %p8661_p11 = pnand %p8660_p10, %p8654_p5 }
  0x9a   : > { %8664 = shalt.err (!%p8661_p11)
}
  0x9b   : > { %s10208_s13 = sld [smem:[#allocation48_spill]]  ;;  %s8676_s21 = scalar_lea.vmem %s656_s2, 32 }
  0x9c   : > { %p8677_p12 = scmp.ne.s32.totalorder %s656_s2, %s8676_s21  ;;  %p8684_p3 = scmp.lt.s32.totalorder %s656_s2, %s656_s2 }
  0x9d   : > { %p8685_p4 = scmp.lt.s32.totalorder %s8676_s21, %s8676_s21 }
  0x9e   : > { %p8679_p13 = pnand %p8677_p12, %p9022_p7 }
  0x9f   : > { %p8686_p0 = por %p8685_p4, %p8684_p3 }
  0xa0   : > { %p8680_p1 = pneg %p8679_p13 }
  0xa1   : > { %7679 = dma.hbm_to_vmem [thread:$0]  (!%p9012_p6), %s10208_s13, 32, %s628_s25, [#allocation18]  }
  0xa2   : > { %p8687_p2 = pnand %p8686_p0, %p8680_p1 }
  0xa4   : > { %8690 = shalt.err (!%p8687_p2)
}
  0xa5   : > { %s10209_s17 = sld [smem:[#allocation50_spill]]  ;;  %s6951_s0 = sadd.s32 4294967294, %s8839_s24  }
  0xa6   : > { %s9126_s4 = sadd.s32 1, %s8839_s24   ;;  %s51_s27 = sadd.s32 1, %s8835_s23 }
  0xa7   : > { %10210 = sst [smem:[#allocation34_spill]] %s9126_s4  ;;  %s48_s30 = ssub.s32 %s8839_s24, %s9126_s4 }
  0xa8   : > { %p58_p7 = scmp.ne.s32.totalorder %s8835_s23, %s8831_s22  ;;  %p49_p5 = scmp.eq.s32.totalorder %s48_s30, 0 }
  0xa9   : > { %p59_p8 = scmp.eq.s32.totalorder %s8839_s24, 0  ;;  %p64_p9 = scmp.ne.s32.totalorder %s8831_s22, %s8827_s1 }
  0xaa   : > { %p492_p10 = scmp.eq.s32.totalorder %s8998_s3, 1  ;;  %p10212_p12 = scmp.eq.s32.totalorder %s8998_s3, 0 }
  0xab   : > { %7685 = dma.hbm_to_vmem [thread:$0]  (!%p9012_p6), %s10209_s17, 32, %s656_s2, [#allocation21]  }
  0xac   : > { %s9138_s25 = scalar_select %p49_p5, %s8835_s23, %s51_s27  }
  0xad   : > { %p60_p11 = por %p59_p8, %p58_p7  ;;  %p9142_p13 = por %p10212_p12, %p64_p9 }
  0xae   : > { %10211 = sst [smem:[#allocation35_spill]] %s9138_s25  ;;  %p9146_p6 = por %p492_p10, %p58_p7 }
  0xaf   : > { %s10213_s20 = scalar_select %p9142_p13, 1, 0 }
  0xb0   : > { %s10214_s2 = scalar_select %p9146_p6, 1, 0 }
  0xb1   : > { %p498_p1 = scmp.eq.s32.totalorder %s6951_s0, 1  ;;  %p7708_p3 = scmp.lt.s32.totalorder %s8839_s24, 2 }
  0xb2   : > { %s9152_s18 = sand.u32 1, %s8835_s23   ;;  %s7471_s21 = sshll.u32 %s8839_s24, 9 }
  0xb3   : > { %p9154_p4 = por %p498_p1, %p64_p9  ;;  %s6965_s28 = sshll.u32 %s9152_s18, 5 }
  0xb4   : > { %s10216_s27 = sld [smem:[#allocation36_spill]]  ;;  %s676_s0 = scalar_lea.vmem [#allocation2], %s6965_s28 }
  0xb5   : > { %s10215_s19 = scalar_select %p9154_p4, 1, 0 }
  0xb6   : > { %s683_s6 = sshll.u32 %s676_s0, 4  ;;  %p9165_p0 = pnand %p7708_p3, %p60_p11  ;;  %s9169_s6 = int_to_ptr.vmem [resolvable:$true] %s683_s6 }
  0xb8   : > { %p8693_p7 = pneg %p9165_p0 }
  0xba   : > { %s9163_s30 = scalar_lea.hbm %s10216_s27, %s7471_s21  ;;  %s8696_s11 = scalar_lea.hbm %s10216_s27, 1024 }
  0xbb   : > { %s8691_s9 = scalar_lea.hbm %s9163_s30, 512  ;;  %p8697_p9 = scmp.lt.s32.totalorder %s9163_s30, %s10216_s27 }
  0xbc   : > { %p8692_p2 = scmp.ne.s32.totalorder %s9163_s30, %s8691_s9  ;;  %p8698_p10 = scmp.lt.s32.totalorder %s8696_s11, %s8691_s9 }
  0xbe   : > { %p8694_p5 = pnand %p8693_p7, %p8692_p2  ;;  %p8699_p11 = por %p8698_p10, %p8697_p9 }
  0xc0   : > { %p8695_p8 = pneg %p8694_p5 }
  0xc2   : > { %p8700_p12 = pnand %p8699_p11, %p8695_p8 }
  0xc4   : > { %8703 = shalt.err (!%p8700_p12)
}
  0xc5   : > { %s8704_s8 = scalar_lea.vmem %s9169_s6, 512  ;;  %s8858_s21 = smov [#allocation2]  }
  0xc6   : > { %p8705_p1 = scmp.ne.s32.totalorder %s9169_s6, %s8704_s8  ;;  %s8709_s28 = sshll.u32 %s8858_s21, 4  ;;  %s8710_s28 = int_to_ptr.vmem [resolvable:$false] %s8709_s28 }
  0xc7   : > { %s8711_s10 = scalar_lea.vmem %s8710_s28, 1024  ;;  %p8712_p5 = scmp.lt.s32.totalorder %s9169_s6, %s8710_s28 }
  0xc8   : > { %p8707_p3 = pnand %p8705_p1, %p8693_p7  ;;  %p8713_p4 = scmp.lt.s32.totalorder %s8711_s10, %s8704_s8 }
  0xca   : > { %p8708_p2 = pneg %p8707_p3  ;;  %p8714_p6 = por %p8713_p4, %p8712_p5 }
  0xcc   : > { %p8715_p9 = pnand %p8714_p6, %p8708_p2 }
  0xce   : > { %8718 = shalt.err (!%p8715_p9)
}
  0xcf   : > { %s8859_s9 = smov 256   ;;  %s8860_s11 = smov 16  }
  0xd0   : > { %s10218_s29 = scalar_lea.sflag [#allocation3], %s9152_s18  ;;  %s693_s0 = sand.u32 1, %s8839_s24  }
  0xd1   : > { %7689 = dma.hbm_to_vmem [thread:$0]  (!%p9165_p0), %s9163_s30, 512, %s9169_s6, %s10218_s29, %s8859_s9, %s8859_s9, %s8860_s11  }
  0xd2   : > { %s6968_s21 = sshll.u32 %s9152_s18, 1  ;;  %s7472_s28 = sshll.u32 %s8839_s24, 5 }
  0xd3   : > { %s697_s8 = scalar_lea.vmem [#allocation5], %s6968_s21  ;;  %s10219_s15 = sld [smem:[#allocation37_spill]] }
  0xd4   : > { %s705_s10 = sshll.u32 %s697_s8, 4  ;;  %s694_s27 = scalar_lea.sflag [#allocation6], %s693_s0  ;;  %s706_s10 = int_to_ptr.vmem [resolvable:$true] %s705_s10 }
  0xd9   : > { %s703_s17 = scalar_lea.hbm %s10219_s15, %s7472_s28  ;;  %s8724_s6 = scalar_lea.hbm %s10219_s15, 64 }
  0xda   : > { %s8719_s25 = scalar_lea.hbm %s703_s17, 32  ;;  %p8725_p10 = scmp.lt.s32.totalorder %s703_s17, %s10219_s15 }
  0xdb   : > { %p8720_p6 = scmp.ne.s32.totalorder %s703_s17, %s8719_s25  ;;  %p8726_p11 = scmp.lt.s32.totalorder %s8724_s6, %s8719_s25 }
  0xdd   : > { %p8722_p4 = pnand %p8720_p6, %p8693_p7  ;;  %p8727_p12 = por %p8726_p11, %p8725_p10 }
  0xdf   : > { %p8723_p8 = pneg %p8722_p4 }
  0xe1   : > { %p8728_p1 = pnand %p8727_p12, %p8723_p8 }
  0xe3   : > { %8731 = shalt.err (!%p8728_p1)
}
  0xe4   : > { %s8732_s12 = scalar_lea.vmem %s706_s10, 32  ;;  %s8861_s13 = smov [#allocation5]  }
  0xe5   : > { %p8733_p3 = scmp.ne.s32.totalorder %s706_s10, %s8732_s12  ;;  %s8737_s9 = sshll.u32 %s8861_s13, 4  ;;  %s8738_s9 = int_to_ptr.vmem [resolvable:$false] %s8737_s9 }
  0xe6   : > { %s8739_s23 = scalar_lea.vmem %s8738_s9, 64  ;;  %p8740_p9 = scmp.lt.s32.totalorder %s706_s10, %s8738_s9 }
  0xe7   : > { %p8735_p2 = pnand %p8733_p3, %p8693_p7  ;;  %p8741_p6 = scmp.lt.s32.totalorder %s8739_s23, %s8732_s12 }
  0xe9   : > { %p8736_p5 = pneg %p8735_p2  ;;  %p8742_p4 = por %p8741_p6, %p8740_p9 }
  0xeb   : > { %p8743_p13 = pnand %p8742_p4, %p8736_p5 }
  0xed   : > { %8746 = shalt.err (!%p8743_p13)
}
  0xee   : > { %7692 = dma.hbm_to_vmem [thread:$0]  (!%p9165_p0), %s703_s17, 32, %s706_s10, %s694_s27  }
  0xef   : > { %p10220_p8 = scmp.ne.s32.totalorder %s10192_s26, 0 }
  0xf0   : > { %s9221_s4 = sand.u32 (!%p10220_p8), 1, %s8831_s22   ;;  %p10221_p7 = scmp.ne.s32.totalorder (!%p10220_p8), %s10213_s20, 0 }
  0xf1   : > { %714 = sbr.rel (%p10220_p8) target bundleno = 6781 (0x1a7d), region = 100  ;;  %s6972_s25 = sshll.u32 (!%p10220_p8), %s9221_s4, 5 }
  0xf2   : > { %s717_s11 = scalar_lea.sflag (!%p10220_p8), [#allocation3], %s9221_s4  ;;  %s9227_s29 = scalar_lea.vmem (!%p10220_p8), [#allocation2], %s6972_s25 }
  0xf6   : > { %8790 = dma.done.wait (%p10221_p7), %s717_s11, 512  }
  0xf7   : > { %8792 = vsyncadd (%p10221_p7), %s717_s11, 4294966784  ;;  %s725_s7 = sand.u32 1, %s8998_s3   ;;  %s6973_s17 = sshll.u32 %s9221_s4, 1 }
  0xf8   : > { %s726_s26 = scalar_lea.sflag [#allocation6], %s725_s7  ;;  %s9235_s27 = scalar_lea.vmem [#allocation5], %s6973_s17 }
  0xf9   : > { %8794 = dma.done.wait (%p10221_p7), %s726_s26, 32  }
  0xfa   : > { %8796 = vsyncadd (%p10221_p7), %s726_s26, 4294967264  ;;  %p10222_p13 = scmp.eq.s32.totalorder %s8998_s3, 0 }
  0xfc   : > { %8798 = dma.done.wait (%p10222_p13), [#allocation6], 12288   ;;  %p10223_p0 = pmov %p10222_p13 }
  0xfe   : > { %8800 = vsyncadd (%p10223_p0), [#allocation6], 4294955008  ;;  %p10224_p10 = pmov %p10223_p0 }
  0xff   : > { %p10225_p11 = pmov %p10223_p0 }
 0x100   : > { %8802 = dma.done.wait (%p10224_p10), [#allocation9], 16384  }
 0x101   : > { %8804 = vsyncadd (%p10225_p11), [#allocation9], 4294950912  ;;  %p10226_p12 = pmov %p10223_p0 }
 0x102   : > { %p10227_p1 = pmov %p10223_p0 }
 0x103   : > { %8806 = dma.done.wait (%p10226_p12), [#allocation12], 4192  }
 0x104   : > { %8808 = vsyncadd (%p10227_p1), [#allocation12], 4294963104  ;;  %p10228_p3 = pmov %p10223_p0 }
 0x105   : > { %p10229_p2 = pmov %p10223_p0 }
 0x106   : > { %8810 = dma.done.wait (%p10228_p3), [#allocation15], 16416  }
 0x107   : > { %8812 = vsyncadd (%p10229_p2), [#allocation15], 4294950880  ;;  %p10230_p5 = pmov %p10223_p0 }
 0x108   : > { %p10231_p9 = pmov %p10223_p0 }
 0x109   : > { %8814 = dma.done.wait (%p10230_p5), [#allocation18], 16416  }
 0x10a   : > { %8816 = vsyncadd (%p10231_p9), [#allocation18], 4294950880  ;;  %p10232_p6 = pmov %p10223_p0 }
 0x10b   : > { %p10233_p4 = pmov %p10223_p0 }
 0x10c   : > { %8818 = dma.done.wait (%p10232_p6), [#allocation21], 64  }
 0x10d   : > { %8820 = vsyncadd (%p10233_p4), [#allocation21], 4294967232  ;;  %v7781_v0 = vld [vmem:[#allocation7 + $0x15c] ss:$24 sps:$4 sm:$0xff]   ;;  %v7783_v1 = vld [vmem:[#allocation7 + $0x158] ss:$24 sps:$4 sm:$0xff]  }
 0x10e   : > { %1495 = vmatprep.subr.bf16.mxu1 %v7781_v0  ;;  %v7784_v2 = vld [vmem:[#allocation7 + $0x154] ss:$24 sps:$4 sm:$0xff]   ;;  %v7786_v3 = vld [vmem:[#allocation7 + $0x150] ss:$24 sps:$4 sm:$0xff]   ;;  %v7790_v6 = vld [vmem:[#allocation7 + $0x124] ss:$24 sps:$4 sm:$0xff]  }
 0x10f   : > { %1496 = vmatpush1.bf16.msra.mxu1 %v7783_v1  ;;  %v7787_v4 = vld [vmem:[#allocation7 + $0x12c] ss:$24 sps:$4 sm:$0xff]   ;;  %v7789_v5 = vld [vmem:[#allocation7 + $0x128] ss:$24 sps:$4 sm:$0xff]   ;;  %1452 = vmatprep.subr.bf16.mxu0 %v7784_v2  ;;  %v7793_v8 = vld [vmem:[#allocation7 + $0xfc] ss:$24 sps:$4 sm:$0xff]  }
 0x110   : > { %1453 = vmatpush1.bf16.msra.mxu0 %v7786_v3  ;;  %1497 = vmatprep.subr.bf16.mxu1 %v7787_v4  ;;  %v7792_v7 = vld [vmem:[#allocation7 + $0x120] ss:$24 sps:$4 sm:$0xff]   ;;  %v7796_v10 = vld [vmem:[#allocation7 + $0xf4] ss:$24 sps:$4 sm:$0xff]   ;;  %v7798_v12 = vld [vmem:[#allocation7 + $0xf0] ss:$24 sps:$4 sm:$0xff]  }
 0x111   : > { %1454 = vmatprep.subr.bf16.mxu0 %v7790_v6  ;;  %v7795_v9 = vld [vmem:[#allocation7 + $0xf8] ss:$24 sps:$4 sm:$0xff]   ;;  %v7799_v11 = vld [vmem:[#allocation7 + $0xcc] ss:$24 sps:$4 sm:$0xff]   ;;  %v7801_v14 = vld [vmem:[#allocation7 + $0xc8] ss:$24 sps:$4 sm:$0xff]  }
 0x112   : > { %v7802_v13 = vld [vmem:[#allocation7 + $0xc4] ss:$24 sps:$4 sm:$0xff]   ;;  %v7804_v16 = vld [vmem:[#allocation7 + $0xc0] ss:$24 sps:$4 sm:$0xff]   ;;  %v7808_v17 = vld [vmem:[#allocation7 + $0x94] ss:$24 sps:$4 sm:$0xff]  }
 0x113   : > { %1498 = vmatpush1.bf16.msra.mxu1 %v7789_v5  ;;  %v7805_v15 = vld [vmem:[#allocation7 + $0x9c] ss:$24 sps:$4 sm:$0xff]   ;;  %v7807_v18 = vld [vmem:[#allocation7 + $0x98] ss:$24 sps:$4 sm:$0xff]   ;;  %v7811_v19 = vld [vmem:[#allocation7 + $0x6c] ss:$24 sps:$4 sm:$0xff]  }
 0x114   : > { %1499 = vmatprep.subr.bf16.mxu1 %v7793_v8  ;;  %1455 = vmatpush1.bf16.msra.mxu0 %v7792_v7  ;;  %v7810_v20 = vld [vmem:[#allocation7 + $0x90] ss:$24 sps:$4 sm:$0xff]   ;;  %v7814_v21 = vld [vmem:[#allocation7 + $0x64] ss:$24 sps:$4 sm:$0xff]   ;;  %v7816_v24 = vld [vmem:[#allocation7 + $0x60] ss:$24 sps:$4 sm:$0xff]   ;;  %v942_v7 = vlaneseq }
 0x115   : > { %1456 = vmatprep.subr.bf16.mxu0 %v7796_v10  ;;  %v7813_v22 = vld [vmem:[#allocation7 + $0x68] ss:$24 sps:$4 sm:$0xff]   ;;  %v7817_v23 = vld [vmem:[#allocation7 + $0x3c] ss:$24 sps:$4 sm:$0xff]   ;;  %v7819_v26 = vld [vmem:[#allocation7 + $0x38] ss:$24 sps:$4 sm:$0xff]  }
 0x116   : > { %v7820_v25 = vld [vmem:[#allocation7 + $0x34] ss:$24 sps:$4 sm:$0xff]   ;;  %v7822_v28 = vld [vmem:[#allocation7 + $0x30] ss:$24 sps:$4 sm:$0xff]   ;;  %v7826_v29 = vld [vmem:[#allocation7 + $0x4] ss:$24 sps:$4 sm:$0xff]  }
 0x117   : > { %1500 = vmatpush1.bf16.msra.mxu1 %v7795_v9  ;;  %v7823_v27 = vld [vmem:[#allocation7 + $0xc] ss:$24 sps:$4 sm:$0xff]   ;;  %v7825_v30 = vld [vmem:[#allocation7 + $0x8] ss:$24 sps:$4 sm:$0xff]   ;;  %v7829_v31 = vld [vmem:[#allocation7 + $0x2dc] ss:$24 sps:$4 sm:$0xff]  }
 0x118   : > { %1501 = vmatprep.subr.bf16.mxu1 %v7799_v11  ;;  %1457 = vmatpush1.bf16.msra.mxu0 %v7798_v12  ;;  %v7828_v32 = vld [vmem:[#allocation7] ss:$24 sps:$4 sm:$0xff]   ;;  %v7832_v33 = vld [vmem:[#allocation7 + $0x2d4] ss:$24 sps:$4 sm:$0xff]   ;;  %v7834_v36 = vld [vmem:[#allocation7 + $0x2d0] ss:$24 sps:$4 sm:$0xff]  }
 0x119   : > { %1458 = vmatprep.subr.bf16.mxu0 %v7802_v13  ;;  %v7831_v34 = vld [vmem:[#allocation7 + $0x2d8] ss:$24 sps:$4 sm:$0xff]   ;;  %v7835_v35 = vld [vmem:[#allocation7 + $0x2ac] ss:$24 sps:$4 sm:$0xff]   ;;  %v7837_v38 = vld [vmem:[#allocation7 + $0x2a8] ss:$24 sps:$4 sm:$0xff]  }
 0x11a   : > { %v7838_v37 = vld [vmem:[#allocation7 + $0x2a4] ss:$24 sps:$4 sm:$0xff]   ;;  %v7840_v40 = vld [vmem:[#allocation7 + $0x2a0] ss:$24 sps:$4 sm:$0xff]   ;;  %v7844_v41 = vld [vmem:[#allocation7 + $0x274] ss:$24 sps:$4 sm:$0xff]  }
 0x11b   : > { %1502 = vmatpush1.bf16.msra.mxu1 %v7801_v14  ;;  %v7841_v39 = vld [vmem:[#allocation7 + $0x27c] ss:$24 sps:$4 sm:$0xff]   ;;  %v7843_v42 = vld [vmem:[#allocation7 + $0x278] ss:$24 sps:$4 sm:$0xff]   ;;  %v7847_v43 = vld [vmem:[#allocation7 + $0x24c] ss:$24 sps:$4 sm:$0xff]  }
 0x11c   : > { %1503 = vmatprep.subr.bf16.mxu1 %v7805_v15  ;;  %1459 = vmatpush1.bf16.msra.mxu0 %v7804_v16  ;;  %v7846_v44 = vld [vmem:[#allocation7 + $0x270] ss:$24 sps:$4 sm:$0xff]   ;;  %v7850_v45 = vld [vmem:[#allocation7 + $0x244] ss:$24 sps:$4 sm:$0xff]   ;;  %v839_v47 = vld [vmem:[%s9227_s29 + $0x18] sm:$0xff]  ;;  %v8862_v6 = vmov 0.0  }
 0x11d   : > { %1460 = vmatprep.subr.bf16.mxu0 %v7808_v17  ;;  %v837_v46 = vld [vmem:[%s9227_s29 + $0x8] sm:$0xff]  ;;  %v7852_v49 = vld [vmem:[#allocation7 + $0x240] ss:$24 sps:$4 sm:$0xff]   ;;  %v7853_v50 = vld [vmem:[#allocation7 + $0x21c] ss:$24 sps:$4 sm:$0xff]   ;;  %vm8863_vm0 = vmmov 0  }
 0x11e   : > { %v7849_v48 = vld [vmem:[#allocation7 + $0x248] ss:$24 sps:$4 sm:$0xff]   ;;  %v940_v51 = vpack.c.bf16 %v839_v47, %v837_v46  ;;  %v7856_v52 = vld [vmem:[#allocation7 + $0x214] ss:$24 sps:$4 sm:$0xff]   ;;  %v7855_v53 = vld [vmem:[#allocation7 + $0x218] ss:$24 sps:$4 sm:$0xff]  }
 0x11f   : > { %1504 = vmatpush1.bf16.msra.mxu1 %v7807_v18  ;;  %v7859_v54 = vld [vmem:[#allocation7 + $0x1ec] ss:$24 sps:$4 sm:$0xff]   ;;  %v7858_v55 = vld [vmem:[#allocation7 + $0x210] ss:$24 sps:$4 sm:$0xff]   ;;  %v7865_v58 = vld [vmem:[#allocation7 + $0x1bc] ss:$24 sps:$4 sm:$0xff]  }
 0x120   : > { %1505 = vmatprep.subr.bf16.mxu1 %v7811_v19  ;;  %1461 = vmatpush1.bf16.msra.mxu0 %v7810_v20  ;;  %v7862_v56 = vld [vmem:[#allocation7 + $0x1e4] ss:$24 sps:$4 sm:$0xff]   ;;  %v7861_v57 = vld [vmem:[#allocation7 + $0x1e8] ss:$24 sps:$4 sm:$0xff]   ;;  %v7868_v60 = vld [vmem:[#allocation7 + $0x1b4] ss:$24 sps:$4 sm:$0xff]  }
 0x121   : > { %1462 = vmatprep.subr.bf16.mxu0 %v7814_v21  ;;  %1527 = vmatprep.mubr.bf16.mxu1 %v940_v51  ;;  %v7864_v59 = vld [vmem:[#allocation7 + $0x1e0] ss:$24 sps:$4 sm:$0xff]   ;;  %v7871_v62 = vld [vmem:[#allocation7 + $0x18c] ss:$24 sps:$4 sm:$0xff]   ;;  %v7870_v63 = vld [vmem:[#allocation7 + $0x1b0] ss:$24 sps:$4 sm:$0xff]  }
 0x122   : > { %1484 = vmatprep.mubr.bf16.mxu0 %v940_v51  ;;  %v7867_v61 = vld [vmem:[#allocation7 + $0x1b8] ss:$24 sps:$4 sm:$0xff]   ;;  %v7874_v0 = vld [vmem:[#allocation7 + $0x184] ss:$24 sps:$4 sm:$0xff]   ;;  %v7873_v1 = vld [vmem:[#allocation7 + $0x188] ss:$24 sps:$4 sm:$0xff]  }
 0x123   : > { %1506 = vmatpush1.bf16.msra.mxu1 %v7813_v22  ;;  %v836_v2 = vld [vmem:[%s9227_s29] sm:$0xff]  ;;  %v838_v3 = vld [vmem:[%s9227_s29 + $0x10] sm:$0xff]  ;;  %v9276_v8 = vshrl.u32 %v942_v7, 7  ;;  %s10234_s21 = sld [smem:[#allocation39_spill]]  ;;  %vm1584_vm1 = vcmask 261120   ;;  %vm1632_vm2 = vcmask 130048  }
 0x124   : > { %1507 = vmatprep.subr.bf16.mxu1 %v7817_v23  ;;  %1463 = vmatpush1.bf16.msra.mxu0 %v7816_v24  ;;  %v7876_v4 = vld [vmem:[#allocation7 + $0x180] ss:$24 sps:$4 sm:$0xff]   ;;  %v9269_v5 = vpack.c.bf16 %v838_v3, %v836_v2  ;;  %v7904_v46 = vld [vmem:[#allocation7 + $0x2b0] ss:$24 sps:$4 sm:$0xff]   ;;  %v7909_v47 = vld [vmem:[#allocation7 + $0x284] ss:$24 sps:$4 sm:$0xff]  }
 0x125   : > { %1464 = vmatprep.subr.bf16.mxu0 %v7820_v25  ;;  %v952_v9 = vsub.s32 2, %v9276_v8  ;;  %v9290_v15 = vsub.s32 0, %v9276_v8  ;;  %s8864_s28 = smov 96   ;;  %s8865_s8 = smov 64  }
 0x126   : > { %s8867_s10 = smov 32   ;;  %s10236_s26 = sld [smem:[#allocation51_spill]] }
 0x127   : > { %1508 = vmatpush1.bf16.msra.mxu1 %v7819_v26  ;;  %s10237_s0 = sld [smem:[#allocation52_spill]]  ;;  %p10239_p7 = scmp.ne.s32.totalorder %s10214_s2, 0 }
 0x128   : > { %1509 = vmatprep.subr.bf16.mxu1 %v7823_v27  ;;  %1465 = vmatpush1.bf16.msra.mxu0 %v7822_v28  ;;  %v7877_v27 = vld [vmem:[#allocation7 + $0x160] ss:$24 sps:$4 sm:$0xff]   ;;  %v7879_v28 = vld [vmem:[#allocation7 + $0x164] ss:$24 sps:$4 sm:$0xff]   ;;  %s10238_s18 = sld [smem:[#allocation53_spill]]  ;;  %s8869_s12 = smov [#allocation23]  }
 0x129   : > { %1466 = vmatprep.subr.bf16.mxu0 %v7826_v29  ;;  %v9282_v10 = vld [vmem:[%s10234_s21] sm:$0x3f]  ;;  %v7882_v29 = vld [vmem:[#allocation7 + $0x134] ss:$24 sps:$4 sm:$0xff]   ;;  %s7473_s21 = sshll.u32 %s8998_s3, 9  ;;  %s6738_s3 = scalar_lea.sflag [#allocation4], %s9221_s4 }
 0x12a   : > { %v953_v12 = vrot.slane %v9282_v10, %v952_v9  ;;  %v945_v20 = vrot.slane %v9282_v10, %v9290_v15  ;;  %s8751_s13 = sshll.u32 %s8869_s12, 4  ;;  %s8752_s13 = int_to_ptr.vmem [resolvable:$false] %s8751_s13 }
 0x12b   : > { %1510 = vmatpush1.bf16.msra.mxu1 %v7825_v30  ;;  %v7880_v30 = vld [vmem:[#allocation7 + $0x130] ss:$24 sps:$4 sm:$0xff]   ;;  %s8753_s9 = scalar_lea.vmem %s8752_s13, 1024 }
 0x12c   : > { %1511 = vmatprep.subr.bf16.mxu1 %v7829_v31  ;;  %1467 = vmatpush1.bf16.msra.mxu0 %v7828_v32  ;;  %v7885_v31 = vld [vmem:[#allocation7 + $0x104] ss:$24 sps:$4 sm:$0xff]   ;;  %v7883_v32 = vld [vmem:[#allocation7 + $0x100] ss:$24 sps:$4 sm:$0xff]  }
 0x12d   : > { %1468 = vmatprep.subr.bf16.mxu0 %v7832_v33  ;;  %v7888_v33 = vld [vmem:[#allocation7 + $0xd4] ss:$24 sps:$4 sm:$0xff]  }
 0x12e   : > { %s10092_s30 = scalar_lea.hbm %s10238_s18, %s7473_s21 }
 0x12f   : > { %1512 = vmatpush2.bf16.msra.mxu1 %v7831_v34  ;;  %v7886_v34 = vld [vmem:[#allocation7 + $0xd0] ss:$24 sps:$4 sm:$0xff]  }
 0x130   : > { %1513 = vmatprep.subr.bf16.mxu1 %v7835_v35  ;;  %1469 = vmatpush2.bf16.msra.mxu0 %v7834_v36  ;;  %v7891_v35 = vld [vmem:[#allocation7 + $0xa4] ss:$24 sps:$4 sm:$0xff]   ;;  %v7889_v36 = vld [vmem:[#allocation7 + $0xa0] ss:$24 sps:$4 sm:$0xff]  }
 0x131   : > { %1470 = vmatprep.subr.bf16.mxu0 %v7838_v37  ;;  %v7894_v37 = vld [vmem:[#allocation7 + $0x74] ss:$24 sps:$4 sm:$0xff]  }
 0x133   : > { %1514 = vmatpush2.bf16.msra.mxu1 %v7837_v38  ;;  %v7892_v38 = vld [vmem:[#allocation7 + $0x70] ss:$24 sps:$4 sm:$0xff]  }
 0x134   : > { %1515 = vmatprep.subr.bf16.mxu1 %v7841_v39  ;;  %1471 = vmatpush2.bf16.msra.mxu0 %v7840_v40  ;;  %v7897_v39 = vld [vmem:[#allocation7 + $0x44] ss:$24 sps:$4 sm:$0xff]   ;;  %v7895_v40 = vld [vmem:[#allocation7 + $0x40] ss:$24 sps:$4 sm:$0xff]  }
 0x135   : > { %1472 = vmatprep.subr.bf16.mxu0 %v7844_v41  ;;  %v7900_v41 = vld [vmem:[#allocation7 + $0x14] ss:$24 sps:$4 sm:$0xff]  }
 0x137   : > { %1516 = vmatpush2.bf16.msra.mxu1 %v7843_v42  ;;  %v7898_v42 = vld [vmem:[#allocation7 + $0x10] ss:$24 sps:$4 sm:$0xff]  }
 0x138   : > { %1517 = vmatprep.subr.bf16.mxu1 %v7847_v43  ;;  %1473 = vmatpush2.bf16.msra.mxu0 %v7846_v44  ;;  %v7903_v43 = vld [vmem:[#allocation7 + $0x2e4] ss:$24 sps:$4 sm:$0xff]   ;;  %v7901_v44 = vld [vmem:[#allocation7 + $0x2e0] ss:$24 sps:$4 sm:$0xff]  }
 0x139   : > { %1474 = vmatprep.subr.bf16.mxu0 %v7850_v45  ;;  %v7906_v45 = vld [vmem:[#allocation7 + $0x2b4] ss:$24 sps:$4 sm:$0xff]  }
 0x13b   : > { %1518 = vmatpush2.bf16.msra.mxu1 %v7849_v48  ;;  %v7907_v48 = vld [vmem:[#allocation7 + $0x280] ss:$24 sps:$4 sm:$0xff]  }
 0x13c   : > { %1519 = vmatprep.subr.bf16.mxu1 %v7853_v50  ;;  %1475 = vmatpush2.bf16.msra.mxu0 %v7852_v49  ;;  %v7912_v49 = vld [vmem:[#allocation7 + $0x254] ss:$24 sps:$4 sm:$0xff]   ;;  %v7910_v50 = vld [vmem:[#allocation7 + $0x250] ss:$24 sps:$4 sm:$0xff]  }
 0x13d   : > { %1476 = vmatprep.subr.bf16.mxu0 %v7856_v52  ;;  %v7913_v52 = vld [vmem:[#allocation7 + $0x220] ss:$24 sps:$4 sm:$0xff]  }
 0x13f   : > { %1520 = vmatpush2.bf16.msra.mxu1 %v7855_v53  ;;  %v7918_v53 = vld [vmem:[#allocation7 + $0x1f4] ss:$24 sps:$4 sm:$0xff]  }
 0x140   : > { %1521 = vmatprep.subr.bf16.mxu1 %v7859_v54  ;;  %1477 = vmatpush2.bf16.msra.mxu0 %v7858_v55  ;;  %v7916_v54 = vld [vmem:[#allocation7 + $0x1f0] ss:$24 sps:$4 sm:$0xff]   ;;  %v7921_v55 = vld [vmem:[#allocation7 + $0x1c4] ss:$24 sps:$4 sm:$0xff]  }
 0x141   : > { %1478 = vmatprep.subr.bf16.mxu0 %v7862_v56  ;;  %v7919_v56 = vld [vmem:[#allocation7 + $0x1c0] ss:$24 sps:$4 sm:$0xff]  }
 0x143   : > { %1522 = vmatpush2.bf16.msra.mxu1 %v7861_v57  ;;  %v7924_v57 = vld [vmem:[#allocation7 + $0x194] ss:$24 sps:$4 sm:$0xff]  }
 0x144   : > { %1523 = vmatprep.subr.bf16.mxu1 %v7865_v58  ;;  %1479 = vmatpush2.bf16.msra.mxu0 %v7864_v59  ;;  %v7922_v58 = vld [vmem:[#allocation7 + $0x190] ss:$24 sps:$4 sm:$0xff]  }
 0x145   : > { %1480 = vmatprep.subr.bf16.mxu0 %v7868_v60 }
 0x147   : > { %1524 = vmatpush2.bf16.msra.mxu1 %v7867_v61 }
 0x148   : > { %1525 = vmatprep.subr.bf16.mxu1 %v7871_v62  ;;  %1481 = vmatpush2.bf16.msra.mxu0 %v7870_v63 }
 0x149   : > { %1482 = vmatprep.subr.bf16.mxu0 %v7874_v0 }
 0x14b   : > { %1526 = vmatpush2.bf16.msra.mxu1 %v7873_v1 }
 0x14c   : > { %1483 = vmatpush2.bf16.msra.mxu0 %v7876_v4  ;;  %7506 = vmatprep.subr.bf16.mxu1 %v8862_v6 }
 0x14d   : > { %1538 = vmatprep.subr.bf16.mxu0 %v7879_v28 }
 0x14e   : > { %1528 = vmatmul.mubr.bf16.vlgmr.msra.gmra.mxu1 %v9269_v5 }
 0x14f   : > { %1485 = vmatmul.mubr.bf16.vlgmr.msra.gmra.mxu0 %v9269_v5  ;;  %7508 = vmatprep.mubr.msk.bf16.mxu1 %vm8863_vm0, %v8862_v6 }
 0x150   : > { %1570 = vmatprep.mubr.bf16.mxu0 %v940_v51  ;;  %1539 = vmatpush1.bf16.msra.mxu0 %v7877_v27  ;;  %v7915_v51 = vld [vmem:[#allocation7 + $0x224] ss:$24 sps:$4 sm:$0xff]  }
 0x151   : > { %1540 = vmatprep.subr.bf16.mxu0 %v7882_v29 }
 0x154   : > { %1541 = vmatpush1.bf16.msra.mxu0 %v7880_v30 }
 0x155   : > { %1542 = vmatprep.subr.bf16.mxu0 %v7885_v31 }
 0x158   : > { %1543 = vmatpush1.bf16.msra.mxu0 %v7883_v32 }
 0x159   : > { %1544 = vmatprep.subr.bf16.mxu0 %v7888_v33 }
 0x15c   : > { %1545 = vmatpush1.bf16.msra.mxu0 %v7886_v34 }
 0x15d   : > { %1546 = vmatprep.subr.bf16.mxu0 %v7891_v35 }
 0x160   : > { %1547 = vmatpush1.bf16.msra.mxu0 %v7889_v36 }
 0x161   : > { %1548 = vmatprep.subr.bf16.mxu0 %v7894_v37 }
 0x164   : > { %1549 = vmatpush1.bf16.msra.mxu0 %v7892_v38 }
 0x165   : > { %1550 = vmatprep.subr.bf16.mxu0 %v7897_v39 }
 0x168   : > { %1551 = vmatpush1.bf16.msra.mxu0 %v7895_v40 }
 0x169   : > { %1552 = vmatprep.subr.bf16.mxu0 %v7900_v41 }
 0x16c   : > { %1553 = vmatpush1.bf16.msra.mxu0 %v7898_v42 }
 0x16d   : > { %1554 = vmatprep.subr.bf16.mxu0 %v7903_v43 }
 0x170   : > { %1555 = vmatpush2.bf16.msra.mxu0 %v7901_v44 }
 0x171   : > { %1556 = vmatprep.subr.bf16.mxu0 %v7906_v45 }
 0x174   : > { %1557 = vmatpush2.bf16.msra.mxu0 %v7904_v46 }
 0x175   : > { %1558 = vmatprep.subr.bf16.mxu0 %v7909_v47 }
 0x178   : > { %1559 = vmatpush2.bf16.msra.mxu0 %v7907_v48 }
 0x179   : > { %1560 = vmatprep.subr.bf16.mxu0 %v7912_v49 }
 0x17c   : > { %1561 = vmatpush2.bf16.msra.mxu0 %v7910_v50 }
 0x17d   : > { %1562 = vmatprep.subr.bf16.mxu0 %v7915_v51 }
 0x180   : > { %1563 = vmatpush2.bf16.msra.mxu0 %v7913_v52 }
 0x181   : > { %1564 = vmatprep.subr.bf16.mxu0 %v7918_v53 }
 0x184   : > { %1565 = vmatpush2.bf16.msra.mxu0 %v7916_v54 }
 0x185   : > { %1566 = vmatprep.subr.bf16.mxu0 %v7921_v55 }
 0x188   : > { %1567 = vmatpush2.bf16.msra.mxu0 %v7919_v56 }
 0x189   : > { %1568 = vmatprep.subr.bf16.mxu0 %v7924_v57 }
 0x18c   : > { %1569 = vmatpush2.bf16.msra.mxu0 %v7922_v58 }
 0x18f   : > { %1571 = vmatmul.mubr.bf16.vlgmr.msra.gmra.mxu0 %v9269_v5 }
 0x20e   : > { %v1529_v11 = vpop.f32.mrf.mxu1 }
 0x20f   : > { %v1486_v14 = vpop.f32.mrf.mxu0  ;;  %v1530_v17 = vadd.f32 %v1529_v11, %v953_v12 }
 0x210   : > { %v9287_v13 = vpop.f32.mrf.mxu1  ;;  %v1487_v24 = vadd.f32 %v1486_v14, %v945_v20 }
 0x211   : > { %v9292_v19 = vpop.f32.mrf.mxu0 }
 0x212   : > { %v1533_v16 = vpop.f32.mrf.mxu1 }
 0x213   : > { %v1534_v18 = vadd.f32 %v1533_v16, %v953_v12  ;;  %v1490_v23 = vpop.f32.mrf.mxu0 }
 0x214   : > { %v1491_v25 = vadd.f32 %v1490_v23, %v945_v20  ;;  %v9308_v59 = vpop.f32.mrf.mxu1  ;;  %v9319_v20 = vsub.s32 4, %v9276_v8 }
 0x215   : > { %v9296_v21 = vpack.c.bf16 %v1534_v18, %v1530_v17  ;;  %v9316_v18 = vpop.f32.mrf.mxu0 }
 0x216   : > { %v9301_v26 = vpack.c.bf16 %v1491_v25, %v1487_v24  ;;  %v961_v23 = vrot.slane %v9282_v10, %v9319_v20 }
 0x217   : > { %v1589_v22 = vsel %vm1584_vm1, %v9296_v21, 0 }
 0x218   : > { %7507 = vmatpush3.bf16.xpose.msra.mxu1 %v1589_v22 }
 0x219   : > { %7512 = vmatprep.subr.bf16.mxu1 %v8862_v6 }
 0x21f   : > { %7509 = vmatmul.mubr.msk.bf16.vlgmr.msra.gmra.mxu1 %vm1584_vm1, %v9301_v26 }
 0x220   : > { %7514 = vmatprep.mubr.msk.bf16.mxu1 %vm8863_vm0, %v8862_v6 }
 0x24f   : > { %v1572_v22 = vpop.f32.mrf.mxu0 }
 0x250   : > { %v1573_v25 = vadd.f32 %v1572_v22, %v961_v23 }
 0x251   : > { %v9323_v24 = vpop.f32.mrf.mxu0 }
 0x253   : > { %v1576_v27 = vpop.f32.mrf.mxu0 }
 0x254   : > { %v1577_v28 = vadd.f32 %v1576_v27, %v961_v23  ;;  %v7931_v27 = vld [vmem:[#allocation8 + $0x10] ss:$8 sps:$4 sm:$0xff]  }
 0x256   : > { %v9325_v29 = vpack.c.bf16 %v1577_v28, %v1573_v25 }
 0x258   : > { %7513 = vmatpush3.bf16.msra.mxu1 %v9325_v29 }
 0x259   : > { %7518 = vmatprep.subr.bf16.mxu1 %v8862_v6 }
 0x2df   : > { %v1625_v60 = vpop.f32.mrf.mxu1 }
 0x2e0   : > { %v1633_v61 = vsel %vm1632_vm2, %v1625_v60, -inf }
 0x2e1   : > { %1634 = vmax.xlane.f32.xlu0 %v1633_v61  ;;  %v7510_v62 = vpop.f32.mrf.mxu1 }
 0x2e3   : > { %v1628_v63 = vpop.f32.mrf.mxu1 }
 0x2e4   : > { %v1636_v0 = vsel %vm1632_vm2, %v1628_v63, -inf }
 0x2e5   : > { %1637 = vmax.xlane.f32.xlu0 %v1636_v0  ;;  %v7511_v1 = vpop.f32.mrf.mxu1 }
 0x2fb   : > { %1709 = vrot.lane.b32.xlu0 %v9296_v21, %s8864_s28 }
 0x36a   : > { %v1635_v2 = vpop.xlane.xlu0 %1634 }
 0x36b   : > { %v1639_v3 = vsub.f32 %v1625_v60, %v1635_v2 }
 0x36d   : > { %v1641_v4 = vmul.f32 1.442695, %v1639_v3 }
 0x36e   : > { %v1638_v5 = vpop.xlane.xlu0 %1637 }
 0x36f   : > { %8261 = vpow2.f32 %v1641_v4  ;;  %v1640_v7 = vsub.f32 %v1628_v63, %v1638_v5  ;;  %v7927_v63 = vld [vmem:[#allocation8 + $0x34] ss:$8 sps:$4 sm:$0xff]  }
 0x371   : > { %v1643_v11 = vmul.f32 1.442695, %v1640_v7  ;;  %v7925_v7 = vld [vmem:[#allocation8 + $0x30] ss:$8 sps:$4 sm:$0xff]  }
 0x372   : > { %v1710_v36 = vpop.permute.xlu0 %1709 }
 0x373   : > { %8263 = vpow2.f32 %v1643_v11  ;;  %v1715_v38 = vsel %vm1584_vm1, %v1710_v36, 0 }
 0x37c   : > { %v8262_v12 = vpop.eup %8261 }
 0x37d   : > { %v1645_v14 = vsel %vm1632_vm2, %v8262_v12, 0.0 }
 0x37e   : > { %1646 = vadd.xlane.f32.xlu1 %v1645_v14  ;;  %v7928_v14 = vld [vmem:[#allocation8 + $0x20] ss:$8 sps:$4 sm:$0xff]  }
 0x380   : > { %v8264_v16 = vpop.eup %8263 }
 0x381   : > { %v1648_v17 = vsel %vm1632_vm2, %v8264_v16, 0.0 }
 0x382   : > { %1649 = vadd.xlane.f32.xlu1 %v1648_v17  ;;  %v8866_v17 = vmov 0  }
 0x383   : > { %2149 = vmatprep.mubr.bf16.mxu0 %v8866_v17 }
 0x393   : > { %1706 = vrot.lane.b32.xlu1 %v9301_v26, %s8864_s28 }
 0x407   : > { %v1647_v30 = vpop.xlane.xlu1 %1646 }
 0x408   : > { %8265 = vrcp.f32 %v1647_v30  ;;  %v7936_v30 = vld [vmem:[#allocation8 + $0x4] ss:$8 sps:$4 sm:$0xff]  }
 0x40b   : > { %v1650_v31 = vpop.xlane.xlu1 %1649 }
 0x40c   : > { %8267 = vrcp.f32 %v1650_v31 }
 0x40f   : > { %v1707_v39 = vpop.permute.xlu1 %1706 }
 0x415   : > { %v8266_v32 = vpop.eup %8265 }
 0x416   : > { %v1653_v34 = vmul.f32 %v8266_v32, %v8262_v12  ;;  %v7930_v12 = vld [vmem:[#allocation8 + $0x24] ss:$8 sps:$4 sm:$0xff]   ;;  %v7934_v32 = vld [vmem:[#allocation8] ss:$8 sps:$4 sm:$0xff]  }
 0x419   : > { %v8268_v33 = vpop.eup %8267 }
 0x41a   : > { %v1654_v35 = vmul.f32 %v8268_v33, %v8264_v16  ;;  %v7933_v16 = vld [vmem:[#allocation8 + $0x14] ss:$8 sps:$4 sm:$0xff]  }
 0x41c   : > { %v1655_v37 = vpack.c.bf16 %v1654_v35, %v1653_v34 }
 0x41e   : > { %7515 = vmatmul.mubr.msk.bf16.vlgmr.msra.gmra.mxu1 %vm1632_vm2, %v1655_v37 }
 0x41f   : > { %7519 = vmatpush3.bf16.xpose.msra.mxu1 %v1715_v38  ;;  %7520 = vmatprep.mubr.msk.bf16.mxu1 %vm8863_vm0, %v8862_v6 }
 0x420   : > { %7524 = vmatprep.subr.bf16.mxu1 %v8862_v6 }
 0x426   : > { %7521 = vmatmul.mubr.msk.bf16.vlgmr.msra.gmra.mxu1 %vm1584_vm1, %v1707_v39 }
 0x427   : > { %7526 = vmatprep.mubr.msk.bf16.mxu1 %vm8863_vm0, %v8862_v6 }
 0x4de   : > { %v9339_v40 = vpop.f32.mrf.mxu1 }
 0x4e0   : > { %v7516_v41 = vpop.f32.mrf.mxu1 }
 0x4e2   : > { %v9341_v42 = vpop.f32.mrf.mxu1 }
 0x4e3   : > { %v1700_v43 = vpack.c.bf16 %v9341_v42, %v9339_v40 }
 0x4e4   : > { %v7517_v44 = vpop.f32.mrf.mxu1 }
 0x4e6   : > { %v1751_v45 = vpop.f32.mrf.mxu1 }
 0x4e7   : > { %v1758_v46 = vsel %vm1632_vm2, %v1751_v45, -inf }
 0x4e8   : > { %1759 = vmax.xlane.f32.xlu1 %v1758_v46  ;;  %v7522_v47 = vpop.f32.mrf.mxu1 }
 0x4ea   : > { %v1754_v48 = vpop.f32.mrf.mxu1 }
 0x4eb   : > { %v1761_v49 = vsel %vm1632_vm2, %v1754_v48, -inf }
 0x4ec   : > { %1762 = vmax.xlane.f32.xlu0 %v1761_v49  ;;  %v7523_v50 = vpop.f32.mrf.mxu1 }
 0x571   : > { %v1760_v51 = vpop.xlane.xlu1 %1759 }
 0x572   : > { %v1764_v52 = vsub.f32 %v1751_v45, %v1760_v51 }
 0x574   : > { %v1766_v53 = vmul.f32 1.442695, %v1764_v52 }
 0x575   : > { %v1763_v54 = vpop.xlane.xlu0 %1762 }
 0x576   : > { %8269 = vpow2.f32 %v1766_v53  ;;  %v1765_v55 = vsub.f32 %v1754_v48, %v1763_v54 }
 0x578   : > { %v1768_v56 = vmul.f32 1.442695, %v1765_v55 }
 0x57a   : > { %8271 = vpow2.f32 %v1768_v56 }
 0x583   : > { %v8270_v57 = vpop.eup %8269 }
 0x584   : > { %v1770_v58 = vsel %vm1632_vm2, %v8270_v57, 0.0 }
 0x585   : > { %1771 = vadd.xlane.f32.xlu0 %v1770_v58 }
 0x587   : > { %v8272_v60 = vpop.eup %8271 }
 0x588   : > { %v1773_v61 = vsel %vm1632_vm2, %v8272_v60, 0.0 }
 0x589   : > { %1774 = vadd.xlane.f32.xlu1 %v1773_v61 }
 0x59a   : > { %1969 = vrot.lane.b32.xlu1 %v9296_v21, %s8865_s8 }
 0x59b   : > { %1782 = vrot.lane.b32.xlu0 %v9325_v29, %s8864_s28 }
 0x59e   : > { %1967 = vrot.lane.b32.xlu1 %v9301_v26, %s8865_s8 }
 0x60e   : > { %v1772_v62 = vpop.xlane.xlu0 %1771 }
 0x60f   : > { %8273 = vrcp.f32 %v1772_v62 }
 0x612   : > { %v1775_v0 = vpop.xlane.xlu1 %1774  ;;  %v1783_v1 = vpop.permute.xlu0 %1782 }
 0x613   : > { %8275 = vrcp.f32 %v1775_v0  ;;  %7525 = vmatpush3.bf16.msra.mxu1 %v1783_v1 }
 0x614   : > { %1870 = vmatprep.subr.bf16.mxu1 %v7927_v63 }
 0x616   : > { %v1970_v33 = vpop.permute.xlu1 %1969 }
 0x617   : > { %v1975_v34 = vsel %vm1584_vm1, %v1970_v33, 0 }
 0x61a   : > { %v1968_v35 = vpop.permute.xlu1 %1967 }
 0x61c   : > { %v8274_v2 = vpop.eup %8273 }
 0x61d   : > { %v1778_v4 = vmul.f32 %v8274_v2, %v8270_v57  ;;  %v7939_v2 = vld [vmem:[#allocation8 + $0x54] ss:$8 sps:$4 sm:$0xff]  }
 0x61e   : > { %2129 = vmatprep.subr.bf16.mxu0 %v7939_v2 }
 0x620   : > { %v8276_v3 = vpop.eup %8275 }
 0x621   : > { %v1779_v5 = vmul.f32 %v8276_v3, %v8272_v60 }
 0x623   : > { %v1780_v11 = vpack.c.bf16 %v1779_v5, %v1778_v4 }
 0x625   : > { %7527 = vmatmul.mubr.msk.bf16.vlgmr.msra.gmra.mxu1 %vm1632_vm2, %v1780_v11 }
 0x626   : > { %1871 = vmatpush1.bf16.msra.mxu1 %v7925_v7  ;;  %1890 = vmatprep.mubr.bf16.mxu1 %v8866_v17 }
 0x627   : > { %1872 = vmatprep.subr.bf16.mxu1 %v7930_v12 }
 0x62a   : > { %1873 = vmatpush1.bf16.msra.mxu1 %v7928_v14 }
 0x62b   : > { %1936 = vmatprep.subr.bf16.mxu1 %v7933_v16 }
 0x6e5   : > { %v1822_v22 = vpop.f32.mrf.mxu1 }
 0x6e7   : > { %v7528_v23 = vpop.f32.mrf.mxu1 }
 0x6e8   : > { %v7940_v23 = vld [vmem:[#allocation8 + $0x40] ss:$8 sps:$4 sm:$0xff]  }
 0x6e9   : > { %v1825_v25 = vpop.f32.mrf.mxu1 }
 0x6ea   : > { %v1829_v28 = vpack.c.bf16 %v1825_v25, %v1822_v22  ;;  %v7942_v25 = vld [vmem:[#allocation8 + $0x44] ss:$8 sps:$4 sm:$0xff]  }
 0x6eb   : > { %v7529_v31 = vpop.f32.mrf.mxu1 }
 0x6ec   : > { %7090 = vmatmul.mubr.msk.bf16.vlgmr.msra.gmra.mxu1 %vm1584_vm1, %v1829_v28 }
 0x6ed   : > { %1937 = vmatpush1.bf16.msra.mxu1 %v7931_v27  ;;  %1956 = vmatprep.mubr.bf16.mxu1 %v8866_v17 }
 0x6ee   : > { %1938 = vmatprep.subr.bf16.mxu1 %v7936_v30 }
 0x6f1   : > { %1939 = vmatpush1.bf16.msra.mxu1 %v7934_v32 }
 0x6f2   : > { %7530 = vmatprep.subr.bf16.mxu1 %v8862_v6 }
 0x6f4   : > { %7095 = vmatmul.mubr.msk.bf16.vlgmr.msra.gmra.mxu1 %vm1584_vm1, %v1700_v43 }
 0x6f5   : > { %7531 = vmatpush3.bf16.xpose.msra.mxu1 %v1975_v34  ;;  %7532 = vmatprep.mubr.msk.bf16.mxu1 %vm8863_vm0, %v8862_v6 }
 0x6f6   : > { %7536 = vmatprep.subr.bf16.mxu1 %v8862_v6 }
 0x6fc   : > { %7533 = vmatmul.mubr.msk.bf16.vlgmr.msra.gmra.mxu1 %vm1584_vm1, %v1968_v35 }
 0x6fd   : > { %7538 = vmatprep.mubr.msk.bf16.mxu1 %vm8863_vm0, %v8862_v6 }
 0x7ac   : > { %v1892_v36 = vpop.f32.mrf.mxu1 }
 0x7ae   : > { %v1894_v37 = vpop.f32.mrf.mxu1 }
 0x7b0   : > { %v1896_v38 = vpop.f32.mrf.mxu1 }
 0x7b2   : > { %v1898_v39 = vpop.f32.mrf.mxu1 }
 0x7b4   : > { %v1958_v41 = vpop.f32.mrf.mxu1 }
 0x7b5   : > { %v9372_v40 = vadd.f32 %v1958_v41, %v1892_v36 }
 0x7b6   : > { %v1960_v42 = vpop.f32.mrf.mxu1 }
 0x7b7   : > { %v9374_v43 = vadd.f32 %v1960_v42, %v1894_v37 }
 0x7b8   : > { %v1962_v44 = vpop.f32.mrf.mxu1 }
 0x7b9   : > { %v9376_v45 = vadd.f32 %v1962_v44, %v1896_v38 }
 0x7ba   : > { %v1964_v46 = vpop.f32.mrf.mxu1 }
 0x7bb   : > { %v9378_v47 = vadd.f32 %v1964_v46, %v1898_v39 }
 0x7bc   : > { %v2011_v48 = vpop.f32.mrf.mxu1 }
 0x7bd   : > { %v2018_v49 = vsel %vm1632_vm2, %v2011_v48, -inf }
 0x7be   : > { %2019 = vmax.xlane.f32.xlu1 %v2018_v49  ;;  %v7534_v50 = vpop.f32.mrf.mxu1 }
 0x7c0   : > { %v2014_v51 = vpop.f32.mrf.mxu1 }
 0x7c1   : > { %v2021_v52 = vsel %vm1632_vm2, %v2014_v51, -inf }
 0x7c2   : > { %2022 = vmax.xlane.f32.xlu0 %v2021_v52  ;;  %v7535_v53 = vpop.f32.mrf.mxu1 }
 0x7c3   : > { %v9406_v53 = vsub.s32 1, %v9276_v8 }
 0x7cf   : > { %2041 = vrot.lane.b32.xlu1 %v9325_v29, %s8865_s8 }
 0x7d3   : > { %2164 = vrot.lane.b32.xlu1 %v9301_v26, %s8867_s10  ;;  %v7937_v26 = vld [vmem:[#allocation8 + $0x50] ss:$8 sps:$4 sm:$0xff]  }
 0x7d4   : > { %2130 = vmatpush1.bf16.msra.mxu0 %v7937_v26 }
 0x7d5   : > { %2131 = vmatprep.subr.bf16.mxu0 %v7942_v25 }
 0x7d8   : > { %2132 = vmatpush1.bf16.msra.mxu0 %v7940_v23 }
 0x7d9   : > { %7548 = vmatprep.subr.bf16.mxu0 %v8862_v6 }
 0x847   : > { %v2020_v54 = vpop.xlane.xlu1 %2019 }
 0x848   : > { %v2024_v55 = vsub.f32 %v2011_v48, %v2020_v54  ;;  %v949_v54 = vrot.slane %v9282_v10, %v9406_v53 }
 0x84a   : > { %v2026_v56 = vmul.f32 1.442695, %v2024_v55  ;;  %v1489_v55 = vadd.f32 %v9292_v19, %v949_v54 }
 0x84b   : > { %v2042_v57 = vpop.permute.xlu1 %2041  ;;  %v2023_v58 = vpop.xlane.xlu0 %2022 }
 0x84c   : > { %8277 = vpow2.f32 %v2026_v56  ;;  %v2025_v60 = vsub.f32 %v2014_v51, %v2023_v58  ;;  %7537 = vmatpush3.bf16.msra.mxu1 %v2042_v57  ;;  %v1493_v56 = vadd.f32 %v9316_v18, %v949_v54  ;;  %v1578_v58 = vpop.f32.mrf.mxu0 }
 0x84d   : > { %7542 = vmatprep.subr.bf16.mxu1 %v8862_v6 }
 0x84e   : > { %v2028_v61 = vmul.f32 1.442695, %v2025_v60  ;;  %v9414_v57 = vpack.c.bf16 %v1493_v56, %v1489_v55 }
 0x850   : > { %8279 = vpow2.f32 %v2028_v61 }
 0x859   : > { %v8278_v62 = vpop.eup %8277 }
 0x85a   : > { %v2030_v63 = vsel %vm1632_vm2, %v8278_v62, 0.0 }
 0x85b   : > { %2031 = vadd.xlane.f32.xlu0 %v2030_v63 }
 0x85d   : > { %v8280_v0 = vpop.eup %8279 }
 0x85e   : > { %v2033_v1 = vsel %vm1632_vm2, %v8280_v0, 0.0 }
 0x85f   : > { %2034 = vadd.xlane.f32.xlu0 %v2033_v1 }
 0x875   : > { %2166 = vrot.lane.b32.xlu0 %v9296_v21, %s8867_s10  ;;  %v2165_v21 = vpop.permute.xlu1 %2164 }
 0x8e4   : > { %v2032_v3 = vpop.xlane.xlu0 %2031 }
 0x8e5   : > { %8281 = vrcp.f32 %v2032_v3 }
 0x8e8   : > { %v2035_v4 = vpop.xlane.xlu0 %2034 }
 0x8e9   : > { %8283 = vrcp.f32 %v2035_v4 }
 0x8ec   : > { %v2167_v14 = vpop.permute.xlu0 %2166 }
 0x8ed   : > { %v2172_v22 = vsel %vm1584_vm1, %v2167_v14, 0 }
 0x8f2   : > { %v8282_v5 = vpop.eup %8281 }
 0x8f3   : > { %v2038_v11 = vmul.f32 %v8282_v5, %v8278_v62 }
 0x8f6   : > { %v8284_v7 = vpop.eup %8283 }
 0x8f7   : > { %v2039_v12 = vmul.f32 %v8284_v7, %v8280_v0  ;;  %v7943_v0 = vld [vmem:[#allocation8 + $0x70] ss:$8 sps:$4 sm:$0xff]  }
 0x8f9   : > { %v2040_v16 = vpack.c.bf16 %v2039_v12, %v2038_v11 }
 0x8fb   : > { %7539 = vmatmul.mubr.msk.bf16.vlgmr.msra.gmra.mxu1 %vm1632_vm2, %v2040_v16 }
 0x8fc   : > { %7543 = vmatpush3.bf16.xpose.msra.mxu1 %v2172_v22  ;;  %7544 = vmatprep.mubr.msk.bf16.mxu1 %vm8863_vm0, %v8862_v6  ;;  %v9446_v22 = vsub.s32 5, %v9276_v8 }
 0x903   : > { %7545 = vmatmul.mubr.msk.bf16.vlgmr.msra.gmra.mxu1 %vm1584_vm1, %v2165_v21  ;;  %v965_v21 = vrot.slane %v9282_v10, %v9446_v22 }
 0x904   : > { %2346 = vmatprep.mubr.bf16.mxu1 %v8866_v17 }
 0x9bb   : > { %v2081_v27 = vpop.f32.mrf.mxu1 }
 0x9bd   : > { %v7540_v28 = vpop.f32.mrf.mxu1 }
 0x9be   : > { %v1579_v28 = vadd.f32 %v1578_v58, %v965_v21 }
 0x9bf   : > { %v2084_v30 = vpop.f32.mrf.mxu1 }
 0x9c0   : > { %v2088_v31 = vpack.c.bf16 %v2084_v30, %v2081_v27  ;;  %v1575_v27 = vadd.f32 %v9323_v24, %v965_v21 }
 0x9c1   : > { %v7541_v32 = vpop.f32.mrf.mxu1 }
 0x9c2   : > { %7102 = vmatmul.mubr.msk.bf16.vlgmr.msra.gmra.mxu0 %vm1584_vm1, %v2088_v31 }
 0x9c3   : > { %v2208_v33 = vpop.f32.mrf.mxu1  ;;  %7550 = vmatprep.mubr.msk.bf16.mxu0 %vm8863_vm0, %v8862_v6 }
 0x9c4   : > { %v2215_v34 = vsel %vm1632_vm2, %v2208_v33, -inf }
 0x9c5   : > { %2216 = vmax.xlane.f32.xlu1 %v2215_v34  ;;  %v7546_v35 = vpop.f32.mrf.mxu1 }
 0x9c7   : > { %v2211_v36 = vpop.f32.mrf.mxu1 }
 0x9c8   : > { %v2218_v37 = vsel %vm1632_vm2, %v2211_v36, -inf }
 0x9c9   : > { %2219 = vmax.xlane.f32.xlu0 %v2218_v37  ;;  %v7547_v38 = vpop.f32.mrf.mxu1 }
 0xa4e   : > { %v2217_v39 = vpop.xlane.xlu1 %2216 }
 0xa4f   : > { %v2221_v41 = vsub.f32 %v2208_v33, %v2217_v39  ;;  %v9453_v33 = vpack.c.bf16 %v1579_v28, %v1575_v27 }
 0xa51   : > { %v2223_v42 = vmul.f32 1.442695, %v2221_v41 }
 0xa52   : > { %v2220_v44 = vpop.xlane.xlu0 %2219 }
 0xa53   : > { %8285 = vpow2.f32 %v2223_v42  ;;  %v2222_v46 = vsub.f32 %v2211_v36, %v2220_v44 }
 0xa55   : > { %v2225_v48 = vmul.f32 1.442695, %v2222_v46 }
 0xa57   : > { %8287 = vpow2.f32 %v2225_v48 }
 0xa60   : > { %v8286_v49 = vpop.eup %8285 }
 0xa61   : > { %v2227_v50 = vsel %vm1632_vm2, %v8286_v49, 0.0 }
 0xa62   : > { %2228 = vadd.xlane.f32.xlu0 %v2227_v50 }
 0xa64   : > { %v8288_v51 = vpop.eup %8287 }
 0xa65   : > { %v2230_v52 = vsel %vm1632_vm2, %v8288_v51, 0.0 }
 0xa66   : > { %2231 = vadd.xlane.f32.xlu1 %v2230_v52 }
 0xa78   : > { %2238 = vrot.lane.b32.xlu0 %v9325_v29, %s8867_s10  ;;  %v7945_v29 = vld [vmem:[#allocation8 + $0x74] ss:$8 sps:$4 sm:$0xff]  }
 0xa79   : > { %2326 = vmatprep.subr.bf16.mxu1 %v7945_v29 }
 0xa7a   : > { %2327 = vmatpush1.bf16.msra.mxu1 %v7943_v0  ;;  %v7951_v0 = vld [vmem:[#allocation8 + $0x94] ss:$8 sps:$4 sm:$0xff]  }
 0xa7c   : > { %2555 = vrot.lane.b32.xlu0 %v9414_v57, %s8864_s28 }
 0xa82   : > { %v2151_v60 = vpop.f32.mrf.mxu0 }
 0xa83   : > { %v9419_v61 = vadd.f32 %v2151_v60, %v9372_v40  ;;  %v956_v40 = vsub.s32 3, %v9276_v8 }
 0xa84   : > { %v2153_v62 = vpop.f32.mrf.mxu0 }
 0xa85   : > { %v9422_v63 = vadd.f32 %v2153_v62, %v9374_v43  ;;  %v957_v43 = vrot.slane %v9282_v10, %v956_v40 }
 0xa86   : > { %v2155_v19 = vpop.f32.mrf.mxu0 }
 0xa87   : > { %v9425_v18 = vadd.f32 %v2155_v19, %v9376_v45  ;;  %v1536_v45 = vadd.f32 %v9308_v59, %v957_v43  ;;  %v1532_v4 = vadd.f32 %v9287_v13, %v957_v43  ;;  %v7948_v13 = vld [vmem:[#allocation8 + $0x64] ss:$8 sps:$4 sm:$0xff]   ;;  %v7946_v59 = vld [vmem:[#allocation8 + $0x60] ss:$8 sps:$4 sm:$0xff]   ;;  %v7949_v19 = vld [vmem:[#allocation8 + $0x90] ss:$8 sps:$4 sm:$0xff]  }
 0xa88   : > { %2328 = vmatprep.subr.bf16.mxu1 %v7948_v13  ;;  %v9450_v23 = vpop.f32.mrf.mxu0 }
 0xa89   : > { %v9434_v7 = vpack.c.bf16 %v1536_v45, %v1532_v4  ;;  %2329 = vmatpush1.bf16.msra.mxu1 %v7946_v59  ;;  %v7952_v4 = vld [vmem:[#allocation8 + $0x80] ss:$8 sps:$4 sm:$0xff]  }
 0xa8a   : > { %7560 = vmatprep.subr.bf16.mxu1 %v8862_v6 }
 0xa8b   : > { %v2368_v16 = vsel %vm1584_vm1, %v9434_v7, 0 }
 0xaeb   : > { %v2229_v1 = vpop.xlane.xlu0 %2228 }
 0xaec   : > { %8289 = vrcp.f32 %v2229_v1 }
 0xaef   : > { %v2232_v26 = vpop.xlane.xlu1 %2231  ;;  %v2239_v2 = vpop.permute.xlu0 %2238 }
 0xaf0   : > { %8291 = vrcp.f32 %v2232_v26  ;;  %7549 = vmatpush3.bf16.msra.mxu0 %v2239_v2 }
 0xaf1   : > { %7554 = vmatprep.subr.bf16.mxu0 %v8862_v6 }
 0xaf9   : > { %v8290_v3 = vpop.eup %8289 }
 0xafa   : > { %v2235_v11 = vmul.f32 %v8290_v3, %v8286_v49 }
 0xafd   : > { %v8292_v5 = vpop.eup %8291 }
 0xafe   : > { %v2236_v12 = vmul.f32 %v8292_v5, %v8288_v51  ;;  %v7954_v5 = vld [vmem:[#allocation8 + $0x84] ss:$8 sps:$4 sm:$0xff]  }
 0xb00   : > { %v2237_v14 = vpack.c.bf16 %v2236_v12, %v2235_v11 }
 0xb02   : > { %7551 = vmatmul.mubr.msk.bf16.vlgmr.msra.gmra.mxu0 %vm1632_vm2, %v2237_v14 }
 0xb03   : > { %7555 = vmatpush3.bf16.xpose.msra.mxu0 %v2368_v16  ;;  %7556 = vmatprep.mubr.msk.bf16.mxu0 %vm8863_vm0, %v8862_v6 }
 0xb04   : > { %2519 = vmatprep.subr.bf16.mxu0 %v7951_v0 }
 0xb0a   : > { %7557 = vmatmul.mubr.msk.bf16.vlgmr.msra.gmra.mxu0 %vm1584_vm1, %v9414_v57 }
 0xb0b   : > { %2539 = vmatprep.mubr.bf16.mxu0 %v8866_v17  ;;  %2520 = vmatpush1.bf16.msra.mxu0 %v7949_v19 }
 0xb0c   : > { %2521 = vmatprep.subr.bf16.mxu0 %v7954_v5 }
 0xb0f   : > { %2522 = vmatpush1.bf16.msra.mxu0 %v7952_v4 }
 0xb10   : > { %7572 = vmatprep.subr.bf16.mxu0 %v8862_v6 }
 0xbc2   : > { %v2278_v25 = vpop.f32.mrf.mxu0 }
 0xbc4   : > { %v7552_v30 = vpop.f32.mrf.mxu0 }
 0xbc6   : > { %v2281_v31 = vpop.f32.mrf.mxu0 }
 0xbc7   : > { %v2285_v32 = vpack.c.bf16 %v2281_v31, %v2278_v25 }
 0xbc8   : > { %v7553_v34 = vpop.f32.mrf.mxu0 }
 0xbc9   : > { %7109 = vmatmul.mubr.msk.bf16.vlgmr.msra.gmra.mxu1 %vm1584_vm1, %v2285_v32 }
 0xbca   : > { %7561 = vmatpush3.bf16.msra.mxu1 %v9453_v33  ;;  %v2404_v35 = vpop.f32.mrf.mxu0  ;;  %7562 = vmatprep.mubr.msk.bf16.mxu1 %vm8863_vm0, %v8862_v6 }
 0xbcb   : > { %v2411_v10 = vsel %vm1632_vm2, %v2404_v35, -inf  ;;  %7566 = vmatprep.subr.bf16.mxu1 %v8862_v6 }
 0xbcc   : > { %2412 = vmax.xlane.f32.xlu1 %v2411_v10  ;;  %v7558_v24 = vpop.f32.mrf.mxu0 }
 0xbce   : > { %v2407_v36 = vpop.f32.mrf.mxu0 }
 0xbcf   : > { %v2414_v37 = vsel %vm1632_vm2, %v2407_v36, -inf }
 0xbd0   : > { %2415 = vmax.xlane.f32.xlu1 %v2414_v37  ;;  %v7559_v38 = vpop.f32.mrf.mxu0 }
 0xc55   : > { %v2413_v39 = vpop.xlane.xlu1 %2412 }
 0xc56   : > { %v2417_v41 = vsub.f32 %v2404_v35, %v2413_v39 }
 0xc58   : > { %v2419_v42 = vmul.f32 1.442695, %v2417_v41 }
 0xc59   : > { %v2416_v44 = vpop.xlane.xlu1 %2415 }
 0xc5a   : > { %8293 = vpow2.f32 %v2419_v42  ;;  %v2418_v46 = vsub.f32 %v2407_v36, %v2416_v44 }
 0xc5c   : > { %v2421_v48 = vmul.f32 1.442695, %v2418_v46 }
 0xc5e   : > { %8295 = vpow2.f32 %v2421_v48 }
 0xc67   : > { %v8294_v49 = vpop.eup %8293 }
 0xc68   : > { %v2423_v50 = vsel %vm1632_vm2, %v8294_v49, 0.0 }
 0xc69   : > { %2424 = vadd.xlane.f32.xlu1 %v2423_v50 }
 0xc6b   : > { %v8296_v51 = vpop.eup %8295 }
 0xc6c   : > { %v2426_v52 = vsel %vm1632_vm2, %v8296_v51, 0.0 }
 0xc6d   : > { %2427 = vadd.xlane.f32.xlu1 %v2426_v52  ;;  %v7957_v52 = vld [vmem:[#allocation8 + $0xb4] ss:$8 sps:$4 sm:$0xff]  }
 0xc7e   : > { %2558 = vrot.lane.b32.xlu1 %v9434_v7, %s8864_s28 }
 0xc89   : > { %v2348_v54 = vpop.f32.mrf.mxu1 }
 0xc8a   : > { %v9467_v55 = vadd.f32 %v2348_v54, %v9419_v61 }
 0xc8b   : > { %v2350_v56 = vpop.f32.mrf.mxu1 }
 0xc8c   : > { %v9470_v58 = vadd.f32 %v2350_v56, %v9422_v63 }
 0xc8d   : > { %v2352_v60 = vpop.f32.mrf.mxu1 }
 0xc8e   : > { %v9473_v62 = vadd.f32 %v2352_v60, %v9425_v18  ;;  %v2556_v18 = vpop.permute.xlu0 %2555 }
 0xc8f   : > { %v9482_v11 = vpop.f32.mrf.mxu1 }
 0xcf2   : > { %v2425_v29 = vpop.xlane.xlu1 %2424 }
 0xcf3   : > { %8297 = vrcp.f32 %v2425_v29 }
 0xcf6   : > { %v2428_v1 = vpop.xlane.xlu1 %2427 }
 0xcf7   : > { %8299 = vrcp.f32 %v2428_v1 }
 0xcfa   : > { %v2559_v45 = vpop.permute.xlu1 %2558 }
 0xcfb   : > { %v2564_v63 = vsel %vm1584_vm1, %v2559_v45, 0 }
 0xd00   : > { %v8298_v26 = vpop.eup %8297 }
 0xd01   : > { %v2431_v61 = vmul.f32 %v8298_v26, %v8294_v49 }
 0xd04   : > { %v8300_v2 = vpop.eup %8299 }
 0xd05   : > { %v2432_v43 = vmul.f32 %v8300_v2, %v8296_v51  ;;  %v7955_v51 = vld [vmem:[#allocation8 + $0xb0] ss:$8 sps:$4 sm:$0xff]   ;;  %v7958_v2 = vld [vmem:[#allocation8 + $0xa0] ss:$8 sps:$4 sm:$0xff]  }
 0xd07   : > { %v2433_v3 = vpack.c.bf16 %v2432_v43, %v2431_v61  ;;  %v7960_v61 = vld [vmem:[#allocation8 + $0xa4] ss:$8 sps:$4 sm:$0xff]  }
 0xd09   : > { %7563 = vmatmul.mubr.msk.bf16.vlgmr.msra.gmra.mxu1 %vm1632_vm2, %v2433_v3 }
 0xd0a   : > { %7567 = vmatpush3.bf16.xpose.msra.mxu1 %v2564_v63  ;;  %7568 = vmatprep.mubr.msk.bf16.mxu1 %vm8863_vm0, %v8862_v6 }
 0xd0b   : > { %2719 = vmatprep.subr.bf16.mxu1 %v7957_v52 }
 0xd11   : > { %7569 = vmatmul.mubr.msk.bf16.vlgmr.msra.gmra.mxu1 %vm1584_vm1, %v2556_v18 }
 0xd12   : > { %2739 = vmatprep.mubr.bf16.mxu1 %v8866_v17  ;;  %2720 = vmatpush1.bf16.msra.mxu1 %v7955_v51 }
 0xd13   : > { %2721 = vmatprep.subr.bf16.mxu1 %v7960_v61 }
 0xd16   : > { %2722 = vmatpush1.bf16.msra.mxu1 %v7958_v2 }
 0xd17   : > { %7584 = vmatprep.subr.bf16.mxu1 %v8862_v6 }
 0xdc9   : > { %v2471_v12 = vpop.f32.mrf.mxu1 }
 0xdcb   : > { %v7564_v14 = vpop.f32.mrf.mxu1 }
 0xdcd   : > { %v2474_v16 = vpop.f32.mrf.mxu1 }
 0xdce   : > { %v2478_v13 = vpack.c.bf16 %v2474_v16, %v2471_v12 }
 0xdcf   : > { %v7565_v59 = vpop.f32.mrf.mxu1 }
 0xdd0   : > { %7116 = vmatmul.mubr.msk.bf16.vlgmr.msra.gmra.mxu0 %vm1584_vm1, %v2478_v13 }
 0xdd1   : > { %v2600_v21 = vpop.f32.mrf.mxu1  ;;  %7574 = vmatprep.mubr.msk.bf16.mxu0 %vm8863_vm0, %v8862_v6 }
 0xdd2   : > { %v2607_v25 = vsel %vm1632_vm2, %v2600_v21, -inf }
 0xdd3   : > { %2608 = vmax.xlane.f32.xlu0 %v2607_v25  ;;  %v7570_v27 = vpop.f32.mrf.mxu1 }
 0xdd5   : > { %v2603_v28 = vpop.f32.mrf.mxu1 }
 0xdd6   : > { %v2610_v30 = vsel %vm1632_vm2, %v2603_v28, -inf }
 0xdd7   : > { %2611 = vmax.xlane.f32.xlu1 %v2610_v30  ;;  %v7571_v31 = vpop.f32.mrf.mxu1 }
 0xde8   : > { %2756 = vrot.lane.b32.xlu1 %v9434_v7, %s8865_s8 }
 0xdec   : > { %2754 = vrot.lane.b32.xlu1 %v9414_v57, %s8865_s8 }
 0xe5c   : > { %v2609_v32 = vpop.xlane.xlu0 %2608 }
 0xe5d   : > { %v2613_v34 = vsub.f32 %v2600_v21, %v2609_v32 }
 0xe5f   : > { %v2615_v35 = vmul.f32 1.442695, %v2613_v34 }
 0xe60   : > { %v2612_v10 = vpop.xlane.xlu1 %2611 }
 0xe61   : > { %8301 = vpow2.f32 %v2615_v35  ;;  %v2614_v24 = vsub.f32 %v2603_v28, %v2612_v10 }
 0xe63   : > { %v2617_v36 = vmul.f32 1.442695, %v2614_v24 }
 0xe64   : > { %v2757_v29 = vpop.permute.xlu1 %2756 }
 0xe65   : > { %8303 = vpow2.f32 %v2617_v36 }
 0xe68   : > { %v2755_v26 = vpop.permute.xlu1 %2754 }
 0xe6e   : > { %v8302_v37 = vpop.eup %8301 }
 0xe6f   : > { %v2619_v38 = vsel %vm1632_vm2, %v8302_v37, 0.0 }
 0xe70   : > { %2620 = vadd.xlane.f32.xlu0 %v2619_v38 }
 0xe72   : > { %v8304_v39 = vpop.eup %8303 }
 0xe73   : > { %v2622_v41 = vsel %vm1632_vm2, %v8304_v39, 0.0 }
 0xe74   : > { %2623 = vadd.xlane.f32.xlu0 %v2622_v41  ;;  %v7963_v41 = vld [vmem:[#allocation8 + $0xd4] ss:$8 sps:$4 sm:$0xff]  }
 0xe8a   : > { %2631 = vrot.lane.b32.xlu0 %v9453_v33, %s8864_s28 }
 0xe90   : > { %v2541_v42 = vpop.f32.mrf.mxu0 }
 0xe91   : > { %v9498_v44 = vadd.f32 %v2541_v42, %v9467_v55 }
 0xe92   : > { %v2543_v46 = vpop.f32.mrf.mxu0 }
 0xe93   : > { %v9501_v48 = vadd.f32 %v2543_v46, %v9470_v58 }
 0xe94   : > { %v2545_v49 = vpop.f32.mrf.mxu0 }
 0xe95   : > { %v9504_v50 = vadd.f32 %v2545_v49, %v9473_v62  ;;  %v2762_v62 = vsel %vm1584_vm1, %v2757_v29, 0 }
 0xe96   : > { %v9514_v43 = vpop.f32.mrf.mxu0 }
 0xef9   : > { %v2621_v54 = vpop.xlane.xlu0 %2620 }
 0xefa   : > { %8305 = vrcp.f32 %v2621_v54 }
 0xefd   : > { %v2624_v56 = vpop.xlane.xlu0 %2623 }
 0xefe   : > { %8307 = vrcp.f32 %v2624_v56 }
 0xf01   : > { %v2632_v60 = vpop.permute.xlu0 %2631 }
 0xf02   : > { %7573 = vmatpush3.bf16.msra.mxu0 %v2632_v60 }
 0xf03   : > { %7578 = vmatprep.subr.bf16.mxu0 %v8862_v6 }
 0xf07   : > { %v8306_v55 = vpop.eup %8305 }
 0xf08   : > { %v2627_v58 = vmul.f32 %v8306_v55, %v8302_v37  ;;  %v7964_v55 = vld [vmem:[#allocation8 + $0xc0] ss:$8 sps:$4 sm:$0xff]  }
 0xf0b   : > { %v8308_v19 = vpop.eup %8307 }
 0xf0c   : > { %v2628_v0 = vmul.f32 %v8308_v19, %v8304_v39  ;;  %v7961_v39 = vld [vmem:[#allocation8 + $0xd0] ss:$8 sps:$4 sm:$0xff]   ;;  %v7966_v19 = vld [vmem:[#allocation8 + $0xc4] ss:$8 sps:$4 sm:$0xff]  }
 0xf0e   : > { %v2629_v1 = vpack.c.bf16 %v2628_v0, %v2627_v58 }
 0xf10   : > { %7575 = vmatmul.mubr.msk.bf16.vlgmr.msra.gmra.mxu0 %vm1632_vm2, %v2629_v1 }
 0xf11   : > { %7579 = vmatpush3.bf16.xpose.msra.mxu0 %v2762_v62  ;;  %7580 = vmatprep.mubr.msk.bf16.mxu0 %vm8863_vm0, %v8862_v6 }
 0xf12   : > { %2916 = vmatprep.subr.bf16.mxu0 %v7963_v41 }
 0xf18   : > { %7581 = vmatmul.mubr.msk.bf16.vlgmr.msra.gmra.mxu0 %vm1584_vm1, %v2755_v26 }
 0xf19   : > { %2936 = vmatprep.mubr.bf16.mxu0 %v8866_v17  ;;  %2917 = vmatpush1.bf16.msra.mxu0 %v7961_v39  ;;  %v9567_v39 = vld [vmem:[%s9235_s27] sm:$0x3] }
 0xf1a   : > { %2918 = vmatprep.subr.bf16.mxu0 %v7966_v19  ;;  %v3274_v41 = vrot.slane %v9567_v39, %v9406_v53  ;;  %v7984_v19 = vld [vmem:[#allocation10 + $0x74] ss:$24 sps:$4 sm:$0xff]  }
 0xf1d   : > { %2919 = vmatpush1.bf16.msra.mxu0 %v7964_v55  ;;  %v7979_v55 = vld [vmem:[#allocation10 + $0xa0] ss:$24 sps:$4 sm:$0xff]  }
 0xf1e   : > { %7596 = vmatprep.subr.bf16.mxu0 %v8862_v6 }
 0xfd0   : > { %v2671_v45 = vpop.f32.mrf.mxu0 }
 0xfd2   : > { %v7576_v3 = vpop.f32.mrf.mxu0 }
 0xfd4   : > { %v2674_v63 = vpop.f32.mrf.mxu0 }
 0xfd5   : > { %v2678_v18 = vpack.c.bf16 %v2674_v63, %v2671_v45 }
 0xfd6   : > { %v7577_v4 = vpop.f32.mrf.mxu0 }
 0xfd7   : > { %7123 = vmatmul.mubr.msk.bf16.vlgmr.msra.gmra.mxu1 %vm1584_vm1, %v2678_v18 }
 0xfd8   : > { %v2798_v5 = vpop.f32.mrf.mxu0  ;;  %7586 = vmatprep.mubr.msk.bf16.mxu1 %vm8863_vm0, %v8862_v6 }
 0xfd9   : > { %v2805_v12 = vsel %vm1632_vm2, %v2798_v5, -inf }
 0xfda   : > { %2806 = vmax.xlane.f32.xlu0 %v2805_v12  ;;  %v7582_v14 = vpop.f32.mrf.mxu0 }
 0xfdc   : > { %v2801_v16 = vpop.f32.mrf.mxu0 }
 0xfdd   : > { %v2808_v13 = vsel %vm1632_vm2, %v2801_v16, -inf }
 0xfde   : > { %2809 = vmax.xlane.f32.xlu1 %v2808_v13  ;;  %v7583_v59 = vpop.f32.mrf.mxu0 }
 0xfef   : > { %2953 = vrot.lane.b32.xlu1 %v9434_v7, %s8867_s10 }
 0xff3   : > { %2951 = vrot.lane.b32.xlu1 %v9414_v57, %s8867_s10 }
0x1063   : > { %v2807_v21 = vpop.xlane.xlu0 %2806 }
0x1064   : > { %v2811_v25 = vsub.f32 %v2798_v5, %v2807_v21 }
0x1066   : > { %v2813_v27 = vmul.f32 1.442695, %v2811_v25 }
0x1067   : > { %v2810_v28 = vpop.xlane.xlu1 %2809 }
0x1068   : > { %8309 = vpow2.f32 %v2813_v27  ;;  %v2812_v30 = vsub.f32 %v2801_v16, %v2810_v28  ;;  %v7969_v28 = vld [vmem:[#allocation10 + $0x164] ss:$24 sps:$4 sm:$0xff]  }
0x106a   : > { %v2815_v31 = vmul.f32 1.442695, %v2812_v30 }
0x106b   : > { %v2954_v54 = vpop.permute.xlu1 %2953 }
0x106c   : > { %8311 = vpow2.f32 %v2815_v31 }
0x106f   : > { %v2952_v60 = vpop.permute.xlu1 %2951 }
0x1075   : > { %v8310_v32 = vpop.eup %8309 }
0x1076   : > { %v2817_v34 = vsel %vm1632_vm2, %v8310_v32, 0.0 }
0x1077   : > { %2818 = vadd.xlane.f32.xlu0 %v2817_v34 }
0x1079   : > { %v8312_v35 = vpop.eup %8311 }
0x107a   : > { %v2820_v10 = vsel %vm1632_vm2, %v8312_v35, 0.0 }
0x107b   : > { %2821 = vadd.xlane.f32.xlu0 %v2820_v10  ;;  %v8015_v10 = vld [vmem:[#allocation8 + $0xf0] ss:$8 sps:$4 sm:$0xff]  }
0x1091   : > { %2828 = vrot.lane.b32.xlu0 %v9453_v33, %s8865_s8 }
0x1097   : > { %v2741_v57 = vpop.f32.mrf.mxu1 }
0x1098   : > { %v9530_v7 = vadd.f32 %v2741_v57, %v9498_v44  ;;  %v8017_v57 = vld [vmem:[#allocation8 + $0xf4] ss:$8 sps:$4 sm:$0xff]  }
0x1099   : > { %v2743_v24 = vpop.f32.mrf.mxu1 }
0x109a   : > { %v9533_v36 = vadd.f32 %v2743_v24, %v9501_v48 }
0x109b   : > { %v2745_v37 = vpop.f32.mrf.mxu1 }
0x109c   : > { %v9536_v38 = vadd.f32 %v2745_v37, %v9504_v50  ;;  %v2959_v50 = vsel %vm1584_vm1, %v2954_v54, 0  ;;  %v7973_v54 = vld [vmem:[#allocation10 + $0x100] ss:$24 sps:$4 sm:$0xff]  }
0x109d   : > { %v9546_v58 = vpop.f32.mrf.mxu1 }
0x1100   : > { %v2819_v42 = vpop.xlane.xlu0 %2818 }
0x1101   : > { %8313 = vrcp.f32 %v2819_v42 }
0x1104   : > { %v2822_v46 = vpop.xlane.xlu0 %2821 }
0x1105   : > { %8315 = vrcp.f32 %v2822_v46 }
0x1108   : > { %v2829_v49 = vpop.permute.xlu0 %2828 }
0x1109   : > { %7585 = vmatpush3.bf16.msra.mxu1 %v2829_v49  ;;  %v7967_v49 = vld [vmem:[#allocation10 + $0x160] ss:$24 sps:$4 sm:$0xff]  }
0x110a   : > { %7590 = vmatprep.subr.bf16.mxu1 %v8862_v6 }
0x110e   : > { %v8314_v44 = vpop.eup %8313 }
0x110f   : > { %v2825_v48 = vmul.f32 %v8314_v44, %v8310_v32 }
0x1112   : > { %v8316_v51 = vpop.eup %8315 }
0x1113   : > { %v2826_v52 = vmul.f32 %v8316_v51, %v8312_v35  ;;  %v7972_v51 = vld [vmem:[#allocation10 + $0x134] ss:$24 sps:$4 sm:$0xff]  }
0x1115   : > { %v2827_v56 = vpack.c.bf16 %v2826_v52, %v2825_v48  ;;  %v7970_v48 = vld [vmem:[#allocation10 + $0x130] ss:$24 sps:$4 sm:$0xff]   ;;  %v7975_v52 = vld [vmem:[#allocation10 + $0x104] ss:$24 sps:$4 sm:$0xff]  }
0x1117   : > { %7587 = vmatmul.mubr.msk.bf16.vlgmr.msra.gmra.mxu1 %vm1632_vm2, %v2827_v56  ;;  %v7978_v56 = vld [vmem:[#allocation10 + $0xd4] ss:$24 sps:$4 sm:$0xff]  }
0x1118   : > { %7591 = vmatpush3.bf16.xpose.msra.mxu1 %v2959_v50  ;;  %7592 = vmatprep.mubr.msk.bf16.mxu1 %vm8863_vm0, %v8862_v6  ;;  %v7976_v50 = vld [vmem:[#allocation10 + $0xd0] ss:$24 sps:$4 sm:$0xff]  }
0x1119   : > { %3113 = vmatprep.subr.bf16.mxu1 %v8017_v57 }
0x111f   : > { %7593 = vmatmul.mubr.msk.bf16.vlgmr.msra.gmra.mxu1 %vm1584_vm1, %v2952_v60  ;;  %v7981_v60 = vld [vmem:[#allocation10 + $0xa4] ss:$24 sps:$4 sm:$0xff]  }
0x1120   : > { %3133 = vmatprep.mubr.bf16.mxu1 %v8866_v17  ;;  %3114 = vmatpush1.bf16.msra.mxu1 %v8015_v10 }
0x11d7   : > { %v2868_v0 = vpop.f32.mrf.mxu1 }
0x11d9   : > { %v7588_v29 = vpop.f32.mrf.mxu1 }
0x11da   : > { %v7987_v29 = vld [vmem:[#allocation10 + $0x44] ss:$24 sps:$4 sm:$0xff]  }
0x11db   : > { %v2871_v1 = vpop.f32.mrf.mxu1 }
0x11dc   : > { %v2875_v62 = vpack.c.bf16 %v2871_v1, %v2868_v0  ;;  %v7982_v0 = vld [vmem:[#allocation10 + $0x70] ss:$24 sps:$4 sm:$0xff]   ;;  %v7985_v1 = vld [vmem:[#allocation10 + $0x40] ss:$24 sps:$4 sm:$0xff]  }
0x11dd   : > { %v7589_v26 = vpop.f32.mrf.mxu1 }
0x11de   : > { %7130 = vmatmul.mubr.msk.bf16.vlgmr.msra.gmra.mxu0 %vm1584_vm1, %v2875_v62  ;;  %v7990_v62 = vld [vmem:[#allocation10 + $0x14] ss:$24 sps:$4 sm:$0xff]   ;;  %v7988_v26 = vld [vmem:[#allocation10 + $0x10] ss:$24 sps:$4 sm:$0xff]  }
0x11df   : > { %v2995_v2 = vpop.f32.mrf.mxu1  ;;  %7598 = vmatprep.mubr.msk.bf16.mxu0 %vm8863_vm0, %v8862_v6 }
0x11e0   : > { %v3002_v61 = vsel %vm1632_vm2, %v2995_v2, -inf }
0x11e1   : > { %3003 = vmax.xlane.f32.xlu1 %v3002_v61  ;;  %v7594_v45 = vpop.f32.mrf.mxu1  ;;  %v7991_v61 = vld [vmem:[#allocation10 + $0x2e0] ss:$24 sps:$4 sm:$0xff]  }
0x11e2   : > { %v7996_v45 = vld [vmem:[#allocation10 + $0x2b4] ss:$24 sps:$4 sm:$0xff]  }
0x11e3   : > { %v2998_v3 = vpop.f32.mrf.mxu1 }
0x11e4   : > { %v3005_v63 = vsel %vm1632_vm2, %v2998_v3, -inf }
0x11e5   : > { %3006 = vmax.xlane.f32.xlu0 %v3005_v63  ;;  %v7595_v18 = vpop.f32.mrf.mxu1  ;;  %v7999_v63 = vld [vmem:[#allocation10 + $0x284] ss:$24 sps:$4 sm:$0xff]  }
0x11e6   : > { %v7997_v18 = vld [vmem:[#allocation10 + $0x280] ss:$24 sps:$4 sm:$0xff]  }
0x11f2   : > { %3025 = vrot.lane.b32.xlu1 %v9453_v33, %s8867_s10 }
0x126a   : > { %v3004_v4 = vpop.xlane.xlu1 %3003 }
0x126b   : > { %v3008_v5 = vsub.f32 %v2995_v2, %v3004_v4  ;;  %v7993_v2 = vld [vmem:[#allocation10 + $0x2e4] ss:$24 sps:$4 sm:$0xff]   ;;  %v8002_v4 = vld [vmem:[#allocation10 + $0x254] ss:$24 sps:$4 sm:$0xff]  }
0x126d   : > { %v3010_v12 = vmul.f32 1.442695, %v3008_v5  ;;  %v8000_v5 = vld [vmem:[#allocation10 + $0x250] ss:$24 sps:$4 sm:$0xff]  }
0x126e   : > { %v3026_v14 = vpop.permute.xlu1 %3025  ;;  %v3007_v16 = vpop.xlane.xlu0 %3006 }
0x126f   : > { %8317 = vpow2.f32 %v3010_v12  ;;  %v3009_v13 = vsub.f32 %v2998_v3, %v3007_v16  ;;  %7597 = vmatpush3.bf16.msra.mxu0 %v3026_v14  ;;  %v7994_v3 = vld [vmem:[#allocation10 + $0x2b0] ss:$24 sps:$4 sm:$0xff]   ;;  %v8005_v12 = vld [vmem:[#allocation10 + $0x224] ss:$24 sps:$4 sm:$0xff]   ;;  %v8003_v14 = vld [vmem:[#allocation10 + $0x220] ss:$24 sps:$4 sm:$0xff]  }
0x1270   : > { %3450 = vmatprep.subr.bf16.mxu0 %v7969_v28  ;;  %v8008_v16 = vld [vmem:[#allocation10 + $0x1f4] ss:$24 sps:$4 sm:$0xff]  }
0x1271   : > { %v3012_v6 = vmul.f32 1.442695, %v3009_v13  ;;  %v8006_v13 = vld [vmem:[#allocation10 + $0x1f0] ss:$24 sps:$4 sm:$0xff]  }
0x1273   : > { %8319 = vpow2.f32 %v3012_v6  ;;  %v8011_v6 = vld [vmem:[#allocation10 + $0x1c4] ss:$24 sps:$4 sm:$0xff]  }
0x127c   : > { %v8318_v59 = vpop.eup %8317 }
0x127d   : > { %v3014_v21 = vsel %vm1632_vm2, %v8318_v59, 0.0 }
0x127e   : > { %3015 = vadd.xlane.f32.xlu0 %v3014_v21  ;;  %v8014_v21 = vld [vmem:[#allocation10 + $0x194] ss:$24 sps:$4 sm:$0xff]  }
0x1280   : > { %v8320_v25 = vpop.eup %8319 }
0x1281   : > { %v3017_v27 = vsel %vm1632_vm2, %v8320_v25, 0.0 }
0x1282   : > { %3018 = vadd.xlane.f32.xlu0 %v3017_v27  ;;  %v8012_v27 = vld [vmem:[#allocation10 + $0x190] ss:$24 sps:$4 sm:$0xff]  }
0x129e   : > { %v2938_v33 = vpop.f32.mrf.mxu0 }
0x129f   : > { %v9558_v30 = vadd.f32 %v2938_v33, %v9530_v7  ;;  %v8018_v33 = vld [vmem:[#allocation8 + $0xe0] ss:$8 sps:$4 sm:$0xff]  }
0x12a0   : > { %v2940_v31 = vpop.f32.mrf.mxu0 }
0x12a1   : > { %v9561_v32 = vadd.f32 %v2940_v31, %v9533_v36  ;;  %v8020_v31 = vld [vmem:[#allocation8 + $0xe4] ss:$8 sps:$4 sm:$0xff]  }
0x12a2   : > { %v2942_v34 = vpop.f32.mrf.mxu0  ;;  %3115 = vmatprep.subr.bf16.mxu1 %v8020_v31 }
0x12a3   : > { %v9564_v35 = vadd.f32 %v2942_v34, %v9536_v38  ;;  %v3278_v38 = vpack.c.bf16 %v3274_v41, %v3274_v41  ;;  %3116 = vmatpush1.bf16.msra.mxu1 %v8018_v33  ;;  %v8023_v34 = vld [vmem:[#allocation13 + $0x14] ss:$8 sps:$4 sm:$0xff]  }
0x12a4   : > { %3531 = vmatprep.subr.bf16.mxu1 %v8023_v34  ;;  %v9574_v10 = vpop.f32.mrf.mxu0 }
0x1307   : > { %v3016_v24 = vpop.xlane.xlu0 %3015 }
0x1308   : > { %8321 = vrcp.f32 %v3016_v24 }
0x130b   : > { %v3019_v37 = vpop.xlane.xlu0 %3018 }
0x130c   : > { %8323 = vrcp.f32 %v3019_v37 }
0x1315   : > { %v8322_v7 = vpop.eup %8321 }
0x1316   : > { %v3022_v42 = vmul.f32 %v8322_v7, %v8318_v59  ;;  %v8009_v59 = vld [vmem:[#allocation10 + $0x1c0] ss:$24 sps:$4 sm:$0xff]  }
0x1317   : > { %v8021_v7 = vld [vmem:[#allocation13 + $0x10] ss:$8 sps:$4 sm:$0xff]  }
0x1319   : > { %v8324_v36 = vpop.eup %8323 }
0x131a   : > { %v3023_v46 = vmul.f32 %v8324_v36, %v8320_v25  ;;  %v3270_v25 = vrot.slane %v9567_v39, %v9290_v15  ;;  %v8026_v39 = vld [vmem:[#allocation13 + $0x4] ss:$8 sps:$4 sm:$0xff]  }
0x131c   : > { %v3024_v44 = vpack.c.bf16 %v3023_v46, %v3022_v42  ;;  %v3277_v28 = vpack.c.bf16 %v3270_v25, %v3270_v25  ;;  %v8024_v42 = vld [vmem:[#allocation13] ss:$8 sps:$4 sm:$0xff]   ;;  %v8029_v46 = vld [vmem:[#allocation13 + $0x34] ss:$8 sps:$4 sm:$0xff]  }
0x131e   : > { %7599 = vmatmul.mubr.msk.bf16.vlgmr.msra.gmra.mxu0 %vm1632_vm2, %v3024_v44 }
0x131f   : > { %3451 = vmatpush1.bf16.msra.mxu0 %v7967_v49  ;;  %3482 = vmatprep.mubr.bf16.mxu0 %v3278_v38  ;;  %v3264_v49 = vld [vmem:[#allocation11] sm:$0x3f] }
0x1320   : > { %3452 = vmatprep.subr.bf16.mxu0 %v7972_v51  ;;  %v3443_v38 = vrot.slane %v3264_v49, %v9319_v20  ;;  %v3447_v44 = vrot.slane %v3264_v49, %v9446_v22  ;;  %v8056_v49 = vld [vmem:[#allocation13 + $0xa4] ss:$8 sps:$4 sm:$0xff]  }
0x1323   : > { %3453 = vmatpush1.bf16.msra.mxu0 %v7970_v48 }
0x1324   : > { %3454 = vmatprep.subr.bf16.mxu0 %v7975_v52 }
0x1327   : > { %3455 = vmatpush1.bf16.msra.mxu0 %v7973_v54 }
0x1328   : > { %3456 = vmatprep.subr.bf16.mxu0 %v7978_v56 }
0x132b   : > { %3457 = vmatpush1.bf16.msra.mxu0 %v7976_v50  ;;  %v8027_v50 = vld [vmem:[#allocation13 + $0x30] ss:$8 sps:$4 sm:$0xff]  }
0x132c   : > { %3458 = vmatprep.subr.bf16.mxu0 %v7981_v60 }
0x132f   : > { %3459 = vmatpush1.bf16.msra.mxu0 %v7979_v55  ;;  %v8032_v55 = vld [vmem:[#allocation13 + $0x24] ss:$8 sps:$4 sm:$0xff]  }
0x1330   : > { %3460 = vmatprep.subr.bf16.mxu0 %v7984_v19 }
0x1333   : > { %3461 = vmatpush1.bf16.msra.mxu0 %v7982_v0 }
0x1334   : > { %3462 = vmatprep.subr.bf16.mxu0 %v7987_v29  ;;  %v8030_v29 = vld [vmem:[#allocation13 + $0x20] ss:$8 sps:$4 sm:$0xff]  }
0x1337   : > { %3463 = vmatpush1.bf16.msra.mxu0 %v7985_v1  ;;  %v8035_v1 = vld [vmem:[#allocation13 + $0x54] ss:$8 sps:$4 sm:$0xff]  }
0x1338   : > { %3464 = vmatprep.subr.bf16.mxu0 %v7990_v62  ;;  %v8033_v62 = vld [vmem:[#allocation13 + $0x50] ss:$8 sps:$4 sm:$0xff]  }
0x133b   : > { %3465 = vmatpush1.bf16.msra.mxu0 %v7988_v26  ;;  %v8038_v26 = vld [vmem:[#allocation13 + $0x44] ss:$8 sps:$4 sm:$0xff]  }
0x133c   : > { %3466 = vmatprep.subr.bf16.mxu0 %v7993_v2 }
0x133f   : > { %3467 = vmatpush2.bf16.msra.mxu0 %v7991_v61  ;;  %v8036_v61 = vld [vmem:[#allocation13 + $0x40] ss:$8 sps:$4 sm:$0xff]  }
0x1340   : > { %3468 = vmatprep.subr.bf16.mxu0 %v7996_v45  ;;  %v8041_v45 = vld [vmem:[#allocation13 + $0x74] ss:$8 sps:$4 sm:$0xff]  }
0x1343   : > { %3469 = vmatpush2.bf16.msra.mxu0 %v7994_v3 }
0x1344   : > { %3470 = vmatprep.subr.bf16.mxu0 %v7999_v63  ;;  %v8039_v63 = vld [vmem:[#allocation13 + $0x70] ss:$8 sps:$4 sm:$0xff]  }
0x1347   : > { %3471 = vmatpush2.bf16.msra.mxu0 %v7997_v18  ;;  %v8044_v18 = vld [vmem:[#allocation13 + $0x64] ss:$8 sps:$4 sm:$0xff]  }
0x1348   : > { %3472 = vmatprep.subr.bf16.mxu0 %v8002_v4  ;;  %v8042_v4 = vld [vmem:[#allocation13 + $0x60] ss:$8 sps:$4 sm:$0xff]  }
0x134b   : > { %3473 = vmatpush2.bf16.msra.mxu0 %v8000_v5  ;;  %v8047_v5 = vld [vmem:[#allocation13 + $0x94] ss:$8 sps:$4 sm:$0xff]  }
0x134c   : > { %3474 = vmatprep.subr.bf16.mxu0 %v8005_v12  ;;  %v938_v12 = vld [vmem:[%s10142_s5] sm:$0x3] }
0x134d   : > { %v3156_v33 = vrot.slane %v938_v12, %v9406_v53 }
0x134f   : > { %3475 = vmatpush2.bf16.msra.mxu0 %v8003_v14  ;;  %v2163_v14 = vadd.f32 %v9450_v23, %v9378_v47  ;;  %v8048_v23 = vld [vmem:[#allocation13 + $0x80] ss:$8 sps:$4 sm:$0xff]  }
0x1350   : > { %3476 = vmatprep.subr.bf16.mxu0 %v8008_v16 }
0x1353   : > { %3477 = vmatpush2.bf16.msra.mxu0 %v8006_v13  ;;  %v8045_v13 = vld [vmem:[#allocation13 + $0x90] ss:$8 sps:$4 sm:$0xff]  }
0x1354   : > { %3478 = vmatprep.subr.bf16.mxu0 %v8011_v6  ;;  %v2360_v6 = vadd.f32 %v9482_v11, %v2163_v14 }
0x1357   : > { %3479 = vmatpush2.bf16.msra.mxu0 %v8009_v59  ;;  %v3152_v59 = vrot.slane %v938_v12, %v9290_v15 }
0x1358   : > { %3480 = vmatprep.subr.bf16.mxu0 %v8014_v21  ;;  %v8050_v21 = vld [vmem:[#allocation13 + $0x84] ss:$8 sps:$4 sm:$0xff]  }
0x135b   : > { %3481 = vmatpush2.bf16.msra.mxu0 %v8012_v27  ;;  %v2553_v27 = vadd.f32 %v9514_v43, %v2360_v6  ;;  %v8053_v43 = vld [vmem:[#allocation13 + $0xb4] ss:$8 sps:$4 sm:$0xff]  }
0x135d   : > { %v2753_v11 = vadd.f32 %v9546_v58, %v2553_v27  ;;  %v8401_v58 = vld [vmem:[%s9227_s29] sm:$0xff] }
0x135e   : > { %3483 = vmatmul.mubr.bf16.vlgmr.msra.gmra.mxu0 %v3277_v28 }
0x13de   : > { %v3065_v57 = vpop.f32.mrf.mxu0 }
0x13e0   : > { %v7600_v24 = vpop.f32.mrf.mxu0 }
0x13e2   : > { %v3068_v37 = vpop.f32.mrf.mxu0 }
0x13e3   : > { %v3072_v41 = vpack.c.bf16 %v3068_v37, %v3065_v57 }
0x13e4   : > { %v7601_v36 = vpop.f32.mrf.mxu0 }
0x13e5   : > { %7137 = vmatmul.mubr.msk.bf16.vlgmr.msra.gmra.mxu1 %vm1584_vm1, %v3072_v41  ;;  %v8051_v41 = vld [vmem:[#allocation13 + $0xb0] ss:$8 sps:$4 sm:$0xff]  }
0x13e6   : > { %3532 = vmatpush1.bf16.msra.mxu1 %v8021_v7  ;;  %3551 = vmatprep.mubr.bf16.mxu1 %v8866_v17 }
0x13e7   : > { %3533 = vmatprep.subr.bf16.mxu1 %v8026_v39 }
0x13ea   : > { %3534 = vmatpush1.bf16.msra.mxu1 %v8024_v42 }
0x13eb   : > { %3622 = vmatprep.subr.bf16.mxu1 %v8029_v46  ;;  %v8402_v46 = vld [vmem:[%s9227_s29 + $0x8] sm:$0xff] }
0x141e   : > { %v3484_v51 = vpop.f32.mrf.mxu0 }
0x141f   : > { %v3485_v48 = vadd.f32 %v3484_v51, %v3443_v38 }
0x1420   : > { %v3486_v52 = vpop.f32.mrf.mxu0 }
0x1421   : > { %v3491_v54 = vpack.c.bf16 %v3485_v48, %v3485_v48  ;;  %v3487_v56 = vadd.f32 %v3486_v52, %v3447_v44  ;;  %v8403_v44 = vld [vmem:[%s9227_s29 + $0x10] sm:$0xff]  ;;  %v8404_v48 = vld [vmem:[%s9227_s29 + $0x18] sm:$0xff]  ;;  %s10235_s29 = sld [smem:[#allocation46_spill]] }
0x1422   : > { %v3488_v60 = vpop.f32.mrf.mxu0 }
0x1423   : > { %3585 = vrot.lane.b32.xlu0 %v3491_v54, %s8864_s28  ;;  %3675 = vrot.lane.b32.xlu1 %v3491_v54, %s8865_s8  ;;  %v9583_v0 = vpack.c.bf16 %v3487_v56, %v3487_v56  ;;  %v8057_v60 = vld [vmem:[#allocation13 + $0xd0] ss:$8 sps:$4 sm:$0xff]  }
0x1424   : > { %7174 = vmatmul.mubr.msk.bf16.vlgmr.msra.gmra.mxu1 %vm1584_vm1, %v3491_v54  ;;  %v3489_v19 = vpop.f32.mrf.mxu0 }
0x1425   : > { %3623 = vmatpush1.bf16.msra.mxu1 %v8027_v50  ;;  %3642 = vmatprep.mubr.bf16.mxu1 %v8866_v17  ;;  %v8060_v19 = vld [vmem:[#allocation13 + $0xc0] ss:$8 sps:$4 sm:$0xff]  }
0x1426   : > { %3624 = vmatprep.subr.bf16.mxu1 %v8032_v55  ;;  %v8062_v55 = vld [vmem:[#allocation13 + $0xc4] ss:$8 sps:$4 sm:$0xff]  }
0x1427   : > { %3765 = vrot.lane.b32.xlu1 %v3491_v54, %s8867_s10  ;;  %4035 = vrot.lane.b32.xlu0 %v9583_v0, %s8865_s8  ;;  %v8059_v54 = vld [vmem:[#allocation13 + $0xd4] ss:$8 sps:$4 sm:$0xff]  }
0x1429   : > { %3625 = vmatpush1.bf16.msra.mxu1 %v8030_v29 }
0x142a   : > { %3712 = vmatprep.subr.bf16.mxu1 %v8035_v1  ;;  %v8063_v1 = vld [vmem:[#allocation13 + $0xf0] ss:$8 sps:$4 sm:$0xff]  }
0x142b   : > { %3945 = vrot.lane.b32.xlu1 %v9583_v0, %s8864_s28  ;;  %s834_s28 = scalar_lea.vmem [#allocation23], %s6972_s25 }
0x142c   : > { %s6751_s8 = sshll.u32 %s834_s28, 4  ;;  %s10094_s8 = int_to_ptr.vmem [resolvable:$true] %s6751_s8 }
0x142d   : > { %s8747_s25 = scalar_lea.vmem %s10094_s8, 512  ;;  %p8754_p10 = scmp.lt.s32.totalorder %s10094_s8, %s8752_s13 }
0x142e   : > { %p8748_p8 = scmp.ne.s32.totalorder %s10094_s8, %s8747_s25  ;;  %p8755_p11 = scmp.lt.s32.totalorder %s8753_s9, %s8747_s25 }
0x142f   : > { %4125 = vrot.lane.b32.xlu1 %v9583_v0, %s8867_s10 }
0x1430   : > { %p8749_p13 = pnand %p8748_p8, %p10239_p7  ;;  %p8756_p12 = por %p8755_p11, %p8754_p10 }
0x1432   : > { %p8750_p0 = pneg %p8749_p13 }
0x1434   : > { %p8757_p1 = pnand %p8756_p12, %p8750_p0 }
0x1495   : > { %v3586_v2 = vpop.permute.xlu0 %3585  ;;  %v3676_v3 = vpop.permute.xlu1 %3675 }
0x1496   : > { %7179 = vmatmul.mubr.msk.bf16.vlgmr.msra.gmra.mxu1 %vm1584_vm1, %v3586_v2 }
0x1497   : > { %3713 = vmatpush1.bf16.msra.mxu1 %v8033_v62  ;;  %3732 = vmatprep.mubr.bf16.mxu1 %v8866_v17  ;;  %v8068_v62 = vld [vmem:[#allocation13 + $0xe4] ss:$8 sps:$4 sm:$0xff]  }
0x1498   : > { %3714 = vmatprep.subr.bf16.mxu1 %v8038_v26  ;;  %v8066_v26 = vld [vmem:[#allocation13 + $0xe0] ss:$8 sps:$4 sm:$0xff]  }
0x1499   : > { %v3766_v16 = vpop.permute.xlu1 %3765  ;;  %v4036_v29 = vpop.permute.xlu0 %4035 }
0x149b   : > { %3715 = vmatpush1.bf16.msra.mxu1 %v8036_v61 }
0x149c   : > { %3802 = vmatprep.subr.bf16.mxu1 %v8041_v45 }
0x149d   : > { %v3946_v50 = vpop.permute.xlu1 %3945 }
0x149e   : > { %7184 = vmatmul.mubr.msk.bf16.vlgmr.msra.gmra.mxu1 %vm1584_vm1, %v3676_v3 }
0x149f   : > { %3803 = vmatpush1.bf16.msra.mxu1 %v8039_v63  ;;  %3822 = vmatprep.mubr.bf16.mxu1 %v8866_v17 }
0x14a0   : > { %3804 = vmatprep.subr.bf16.mxu1 %v8044_v18 }
0x14a1   : > { %v4126_v2 = vpop.permute.xlu1 %4125 }
0x14a3   : > { %3805 = vmatpush1.bf16.msra.mxu1 %v8042_v4 }
0x14a4   : > { %3891 = vmatprep.subr.bf16.mxu1 %v8047_v5 }
0x14a5   : > { %v3135_v25 = vpop.f32.mrf.mxu1 }
0x14a6   : > { %v3144_v28 = vadd.f32 %v3135_v25, %v9558_v30  ;;  %7189 = vmatmul.mubr.msk.bf16.vlgmr.msra.gmra.mxu1 %vm1584_vm1, %v3766_v16  ;;  %v2950_v30 = vadd.f32 %v9574_v10, %v2753_v11 }
0x14a7   : > { %3892 = vmatpush1.bf16.msra.mxu1 %v8045_v13  ;;  %v3137_v47 = vpop.f32.mrf.mxu1  ;;  %3911 = vmatprep.mubr.bf16.mxu1 %v8866_v17 }
0x14a8   : > { %v3159_v31 = vadd.f32 %v3152_v59, %v3144_v28  ;;  %v3145_v34 = vadd.f32 %v3137_v47, %v9561_v32  ;;  %3893 = vmatprep.subr.bf16.mxu1 %v8050_v21  ;;  %v8868_v47 = vmov 1966171168  }
0x14a9   : > { %v3139_v57 = vpop.f32.mrf.mxu1 }
0x14aa   : > { %v3160_v24 = vadd.f32 %v3156_v33, %v3145_v34  ;;  %v3146_v37 = vadd.f32 %v3139_v57, %v9564_v35  ;;  %v3163_v42 = vadd.f32 %v8401_v58, %v3159_v31  ;;  %v8054_v35 = vld [vmem:[#allocation13 + $0xa0] ss:$8 sps:$4 sm:$0xff]  }
0x14ab   : > { %3894 = vmatpush1.bf16.msra.mxu1 %v8048_v23  ;;  %v3141_v7 = vpop.f32.mrf.mxu1  ;;  %v3564_v23 = vunpack.c.l.s4 %v8868_v47 }
0x14ac   : > { %v3161_v39 = vadd.f32 %v3152_v59, %v3146_v37  ;;  %v3147_v36 = vadd.f32 %v3141_v7, %v2950_v30  ;;  %3982 = vmatprep.subr.bf16.mxu1 %v8053_v43  ;;  %v3164_v32 = vadd.f32 %v8402_v46, %v3160_v24  ;;  %v3265_v37 = vld [vmem:[#allocation14] sm:$0x3] }
0x14ad   : > { %v3565_v11 = vunpack.c.0.s8 %v3564_v23 }
0x14ae   : > { %v3162_v38 = vadd.f32 %v3156_v33, %v3147_v36  ;;  %7194 = vmatmul.mubr.msk.bf16.vlgmr.msra.gmra.mxu1 %vm1584_vm1, %v9583_v0  ;;  %v3169_v10 = vadd.f32 %v3164_v32, %v3163_v42  ;;  %v3165_v51 = vadd.f32 %v8403_v44, %v3161_v39  ;;  %v8065_v0 = vld [vmem:[#allocation13 + $0xf4] ss:$8 sps:$4 sm:$0xff]  }
0x14af   : > { %3983 = vmatpush1.bf16.msra.mxu1 %v8051_v41  ;;  %4002 = vmatprep.mubr.bf16.mxu1 %v8866_v17  ;;  %v3568_v31 = vsub.s32 %v3565_v11, %v9276_v8 }
0x14b0   : > { %3170 = vadd.xlane.f32.xlu0 %v3169_v10  ;;  %3984 = vmatprep.subr.bf16.mxu1 %v8056_v49  ;;  %v3166_v52 = vadd.f32 %v8404_v48, %v3162_v38 }
0x14b2   : > { %v3172_v56 = vadd.f32 %v3166_v52, %v3165_v51 }
0x14b3   : > { %3985 = vmatpush1.bf16.msra.mxu1 %v8054_v35 }
0x14b4   : > { %3173 = vadd.xlane.f32.xlu1 %v3172_v56  ;;  %4072 = vmatprep.subr.bf16.mxu1 %v8059_v54 }
0x14b6   : > { %7199 = vmatmul.mubr.msk.bf16.vlgmr.msra.gmra.mxu1 %vm1584_vm1, %v3946_v50 }
0x14b7   : > { %4073 = vmatpush1.bf16.msra.mxu1 %v8057_v60  ;;  %4092 = vmatprep.mubr.bf16.mxu1 %v8866_v17 }
0x14b8   : > { %4074 = vmatprep.subr.bf16.mxu1 %v8062_v55 }
0x14bb   : > { %4075 = vmatpush1.bf16.msra.mxu1 %v8060_v19 }
0x14bc   : > { %4162 = vmatprep.subr.bf16.mxu1 %v8065_v0 }
0x14be   : > { %7204 = vmatmul.mubr.msk.bf16.vlgmr.msra.gmra.mxu1 %vm1584_vm1, %v4036_v29 }
0x14bf   : > { %4163 = vmatpush1.bf16.msra.mxu1 %v8063_v1  ;;  %4182 = vmatprep.mubr.bf16.mxu1 %v8866_v17 }
0x14c0   : > { %4164 = vmatprep.subr.bf16.mxu1 %v8068_v62 }
0x14c3   : > { %4165 = vmatpush1.bf16.msra.mxu1 %v8066_v26 }
0x14c6   : > { %7209 = vmatmul.mubr.msk.bf16.vlgmr.msra.gmra.mxu1 %vm1584_vm1, %v4126_v2 }
0x14e4   : > { %v3553_v61 = vpop.f32.mrf.mxu1 }
0x14e6   : > { %v3555_v45 = vpop.f32.mrf.mxu1 }
0x14e7   : > { %v3562_v3 = vcombine.low %v3553_v61, %v3555_v45 }
0x14e8   : > { %v3557_v63 = vpop.f32.mrf.mxu1 }
0x14e9   : > { %v3569_v34 = vrot.slane %v3562_v3, %v3568_v31 }
0x14ea   : > { %v3558_v18 = vpop.f32.mrf.mxu1 }
0x14eb   : > { %v3576_v30 = vrot.slane %v3569_v34, %v3568_v31 }
0x14ed   : > { %v3578_v36 = vadd.f32 %v3576_v30, %v3265_v37 }
0x1539   : > { %v3171_v4 = vpop.xlane.xlu0 %3170 }
0x153a   : > { %v3176_v5 = vmul.f32 0.00390625, %v3171_v4 }
0x153c   : > { %v9625_v12 = vsub.f32 %v3163_v42, %v3176_v5  ;;  %v9627_v14 = vsub.f32 %v3164_v32, %v3176_v5 }
0x153d   : > { %v3174_v16 = vpop.xlane.xlu1 %3173 }
0x153e   : > { %v3177_v13 = vmul.f32 0.00390625, %v3174_v16  ;;  %v3182_v17 = vmul.f32 %v9625_v12, %v9625_v12  ;;  %v3183_v6 = vmul.f32 %v9627_v14, %v9627_v14 }
0x1540   : > { %v9633_v59 = vsub.f32 %v3165_v51, %v3177_v13  ;;  %v9635_v21 = vsub.f32 %v3166_v52, %v3177_v13  ;;  %v3186_v25 = vadd.f32 %v3183_v6, %v3182_v17 }
0x1542   : > { %3187 = vadd.xlane.f32.xlu0 %v3186_v25  ;;  %v3184_v27 = vmul.f32 %v9633_v59, %v9633_v59  ;;  %v3185_v28 = vmul.f32 %v9635_v21, %v9635_v21 }
0x1544   : > { %v3189_v33 = vadd.f32 %v3185_v28, %v3184_v27 }
0x1546   : > { %3190 = vadd.xlane.f32.xlu0 %v3189_v33 }
0x1556   : > { %v3644_v43 = vpop.f32.mrf.mxu1 }
0x1558   : > { %v3646_v57 = vpop.f32.mrf.mxu1 }
0x1559   : > { %v3653_v24 = vcombine.low %v3644_v43, %v3646_v57 }
0x155a   : > { %v3648_v7 = vpop.f32.mrf.mxu1 }
0x155b   : > { %v3660_v41 = vrot.slane %v3653_v24, %v3568_v31 }
0x155c   : > { %v3649_v39 = vpop.f32.mrf.mxu1 }
0x155d   : > { %v3667_v58 = vrot.slane %v3660_v41, %v3568_v31 }
0x155e   : > { %v3734_v42 = vpop.f32.mrf.mxu1 }
0x155f   : > { %v3669_v46 = vadd.f32 %v3667_v58, %v3578_v36 }
0x1560   : > { %v3736_v32 = vpop.f32.mrf.mxu1 }
0x1561   : > { %v3743_v49 = vcombine.low %v3734_v42, %v3736_v32 }
0x1562   : > { %v3738_v38 = vpop.f32.mrf.mxu1 }
0x1563   : > { %v3750_v10 = vrot.slane %v3743_v49, %v3568_v31  ;;  %v3167_v49 = vld [vmem:[%s10151_s14] sm:$0x3]  ;;  %v3168_v38 = vld [vmem:[#allocation20] sm:$0x3] }
0x1564   : > { %v3739_v35 = vpop.f32.mrf.mxu1 }
0x1565   : > { %v3757_v44 = vrot.slane %v3750_v10, %v3568_v31  ;;  %v3206_v10 = vrot.slane %v3167_v49, %v9290_v15  ;;  %v3210_v35 = vrot.slane %v3167_v49, %v9406_v53 }
0x1566   : > { %v3824_v51 = vpop.f32.mrf.mxu1 }
0x1567   : > { %v3759_v48 = vadd.f32 %v3757_v44, %v3669_v46 }
0x1568   : > { %v3826_v52 = vpop.f32.mrf.mxu1 }
0x1569   : > { %v3833_v54 = vcombine.low %v3824_v51, %v3826_v52  ;;  %v3225_v52 = vrot.slane %v3168_v38, %v9406_v53 }
0x156a   : > { %v3828_v56 = vpop.f32.mrf.mxu1 }
0x156b   : > { %v3840_v50 = vrot.slane %v3833_v54, %v3568_v31 }
0x156c   : > { %v3829_v60 = vpop.f32.mrf.mxu1 }
0x156d   : > { %v3847_v55 = vrot.slane %v3840_v50, %v3568_v31 }
0x156e   : > { %v3913_v19 = vpop.f32.mrf.mxu1 }
0x156f   : > { %v3849_v0 = vadd.f32 %v3847_v55, %v3759_v48  ;;  %v3221_v48 = vrot.slane %v3168_v38, %v9290_v15  ;;  %v4315_v38 = vld [vmem:[#allocation16 + $0xc0] sm:$0xff] }
0x1570   : > { %v3915_v29 = vpop.f32.mrf.mxu1 }
0x1571   : > { %v3922_v1 = vcombine.low %v3913_v19, %v3915_v29 }
0x1572   : > { %v3917_v62 = vpop.f32.mrf.mxu1 }
0x1573   : > { %v3929_v26 = vrot.slane %v3922_v1, %v3568_v31 }
0x1574   : > { %v3918_v2 = vpop.f32.mrf.mxu1 }
0x1575   : > { %v3936_v61 = vrot.slane %v3929_v26, %v3568_v31 }
0x1576   : > { %v4004_v45 = vpop.f32.mrf.mxu1 }
0x1577   : > { %v3938_v3 = vadd.f32 %v3936_v61, %v3849_v0 }
0x1578   : > { %v4006_v63 = vpop.f32.mrf.mxu1 }
0x1579   : > { %v4013_v18 = vcombine.low %v4004_v45, %v4006_v63 }
0x157a   : > { %v4008_v4 = vpop.f32.mrf.mxu1 }
0x157b   : > { %v4020_v5 = vrot.slane %v4013_v18, %v3568_v31  ;;  %v4351_v18 = vld [vmem:[#allocation16 + $0x1e0] sm:$0xff]  ;;  %v4348_v4 = vld [vmem:[#allocation16 + $0x1c8] sm:$0xff] }
0x157c   : > { %v4009_v16 = vpop.f32.mrf.mxu1 }
0x157d   : > { %v4027_v13 = vrot.slane %v4020_v5, %v3568_v31 }
0x157e   : > { %v4094_v17 = vpop.f32.mrf.mxu1 }
0x157f   : > { %v4029_v6 = vadd.f32 %v4027_v13, %v3938_v3  ;;  %v4352_v13 = vld [vmem:[#allocation16 + $0x1e8] sm:$0xff] }
0x1580   : > { %v4096_v25 = vpop.f32.mrf.mxu1 }
0x1581   : > { %v4103_v27 = vcombine.low %v4094_v17, %v4096_v25  ;;  %v4339_v17 = vld [vmem:[#allocation16 + $0x180] sm:$0xff]  ;;  %v7268_v25 = vcombine.low %v4348_v4, %v4352_v13 }
0x1582   : > { %v4098_v28 = vpop.f32.mrf.mxu1 }
0x1583   : > { %v4110_v33 = vrot.slane %v4103_v27, %v3568_v31  ;;  %v7269_v27 = vcombine.high %v4348_v4, %v4352_v13  ;;  %v4295_v4 = vld [vmem:[#allocation16 + $0x20] sm:$0xff] }
0x1584   : > { %v4099_v47 = vpop.f32.mrf.mxu1 }
0x1585   : > { %v4117_v23 = vrot.slane %v4110_v33, %v3568_v31  ;;  %v4340_v33 = vld [vmem:[#allocation16 + $0x188] sm:$0xff]  ;;  %5144 = vmatprep.subr.bf16.mxu1 %v7269_v27  ;;  %v4411_v27 = vld [vmem:[#allocation16 + $0x3c0] sm:$0xff] }
0x1586   : > { %v4184_v11 = vpop.f32.mrf.mxu1  ;;  %v4344_v47 = vld [vmem:[#allocation16 + $0x1a8] sm:$0xff]  ;;  %5145 = vmatpush1.bf16.msra.mxu1 %v7268_v25 }
0x1587   : > { %v4119_v34 = vadd.f32 %v4117_v23, %v4029_v6  ;;  %v4343_v6 = vld [vmem:[#allocation16 + $0x1a0] sm:$0xff] }
0x1588   : > { %v4186_v43 = vpop.f32.mrf.mxu1  ;;  %v7259_v28 = vcombine.high %v4339_v17, %v4343_v6  ;;  %v4331_v23 = vld [vmem:[#allocation16 + $0x140] sm:$0xff] }
0x1589   : > { %v4193_v57 = vcombine.low %v4184_v11, %v4186_v43  ;;  %v7261_v11 = vcombine.high %v4340_v33, %v4344_v47  ;;  %v4332_v43 = vld [vmem:[#allocation16 + $0x148] sm:$0xff] }
0x158a   : > { %v4188_v30 = vpop.f32.mrf.mxu1 }
0x158b   : > { %v4200_v24 = vrot.slane %v4193_v57, %v3568_v31  ;;  %v4336_v57 = vld [vmem:[#allocation16 + $0x168] sm:$0xff]  ;;  %v7258_v30 = vcombine.low %v4339_v17, %v4343_v6  ;;  %5146 = vmatprep.subr.bf16.mxu1 %v7261_v11 }
0x158c   : > { %v4189_v37 = vpop.f32.mrf.mxu1 }
0x158d   : > { %v4207_v7 = vrot.slane %v4200_v24, %v3568_v31  ;;  %v7260_v24 = vcombine.low %v4340_v33, %v4344_v47  ;;  %v4412_v33 = vld [vmem:[#allocation16 + $0x3c8] sm:$0xff] }
0x158e   : > { %v4416_v47 = vld [vmem:[#allocation16 + $0x3e8] sm:$0xff] }
0x158f   : > { %v4209_v41 = vadd.f32 %v4207_v7, %v4119_v34  ;;  %v4335_v34 = vld [vmem:[#allocation16 + $0x160] sm:$0xff]  ;;  %v7253_v7 = vcombine.high %v4332_v43, %v4336_v57  ;;  %5147 = vmatpush1.bf16.msra.mxu1 %v7260_v24 }
0x1590   : > { %v7251_v37 = vcombine.high %v4331_v23, %v4335_v34 }
0x1591   : > { %v4214_v60 = vrot.slane %v4209_v41, %v9290_v15  ;;  %v4218_v55 = vrot.slane %v4209_v41, %v9406_v53  ;;  %v4323_v41 = vld [vmem:[#allocation16 + $0x100] sm:$0xff]  ;;  %5148 = vmatprep.subr.bf16.mxu1 %v7253_v7 }
0x15cb   : > { %v3188_v39 = vpop.xlane.xlu0 %3187 }
0x15cc   : > { %v3192_v36 = vmul.f32 0.00390625, %v3188_v39  ;;  %v4327_v39 = vld [vmem:[#allocation16 + $0x120] sm:$0xff] }
0x15ce   : > { %v3194_v58 = vadd.f32 1e-05, %v3192_v36  ;;  %v4324_v36 = vld [vmem:[#allocation16 + $0x108] sm:$0xff] }
0x15cf   : > { %v3191_v42 = vpop.xlane.xlu0 %3190 }
0x15d0   : > { %8325 = vrsqrt.f32 %v3194_v58  ;;  %v3193_v46 = vmul.f32 0.00390625, %v3191_v42  ;;  %v4328_v58 = vld [vmem:[#allocation16 + $0x128] sm:$0xff]  ;;  %v7250_v42 = vcombine.low %v4331_v23, %v4335_v34 }
0x15d1   : > { %v7245_v49 = vcombine.high %v4324_v36, %v4328_v58 }
0x15d2   : > { %v3195_v32 = vadd.f32 1e-05, %v3193_v46  ;;  %v7252_v46 = vcombine.low %v4332_v43, %v4336_v57  ;;  %v7333_v43 = vcombine.high %v4412_v33, %v4416_v47 }
0x15d4   : > { %8327 = vrsqrt.f32 %v3195_v32  ;;  %v7243_v32 = vcombine.high %v4323_v41, %v4327_v39  ;;  %5149 = vmatpush1.bf16.msra.mxu1 %v7252_v46 }
0x15d5   : > { %5150 = vmatprep.subr.bf16.mxu1 %v7245_v49 }
0x15dd   : > { %v8326_v44 = vpop.eup %8325 }
0x15de   : > { %v3198_v31 = vmul.f32 %v8326_v44, %v9625_v12  ;;  %v3199_v51 = vmul.f32 %v8326_v44, %v9627_v14  ;;  %v4320_v44 = vld [vmem:[#allocation16 + $0xe8] sm:$0xff] }
0x15e0   : > { %v3213_v54 = vmul.f32 %v3206_v10, %v3198_v31  ;;  %v3214_v56 = vmul.f32 %v3210_v35, %v3199_v51  ;;  %v7242_v31 = vcombine.low %v4323_v41, %v4327_v39  ;;  %v7244_v51 = vcombine.low %v4324_v36, %v4328_v58 }
0x15e1   : > { %v8328_v50 = vpop.eup %8327 }
0x15e2   : > { %v3228_v19 = vadd.f32 %v3221_v48, %v3213_v54  ;;  %v3229_v0 = vadd.f32 %v3225_v52, %v3214_v56  ;;  %v3200_v29 = vmul.f32 %v8328_v50, %v9633_v59  ;;  %v3201_v1 = vmul.f32 %v8328_v50, %v9635_v21  ;;  %v4347_v21 = vld [vmem:[#allocation16 + $0x1c0] sm:$0xff]  ;;  %v4308_v50 = vld [vmem:[#allocation16 + $0x88] sm:$0xff]  ;;  %5151 = vmatpush1.bf16.msra.mxu1 %v7244_v51 }
0x15e3   : > { %v7266_v5 = vcombine.low %v4347_v21, %v4351_v18  ;;  %v7267_v16 = vcombine.high %v4347_v21, %v4351_v18  ;;  %v4307_v54 = vld [vmem:[#allocation16 + $0x80] sm:$0xff]  ;;  %v4408_v51 = vld [vmem:[#allocation16 + $0x3a8] sm:$0xff] }
0x15e4   : > { %v9655_v12 = vadd.f32 %v4214_v60, %v3228_v19  ;;  %v9657_v14 = vadd.f32 %v4218_v55, %v3229_v0  ;;  %v3215_v62 = vmul.f32 %v3206_v10, %v3200_v29  ;;  %v3216_v26 = vmul.f32 %v3210_v35, %v3201_v1  ;;  %v4319_v10 = vld [vmem:[#allocation16 + $0xe0] sm:$0xff]  ;;  %v4316_v35 = vld [vmem:[#allocation16 + $0xc8] sm:$0xff] }
0x15e5   : > { %5101 = vmatprep.subr.bf16.mxu0 %v7267_v16  ;;  %v4311_v56 = vld [vmem:[#allocation16 + $0xa0] sm:$0xff]  ;;  %v7236_v19 = vcombine.low %v4316_v35, %v4320_v44  ;;  %v4296_v16 = vld [vmem:[#allocation16 + $0x28] sm:$0xff] }
0x15e6   : > { %v4227_v2 = vadd.f32 %v9657_v14, %v9655_v12  ;;  %v3230_v61 = vadd.f32 %v3221_v48, %v3215_v62  ;;  %v3231_v45 = vadd.f32 %v3225_v52, %v3216_v26  ;;  %5102 = vmatpush1.bf16.msra.mxu0 %v7266_v5  ;;  %v7235_v48 = vcombine.high %v4315_v38, %v4319_v10  ;;  %v4299_v1 = vld [vmem:[#allocation16 + $0x40] sm:$0xff]  ;;  %v4300_v26 = vld [vmem:[#allocation16 + $0x48] sm:$0xff] }
0x15e7   : > { %5103 = vmatprep.subr.bf16.mxu0 %v7259_v28  ;;  %v7237_v52 = vcombine.high %v4316_v35, %v4320_v44  ;;  %v7227_v0 = vcombine.high %v4307_v54, %v4311_v56  ;;  %v4303_v62 = vld [vmem:[#allocation16 + $0x60] sm:$0xff]  ;;  %v4292_v5 = vld [vmem:[#allocation16 + $0x8] sm:$0xff] }
0x15e8   : > { %4228 = vadd.xlane.f32.xlu0 %v4227_v2  ;;  %v9661_v3 = vadd.f32 %v4214_v60, %v3230_v61  ;;  %v9663_v63 = vadd.f32 %v4218_v55, %v3231_v45  ;;  %v4312_v60 = vld [vmem:[#allocation16 + $0xa8] sm:$0xff]  ;;  %v7234_v55 = vcombine.low %v4315_v38, %v4319_v10  ;;  %v7226_v61 = vcombine.low %v4307_v54, %v4311_v56  ;;  %v4291_v18 = vld [vmem:[#allocation16] sm:$0xff] }
0x15e9   : > { %5152 = vmatprep.subr.bf16.mxu1 %v7237_v52  ;;  %v7229_v29 = vcombine.high %v4308_v50, %v4312_v60  ;;  %v4304_v2 = vld [vmem:[#allocation16 + $0x68] sm:$0xff]  ;;  %v7228_v45 = vcombine.low %v4308_v50, %v4312_v60  ;;  %v7218_v13 = vcombine.low %v4299_v1, %v4303_v62  ;;  %v7211_v6 = vcombine.high %v4291_v18, %v4295_v4  ;;  %v4415_v28 = vld [vmem:[#allocation16 + $0x3e0] sm:$0xff] }
0x15ea   : > { %v4230_v59 = vadd.f32 %v9663_v63, %v9661_v3  ;;  %5104 = vmatpush1.bf16.msra.mxu0 %v7258_v30  ;;  %5153 = vmatpush1.bf16.msra.mxu1 %v7236_v19  ;;  %v7221_v21 = vcombine.high %v4300_v26, %v4304_v2  ;;  %v7220_v17 = vcombine.low %v4300_v26, %v4304_v2  ;;  %v4403_v10 = vld [vmem:[#allocation16 + $0x380] sm:$0xff]  ;;  %v4404_v44 = vld [vmem:[#allocation16 + $0x388] sm:$0xff] }
0x15eb   : > { %5105 = vmatprep.subr.bf16.mxu0 %v7251_v37  ;;  %5154 = vmatprep.subr.bf16.mxu1 %v7229_v29  ;;  %v7213_v25 = vcombine.high %v4292_v5, %v4296_v16  ;;  %v7210_v23 = vcombine.low %v4291_v18, %v4295_v4  ;;  %v7212_v11 = vcombine.low %v4292_v5, %v4296_v16  ;;  %v4407_v35 = vld [vmem:[#allocation16 + $0x3a0] sm:$0xff]  ;;  %v4396_v56 = vld [vmem:[#allocation16 + $0x348] sm:$0xff] }
0x15ec   : > { %4231 = vadd.xlane.f32.xlu1 %v4230_v59  ;;  %v7219_v59 = vcombine.high %v4299_v1, %v4303_v62  ;;  %v7331_v34 = vcombine.high %v4411_v27, %v4415_v28  ;;  %v7330_v57 = vcombine.low %v4411_v27, %v4415_v28  ;;  %v7332_v30 = vcombine.low %v4412_v33, %v4416_v47  ;;  %v4399_v54 = vld [vmem:[#allocation16 + $0x360] sm:$0xff]  ;;  %v4400_v60 = vld [vmem:[#allocation16 + $0x368] sm:$0xff] }
0x15ed   : > { %v7325_v52 = vcombine.high %v4404_v44, %v4408_v51  ;;  %v7316_v19 = vcombine.low %v4396_v56, %v4400_v60  ;;  %v4387_v29 = vld [vmem:[#allocation16 + $0x300] sm:$0xff]  ;;  %v4388_v62 = vld [vmem:[#allocation16 + $0x308] sm:$0xff] }
0x15ee   : > { %5106 = vmatpush1.bf16.msra.mxu0 %v7250_v42  ;;  %5155 = vmatpush1.bf16.msra.mxu1 %v7228_v45  ;;  %v4391_v1 = vld [vmem:[#allocation16 + $0x320] sm:$0xff]  ;;  %v4380_v5 = vld [vmem:[#allocation16 + $0x2c8] sm:$0xff] }
0x15ef   : > { %5107 = vmatprep.subr.bf16.mxu0 %v7243_v32  ;;  %5156 = vmatprep.subr.bf16.mxu1 %v7221_v21  ;;  %v7306_v26 = vcombine.low %v4387_v29, %v4391_v1  ;;  %v7307_v2 = vcombine.high %v4387_v29, %v4391_v1  ;;  %v4379_v45 = vld [vmem:[#allocation16 + $0x2c0] sm:$0xff]  ;;  %v4384_v16 = vld [vmem:[#allocation16 + $0x2e8] sm:$0xff]  ;;  %v4225_v1 = vld [vmem:[%s10153_s16] sm:$0x3] }
0x15f0   : > { %v4376_v27 = vld [vmem:[#allocation16 + $0x2a8] sm:$0xff]  ;;  %v7300_v33 = vcombine.low %v4380_v5, %v4384_v16 }
0x15f2   : > { %5108 = vmatpush1.bf16.msra.mxu0 %v7242_v31  ;;  %5157 = vmatpush1.bf16.msra.mxu1 %v7220_v17  ;;  %v7323_v31 = vcombine.high %v4403_v10, %v4407_v35  ;;  %v7301_v17 = vcombine.high %v4380_v5, %v4384_v16 }
0x15f3   : > { %5109 = vmatprep.subr.bf16.mxu0 %v7235_v48  ;;  %5158 = vmatprep.subr.bf16.mxu1 %v7213_v25  ;;  %v7324_v48 = vcombine.low %v4404_v44, %v4408_v51  ;;  %v4372_v25 = vld [vmem:[#allocation16 + $0x288] sm:$0xff]  ;;  %v4353_v51 = vld [vmem:[#allocation16 + $0x1f0] sm:$0xff] }
0x15f6   : > { %5110 = vmatpush1.bf16.msra.mxu0 %v7234_v55  ;;  %5159 = vmatpush1.bf16.msra.mxu1 %v7212_v11  ;;  %v4363_v11 = vld [vmem:[#allocation16 + $0x240] sm:$0xff] }
0x15f7   : > { %5111 = vmatprep.subr.bf16.mxu0 %v7227_v0  ;;  %5160 = vmatprep.subr.bf16.mxu1 %v7333_v43  ;;  %v7317_v0 = vcombine.high %v4396_v56, %v4400_v60  ;;  %v4364_v43 = vld [vmem:[#allocation16 + $0x248] sm:$0xff] }
0x15fa   : > { %5112 = vmatpush1.bf16.msra.mxu0 %v7226_v61  ;;  %5161 = vmatpush2.bf16.msra.mxu1 %v7332_v30  ;;  %v4392_v61 = vld [vmem:[#allocation16 + $0x328] sm:$0xff] }
0x15fb   : > { %5113 = vmatprep.subr.bf16.mxu0 %v7219_v59  ;;  %5162 = vmatprep.subr.bf16.mxu1 %v7325_v52  ;;  %v4383_v59 = vld [vmem:[#allocation16 + $0x2e0] sm:$0xff]  ;;  %v7308_v21 = vcombine.low %v4388_v62, %v4392_v61  ;;  %v7309_v18 = vcombine.high %v4388_v62, %v4392_v61  ;;  %v4354_v52 = vld [vmem:[#allocation16 + $0x1f8] sm:$0xff]  ;;  %v4267_v61 = vrot.slane %v4225_v1, %v9406_v53 }
0x15fc   : > { %v7299_v4 = vcombine.high %v4379_v45, %v4383_v59  ;;  %v7298_v28 = vcombine.low %v4379_v45, %v4383_v59  ;;  %v4263_v59 = vrot.slane %v4225_v1, %v9290_v15 }
0x15fe   : > { %5114 = vmatpush1.bf16.msra.mxu0 %v7218_v13  ;;  %5163 = vmatpush2.bf16.msra.mxu1 %v7324_v48  ;;  %v4371_v13 = vld [vmem:[#allocation16 + $0x280] sm:$0xff] }
0x15ff   : > { %5115 = vmatprep.subr.bf16.mxu0 %v7211_v6  ;;  %5164 = vmatprep.subr.bf16.mxu1 %v7317_v0  ;;  %v4375_v6 = vld [vmem:[#allocation16 + $0x2a0] sm:$0xff] }
0x1600   : > { %v7291_v47 = vcombine.high %v4371_v13, %v4375_v6  ;;  %v7290_v30 = vcombine.low %v4371_v13, %v4375_v6 }
0x1602   : > { %5116 = vmatpush1.bf16.msra.mxu0 %v7210_v23  ;;  %5165 = vmatpush2.bf16.msra.mxu1 %v7316_v19  ;;  %v7293_v23 = vcombine.high %v4372_v25, %v4376_v27 }
0x1603   : > { %5117 = vmatprep.subr.bf16.mxu0 %v7331_v34  ;;  %5166 = vmatprep.subr.bf16.mxu1 %v7309_v18  ;;  %v4367_v34 = vld [vmem:[#allocation16 + $0x260] sm:$0xff] }
0x1606   : > { %5118 = vmatpush2.bf16.msra.mxu0 %v7330_v57  ;;  %5167 = vmatpush2.bf16.msra.mxu1 %v7308_v21  ;;  %v4368_v57 = vld [vmem:[#allocation16 + $0x268] sm:$0xff] }
0x1607   : > { %5119 = vmatprep.subr.bf16.mxu0 %v7323_v31  ;;  %5168 = vmatprep.subr.bf16.mxu1 %v7301_v17  ;;  %v4349_v31 = vld [vmem:[#allocation16 + $0x1d0] sm:$0xff] }
0x1608   : > { %v7271_v48 = vcombine.high %v4349_v31, %v4353_v51 }
0x160a   : > { %5169 = vmatpush2.bf16.msra.mxu1 %v7300_v33  ;;  %v4341_v33 = vld [vmem:[#allocation16 + $0x190] sm:$0xff] }
0x160b   : > { %5170 = vmatprep.subr.bf16.mxu1 %v7293_v23  ;;  %v4342_v23 = vld [vmem:[#allocation16 + $0x198] sm:$0xff] }
0x1671   : > { %v4229_v24 = vpop.xlane.xlu0 %4228 }
0x1672   : > { %v4233_v37 = vmul.f32 0.00390625, %v4229_v24  ;;  %v7292_v24 = vcombine.low %v4372_v25, %v4376_v27 }
0x1674   : > { %v9668_v7 = vsub.f32 %v9655_v12, %v4233_v37  ;;  %v9671_v41 = vsub.f32 %v9657_v14, %v4233_v37  ;;  %v7283_v37 = vcombine.high %v4363_v11, %v4367_v34  ;;  %5171 = vmatpush2.bf16.msra.mxu1 %v7292_v24  ;;  %v4334_v24 = vld [vmem:[#allocation16 + $0x158] sm:$0xff] }
0x1675   : > { %v4232_v39 = vpop.xlane.xlu1 %4231 }
0x1676   : > { %v4234_v36 = vmul.f32 0.00390625, %v4232_v39  ;;  %v4239_v58 = vmul.f32 %v9668_v7, %v9668_v7  ;;  %v4240_v42 = vmul.f32 %v9671_v41, %v9671_v41  ;;  %v7285_v39 = vcombine.high %v4364_v43, %v4368_v57 }
0x1678   : > { %v9678_v46 = vsub.f32 %v9661_v3, %v4234_v36  ;;  %v9681_v32 = vsub.f32 %v9663_v63, %v4234_v36  ;;  %v4243_v49 = vadd.f32 %v4240_v42, %v4239_v58  ;;  %v7322_v3 = vcombine.low %v4403_v10, %v4407_v35  ;;  %v4395_v63 = vld [vmem:[#allocation16 + $0x340] sm:$0xff]  ;;  %v4356_v42 = vld [vmem:[#allocation16 + $0x208] sm:$0xff]  ;;  %5172 = vmatprep.subr.bf16.mxu1 %v7285_v39 }
0x1679   : > { %v7315_v50 = vcombine.high %v4395_v63, %v4399_v54  ;;  %v7314_v55 = vcombine.low %v4395_v63, %v4399_v54  ;;  %v4355_v36 = vld [vmem:[#allocation16 + $0x200] sm:$0xff]  ;;  %v7270_v63 = vcombine.low %v4349_v31, %v4353_v51  ;;  %v4317_v51 = vld [vmem:[#allocation16 + $0xd0] sm:$0xff] }
0x167a   : > { %4244 = vadd.xlane.f32.xlu0 %v4243_v49  ;;  %v4241_v12 = vmul.f32 %v9678_v46, %v9678_v46  ;;  %v4242_v14 = vmul.f32 %v9681_v32, %v9681_v32  ;;  %5120 = vmatpush2.bf16.msra.mxu0 %v7322_v3  ;;  %v4359_v58 = vld [vmem:[#allocation16 + $0x220] sm:$0xff]  ;;  %v4360_v49 = vld [vmem:[#allocation16 + $0x228] sm:$0xff]  ;;  %v4350_v3 = vld [vmem:[#allocation16 + $0x1d8] sm:$0xff] }
0x167b   : > { %5121 = vmatprep.subr.bf16.mxu0 %v7315_v50  ;;  %v7277_v10 = vcombine.high %v4356_v42, %v4360_v49  ;;  %v7274_v35 = vcombine.low %v4355_v36, %v4359_v58  ;;  %v7276_v44 = vcombine.low %v4356_v42, %v4360_v49  ;;  %v7272_v54 = vcombine.low %v4350_v3, %v4354_v52  ;;  %v4325_v49 = vld [vmem:[#allocation16 + $0x110] sm:$0xff] }
0x167c   : > { %v4246_v38 = vadd.f32 %v4242_v14, %v4241_v12  ;;  %v7282_v12 = vcombine.low %v4363_v11, %v4367_v34  ;;  %v7284_v14 = vcombine.low %v4364_v43, %v4368_v57  ;;  %v7273_v56 = vcombine.high %v4350_v3, %v4354_v52  ;;  %v4346_v11 = vld [vmem:[#allocation16 + $0x1b8] sm:$0xff]  ;;  %v4333_v34 = vld [vmem:[#allocation16 + $0x150] sm:$0xff] }
0x167d   : > { %v7265_v57 = vcombine.high %v4342_v23, %v4346_v11  ;;  %v4321_v3 = vld [vmem:[#allocation16 + $0xf0] sm:$0xff]  ;;  %v4322_v52 = vld [vmem:[#allocation16 + $0xf8] sm:$0xff] }
0x167e   : > { %4247 = vadd.xlane.f32.xlu1 %v4246_v38  ;;  %5122 = vmatpush2.bf16.msra.mxu0 %v7314_v55  ;;  %v7275_v38 = vcombine.high %v4355_v36, %v4359_v58  ;;  %v7264_v36 = vcombine.low %v4342_v23, %v4346_v11  ;;  %v4413_v11 = vld [vmem:[#allocation16 + $0x3d0] sm:$0xff] }
0x167f   : > { %5123 = vmatprep.subr.bf16.mxu0 %v7307_v2  ;;  %5173 = vmatpush2.bf16.msra.mxu1 %v7284_v14  ;;  %v4326_v14 = vld [vmem:[#allocation16 + $0x118] sm:$0xff] }
0x1680   : > { %5174 = vmatprep.subr.bf16.mxu1 %v7277_v10 }
0x1682   : > { %5124 = vmatpush2.bf16.msra.mxu0 %v7306_v26  ;;  %v4226_v26 = vld [vmem:[#allocation22] sm:$0x3] }
0x1683   : > { %5125 = vmatprep.subr.bf16.mxu0 %v7299_v4  ;;  %5175 = vmatpush2.bf16.msra.mxu1 %v7276_v44  ;;  %v4282_v18 = vrot.slane %v4226_v26, %v9406_v53  ;;  %v4278_v4 = vrot.slane %v4226_v26, %v9290_v15 }
0x1684   : > { %5230 = vmatprep.subr.bf16.mxu1 %v7273_v56  ;;  %v7239_v56 = vcombine.high %v4317_v51, %v4321_v3 }
0x1686   : > { %5126 = vmatpush2.bf16.msra.mxu0 %v7298_v28 }
0x1687   : > { %5127 = vmatprep.subr.bf16.mxu0 %v7291_v47  ;;  %v4345_v47 = vld [vmem:[#allocation16 + $0x1b0] sm:$0xff] }
0x1688   : > { %v7263_v43 = vcombine.high %v4341_v33, %v4345_v47  ;;  %v7262_v39 = vcombine.low %v4341_v33, %v4345_v47 }
0x168a   : > { %5128 = vmatpush2.bf16.msra.mxu0 %v7290_v30  ;;  %v4337_v30 = vld [vmem:[#allocation16 + $0x170] sm:$0xff] }
0x168b   : > { %5129 = vmatprep.subr.bf16.mxu0 %v7283_v37  ;;  %v4338_v37 = vld [vmem:[#allocation16 + $0x178] sm:$0xff]  ;;  %v7255_v58 = vcombine.high %v4333_v34, %v4337_v30  ;;  %v7254_v10 = vcombine.low %v4333_v34, %v4337_v30 }
0x168c   : > { %v7257_v42 = vcombine.high %v4334_v24, %v4338_v37  ;;  %v4414_v34 = vld [vmem:[#allocation16 + $0x3d8] sm:$0xff] }
0x168e   : > { %5130 = vmatpush2.bf16.msra.mxu0 %v7282_v12  ;;  %v4329_v12 = vld [vmem:[#allocation16 + $0x130] sm:$0xff] }
0x168f   : > { %5131 = vmatprep.subr.bf16.mxu0 %v7275_v38  ;;  %v4330_v38 = vld [vmem:[#allocation16 + $0x138] sm:$0xff]  ;;  %v7247_v44 = vcombine.high %v4325_v49, %v4329_v12 }
0x1690   : > { %v7249_v31 = vcombine.high %v4326_v14, %v4330_v38 }
0x1692   : > { %5132 = vmatpush2.bf16.msra.mxu0 %v7274_v35  ;;  %v7256_v35 = vcombine.low %v4334_v24, %v4338_v37 }
0x1693   : > { %5187 = vmatprep.subr.bf16.mxu0 %v7271_v48  ;;  %v4318_v48 = vld [vmem:[#allocation16 + $0xd8] sm:$0xff] }
0x1694   : > { %v7240_v1 = vcombine.low %v4318_v48, %v4322_v52 }
0x1703   : > { %v4245_v50 = vpop.xlane.xlu0 %4244 }
0x1704   : > { %v4249_v60 = vmul.f32 0.00390625, %v4245_v50  ;;  %v7241_v50 = vcombine.high %v4318_v48, %v4322_v52 }
0x1706   : > { %v4251_v55 = vadd.f32 1e-05, %v4249_v60  ;;  %v4309_v60 = vld [vmem:[#allocation16 + $0x90] sm:$0xff] }
0x1707   : > { %v4248_v19 = vpop.xlane.xlu1 %4247 }
0x1708   : > { %8329 = vrsqrt.f32 %v4251_v55  ;;  %v4250_v0 = vmul.f32 0.00390625, %v4248_v19  ;;  %v4313_v55 = vld [vmem:[#allocation16 + $0xb0] sm:$0xff]  ;;  %v4310_v19 = vld [vmem:[#allocation16 + $0x98] sm:$0xff] }
0x170a   : > { %v4252_v29 = vadd.f32 1e-05, %v4250_v0  ;;  %v4314_v0 = vld [vmem:[#allocation16 + $0xb8] sm:$0xff] }
0x170b   : > { %v7233_v26 = vcombine.high %v4310_v19, %v4314_v0 }
0x170c   : > { %8331 = vrsqrt.f32 %v4252_v29  ;;  %v7238_v29 = vcombine.low %v4317_v51, %v4321_v3 }
0x1715   : > { %v8330_v62 = vpop.eup %8329 }
0x1716   : > { %v4256_v2 = vmul.f32 %v8330_v62, %v9671_v41  ;;  %v4255_v45 = vmul.f32 %v8330_v62, %v9668_v7  ;;  %v7231_v62 = vcombine.high %v4309_v60, %v4313_v55 }
0x1718   : > { %v4271_v16 = vmul.f32 %v4267_v61, %v4256_v2  ;;  %v4270_v17 = vmul.f32 %v4263_v59, %v4255_v45  ;;  %v4301_v2 = vld [vmem:[#allocation16 + $0x50] sm:$0xff]  ;;  %v4302_v45 = vld [vmem:[#allocation16 + $0x58] sm:$0xff] }
0x1719   : > { %v8332_v21 = vpop.eup %8331 }
0x171a   : > { %v4258_v5 = vmul.f32 %v8332_v21, %v9681_v32  ;;  %v4257_v13 = vmul.f32 %v8332_v21, %v9678_v46  ;;  %v9698_v41 = vadd.f32 %v4282_v18, %v4271_v16  ;;  %v9702_v7 = vadd.f32 %v4278_v4, %v4270_v17  ;;  %v4293_v16 = vld [vmem:[#allocation16 + $0x10] sm:$0xff]  ;;  %v4294_v17 = vld [vmem:[#allocation16 + $0x18] sm:$0xff] }
0x171b   : > { %v7230_v21 = vcombine.low %v4309_v60, %v4313_v55 }
0x171c   : > { %v4273_v6 = vmul.f32 %v4267_v61, %v4258_v5  ;;  %v4272_v25 = vmul.f32 %v4263_v59, %v4257_v13  ;;  %v4305_v61 = vld [vmem:[#allocation16 + $0x70] sm:$0xff]  ;;  %v4306_v59 = vld [vmem:[#allocation16 + $0x78] sm:$0xff] }
0x171d   : > { %v7225_v5 = vcombine.high %v4302_v45, %v4306_v59  ;;  %v4297_v13 = vld [vmem:[#allocation16 + $0x30] sm:$0xff]  ;;  %v7224_v33 = vcombine.low %v4302_v45, %v4306_v59 }
0x171e   : > { %v9700_v27 = vadd.f32 %v4282_v18, %v4273_v6  ;;  %v9704_v28 = vadd.f32 %v4278_v4, %v4272_v25  ;;  %v7232_v18 = vcombine.low %v4310_v19, %v4314_v0  ;;  %v7223_v4 = vcombine.high %v4301_v2, %v4305_v61  ;;  %v4298_v6 = vld [vmem:[#allocation16 + $0x38] sm:$0xff] }
0x171f   : > { %v7222_v25 = vcombine.low %v4301_v2, %v4305_v61  ;;  %v7215_v47 = vcombine.high %v4293_v16, %v4297_v13  ;;  %v7217_v23 = vcombine.high %v4294_v17, %v4298_v6  ;;  %v7216_v30 = vcombine.low %v4294_v17, %v4298_v6 }
0x1720   : > { %v4290_v32 = vpack.c.bf16 %v9700_v27, %v9698_v41  ;;  %v9710_v46 = vpack.c.bf16 %v9704_v28, %v9702_v7 }
0x1722   : > { %5133 = vmatprep.mubr.bf16.mxu0 %v4290_v32  ;;  %5176 = vmatprep.mubr.bf16.mxu1 %v4290_v32 }
0x1723   : > { %5134 = vmatmul.mubr.bf16.vlgmr.msra.gmra.mxu0 %v9710_v46  ;;  %5177 = vmatmul.mubr.bf16.vlgmr.msra.gmra.mxu1 %v9710_v46 }
0x1724   : > { %5188 = vmatpush1.bf16.msra.mxu0 %v7270_v63  ;;  %5231 = vmatpush1.bf16.msra.mxu1 %v7272_v54  ;;  %v7246_v63 = vcombine.low %v4325_v49, %v4329_v12  ;;  %v7248_v54 = vcombine.low %v4326_v14, %v4330_v38 }
0x1725   : > { %5219 = vmatprep.mubr.bf16.mxu0 %v4290_v32  ;;  %5262 = vmatprep.mubr.bf16.mxu1 %v4290_v32  ;;  %v4417_v32 = vld [vmem:[#allocation16 + $0x3f0] sm:$0xff] }
0x1726   : > { %5189 = vmatprep.subr.bf16.mxu0 %v7263_v43  ;;  %5232 = vmatprep.subr.bf16.mxu1 %v7265_v57  ;;  %v4418_v43 = vld [vmem:[#allocation16 + $0x3f8] sm:$0xff]  ;;  %v7214_v57 = vcombine.low %v4293_v16, %v4297_v13  ;;  %v7335_v24 = vcombine.high %v4413_v11, %v4417_v32  ;;  %v7334_v49 = vcombine.low %v4413_v11, %v4417_v32 }
0x1727   : > { %v7337_v37 = vcombine.high %v4414_v34, %v4418_v43  ;;  %v7336_v12 = vcombine.low %v4414_v34, %v4418_v43 }
0x1728   : > { %5190 = vmatpush1.bf16.msra.mxu0 %v7262_v39  ;;  %5233 = vmatpush1.bf16.msra.mxu1 %v7264_v36  ;;  %v4405_v39 = vld [vmem:[#allocation16 + $0x390] sm:$0xff] }
0x1729   : > { %5191 = vmatprep.subr.bf16.mxu0 %v7255_v58  ;;  %5234 = vmatprep.subr.bf16.mxu1 %v7257_v42  ;;  %v4409_v36 = vld [vmem:[#allocation16 + $0x3b0] sm:$0xff]  ;;  %v4406_v58 = vld [vmem:[#allocation16 + $0x398] sm:$0xff] }
0x172a   : > { %v4410_v42 = vld [vmem:[#allocation16 + $0x3b8] sm:$0xff]  ;;  %v7327_v14 = vcombine.high %v4405_v39, %v4409_v36  ;;  %v7326_v51 = vcombine.low %v4405_v39, %v4409_v36 }
0x172b   : > { %v7329_v38 = vcombine.high %v4406_v58, %v4410_v42  ;;  %v7328_v3 = vcombine.low %v4406_v58, %v4410_v42 }
0x172c   : > { %5192 = vmatpush1.bf16.msra.mxu0 %v7254_v10  ;;  %5235 = vmatpush1.bf16.msra.mxu1 %v7256_v35  ;;  %v4397_v10 = vld [vmem:[#allocation16 + $0x350] sm:$0xff] }
0x172d   : > { %5193 = vmatprep.subr.bf16.mxu0 %v7247_v44  ;;  %5236 = vmatprep.subr.bf16.mxu1 %v7249_v31  ;;  %v4401_v35 = vld [vmem:[#allocation16 + $0x370] sm:$0xff]  ;;  %v4398_v44 = vld [vmem:[#allocation16 + $0x358] sm:$0xff] }
0x172e   : > { %v4402_v31 = vld [vmem:[#allocation16 + $0x378] sm:$0xff]  ;;  %v7319_v48 = vcombine.high %v4397_v10, %v4401_v35  ;;  %v7318_v60 = vcombine.low %v4397_v10, %v4401_v35 }
0x172f   : > { %v7321_v52 = vcombine.high %v4398_v44, %v4402_v31  ;;  %v7320_v55 = vcombine.low %v4398_v44, %v4402_v31  ;;  %v8069_v10 = vld [vmem:[#allocation17 + $0x70] ss:$8 sps:$4 sm:$0xff]   ;;  %v8077_v44 = vld [vmem:[#allocation17 + $0x64] ss:$8 sps:$4 sm:$0xff]  }
0x1730   : > { %5194 = vmatpush1.bf16.msra.mxu0 %v7246_v63  ;;  %5237 = vmatpush1.bf16.msra.mxu1 %v7248_v54  ;;  %v4389_v63 = vld [vmem:[#allocation16 + $0x310] sm:$0xff]  ;;  %v8080_v31 = vld [vmem:[#allocation17 + $0x164] ss:$8 sps:$4 sm:$0xff]  }
0x1731   : > { %5195 = vmatprep.subr.bf16.mxu0 %v7239_v56  ;;  %5238 = vmatprep.subr.bf16.mxu1 %v7241_v50  ;;  %v4393_v54 = vld [vmem:[#allocation16 + $0x330] sm:$0xff]  ;;  %v4390_v56 = vld [vmem:[#allocation16 + $0x318] sm:$0xff] }
0x1732   : > { %v4394_v50 = vld [vmem:[#allocation16 + $0x338] sm:$0xff]  ;;  %v7311_v19 = vcombine.high %v4389_v63, %v4393_v54  ;;  %v7310_v2 = vcombine.low %v4389_v63, %v4393_v54 }
0x1733   : > { %v7313_v0 = vcombine.high %v4390_v56, %v4394_v50  ;;  %v7312_v61 = vcombine.low %v4390_v56, %v4394_v50  ;;  %v8072_v35 = vld [vmem:[#allocation17 + $0x170] ss:$8 sps:$4 sm:$0xff]   ;;  %v8089_v56 = vld [vmem:[#allocation17 + $0x44] ss:$8 sps:$4 sm:$0xff]   ;;  %v8087_v50 = vld [vmem:[#allocation17 + $0x40] ss:$8 sps:$4 sm:$0xff]  }
0x1734   : > { %5196 = vmatpush1.bf16.msra.mxu0 %v7238_v29  ;;  %5239 = vmatpush1.bf16.msra.mxu1 %v7240_v1  ;;  %v4381_v29 = vld [vmem:[#allocation16 + $0x2d0] sm:$0xff] }
0x1735   : > { %5197 = vmatprep.subr.bf16.mxu0 %v7231_v62  ;;  %5240 = vmatprep.subr.bf16.mxu1 %v7233_v26  ;;  %v4385_v1 = vld [vmem:[#allocation16 + $0x2f0] sm:$0xff]  ;;  %v4382_v62 = vld [vmem:[#allocation16 + $0x2d8] sm:$0xff] }
0x1736   : > { %v4386_v26 = vld [vmem:[#allocation16 + $0x2f8] sm:$0xff]  ;;  %v7303_v45 = vcombine.high %v4381_v29, %v4385_v1  ;;  %v7302_v16 = vcombine.low %v4381_v29, %v4385_v1  ;;  %v8101_v1 = vld [vmem:[#allocation17 + $0x24] ss:$8 sps:$4 sm:$0xff]  }
0x1737   : > { %v7305_v59 = vcombine.high %v4382_v62, %v4386_v26  ;;  %v7304_v13 = vcombine.low %v4382_v62, %v4386_v26  ;;  %v8081_v63 = vld [vmem:[#allocation17 + $0x50] ss:$8 sps:$4 sm:$0xff]   ;;  %v8104_v62 = vld [vmem:[#allocation17 + $0x124] ss:$8 sps:$4 sm:$0xff]   ;;  %v8099_v26 = vld [vmem:[#allocation17 + $0x20] ss:$8 sps:$4 sm:$0xff]  }
0x1738   : > { %5198 = vmatpush1.bf16.msra.mxu0 %v7230_v21  ;;  %5241 = vmatpush1.bf16.msra.mxu1 %v7232_v18  ;;  %v4373_v21 = vld [vmem:[#allocation16 + $0x290] sm:$0xff] }
0x1739   : > { %5199 = vmatprep.subr.bf16.mxu0 %v7223_v4  ;;  %5242 = vmatprep.subr.bf16.mxu1 %v7225_v5  ;;  %v4377_v18 = vld [vmem:[#allocation16 + $0x2b0] sm:$0xff]  ;;  %v4374_v4 = vld [vmem:[#allocation16 + $0x298] sm:$0xff] }
0x173a   : > { %v4378_v5 = vld [vmem:[#allocation16 + $0x2b8] sm:$0xff]  ;;  %v7295_v17 = vcombine.high %v4373_v21, %v4377_v18  ;;  %v7294_v11 = vcombine.low %v4373_v21, %v4377_v18  ;;  %v8113_v18 = vld [vmem:[#allocation17 + $0x4] ss:$8 sps:$4 sm:$0xff]  }
0x173b   : > { %v7297_v6 = vcombine.high %v4374_v4, %v4378_v5  ;;  %v7296_v32 = vcombine.low %v4374_v4, %v4378_v5  ;;  %v8084_v54 = vld [vmem:[#allocation17 + $0x150] ss:$8 sps:$4 sm:$0xff]   ;;  %v8116_v4 = vld [vmem:[#allocation17 + $0x104] ss:$8 sps:$4 sm:$0xff]   ;;  %v8111_v5 = vld [vmem:[#allocation17] ss:$8 sps:$4 sm:$0xff]  }
0x173c   : > { %5200 = vmatpush1.bf16.msra.mxu0 %v7222_v25  ;;  %5243 = vmatpush1.bf16.msra.mxu1 %v7224_v33  ;;  %v4365_v25 = vld [vmem:[#allocation16 + $0x250] sm:$0xff] }
0x173d   : > { %5201 = vmatprep.subr.bf16.mxu0 %v7215_v47  ;;  %5244 = vmatprep.subr.bf16.mxu1 %v7217_v23  ;;  %v4369_v33 = vld [vmem:[#allocation16 + $0x270] sm:$0xff]  ;;  %v4366_v47 = vld [vmem:[#allocation16 + $0x258] sm:$0xff] }
0x173e   : > { %v4370_v23 = vld [vmem:[#allocation16 + $0x278] sm:$0xff]  ;;  %v7287_v34 = vcombine.high %v4365_v25, %v4369_v33  ;;  %v7286_v39 = vcombine.low %v4365_v25, %v4369_v33  ;;  %v8125_v33 = vld [vmem:[#allocation17 + $0xe4] ss:$8 sps:$4 sm:$0xff]  }
0x173f   : > { %v7289_v43 = vcombine.high %v4366_v47, %v4370_v23  ;;  %v7288_v36 = vcombine.low %v4366_v47, %v4370_v23  ;;  %v8096_v29 = vld [vmem:[#allocation17 + $0x130] ss:$8 sps:$4 sm:$0xff]   ;;  %v8128_v47 = vld [vmem:[#allocation17 + $0x1e4] ss:$8 sps:$4 sm:$0xff]   ;;  %v8123_v23 = vld [vmem:[#allocation17 + $0xe0] ss:$8 sps:$4 sm:$0xff]  }
0x1740   : > { %5202 = vmatpush1.bf16.msra.mxu0 %v7214_v57  ;;  %5245 = vmatpush1.bf16.msra.mxu1 %v7216_v30  ;;  %v4357_v57 = vld [vmem:[#allocation16 + $0x210] sm:$0xff] }
0x1741   : > { %5203 = vmatprep.subr.bf16.mxu0 %v7335_v24  ;;  %5246 = vmatprep.subr.bf16.mxu1 %v7337_v37  ;;  %v4361_v30 = vld [vmem:[#allocation16 + $0x230] sm:$0xff]  ;;  %v4358_v24 = vld [vmem:[#allocation16 + $0x218] sm:$0xff] }
0x1742   : > { %v4362_v37 = vld [vmem:[#allocation16 + $0x238] sm:$0xff]  ;;  %v7279_v58 = vcombine.high %v4357_v57, %v4361_v30 }
0x1743   : > { %v7281_v42 = vcombine.high %v4358_v24, %v4362_v37  ;;  %v8108_v21 = vld [vmem:[#allocation17 + $0x110] ss:$8 sps:$4 sm:$0xff]  }
0x1744   : > { %5204 = vmatpush2.bf16.msra.mxu0 %v7334_v49  ;;  %5247 = vmatpush2.bf16.msra.mxu1 %v7336_v12  ;;  %v7278_v49 = vcombine.low %v4357_v57, %v4361_v30  ;;  %v7280_v12 = vcombine.low %v4358_v24, %v4362_v37  ;;  %v8120_v25 = vld [vmem:[#allocation17 + $0x1f0] ss:$8 sps:$4 sm:$0xff]   ;;  %v8137_v30 = vld [vmem:[#allocation17 + $0xc4] ss:$8 sps:$4 sm:$0xff]   ;;  %v8135_v37 = vld [vmem:[#allocation17 + $0xc0] ss:$8 sps:$4 sm:$0xff]  }
0x1745   : > { %5205 = vmatprep.subr.bf16.mxu0 %v7327_v14  ;;  %5248 = vmatprep.subr.bf16.mxu1 %v7329_v38  ;;  %v8071_v14 = vld [vmem:[#allocation17 + $0x74] ss:$8 sps:$4 sm:$0xff]   ;;  %v8132_v57 = vld [vmem:[#allocation17 + $0x1d0] ss:$8 sps:$4 sm:$0xff]   ;;  %v8140_v24 = vld [vmem:[#allocation17 + $0x1c4] ss:$8 sps:$4 sm:$0xff]  }
0x1746   : > { %v8074_v38 = vld [vmem:[#allocation17 + $0x174] ss:$8 sps:$4 sm:$0xff]  }
0x1748   : > { %5206 = vmatpush2.bf16.msra.mxu0 %v7326_v51  ;;  %5249 = vmatpush2.bf16.msra.mxu1 %v7328_v3  ;;  %v8075_v51 = vld [vmem:[#allocation17 + $0x60] ss:$8 sps:$4 sm:$0xff]  }
0x1749   : > { %5207 = vmatprep.subr.bf16.mxu0 %v7319_v48  ;;  %5250 = vmatprep.subr.bf16.mxu1 %v7321_v52  ;;  %v8078_v3 = vld [vmem:[#allocation17 + $0x160] ss:$8 sps:$4 sm:$0xff]   ;;  %v8083_v48 = vld [vmem:[#allocation17 + $0x54] ss:$8 sps:$4 sm:$0xff]  }
0x174a   : > { %v8086_v52 = vld [vmem:[#allocation17 + $0x154] ss:$8 sps:$4 sm:$0xff]  }
0x174c   : > { %5208 = vmatpush2.bf16.msra.mxu0 %v7318_v60  ;;  %5251 = vmatpush2.bf16.msra.mxu1 %v7320_v55  ;;  %v8090_v60 = vld [vmem:[#allocation17 + $0x140] ss:$8 sps:$4 sm:$0xff]   ;;  %v8095_v55 = vld [vmem:[#allocation17 + $0x34] ss:$8 sps:$4 sm:$0xff]  }
0x174d   : > { %5209 = vmatprep.subr.bf16.mxu0 %v7311_v19  ;;  %5252 = vmatprep.subr.bf16.mxu1 %v7313_v0  ;;  %v8098_v19 = vld [vmem:[#allocation17 + $0x134] ss:$8 sps:$4 sm:$0xff]   ;;  %v8093_v0 = vld [vmem:[#allocation17 + $0x30] ss:$8 sps:$4 sm:$0xff]  }
0x1750   : > { %5210 = vmatpush2.bf16.msra.mxu0 %v7310_v2  ;;  %5253 = vmatpush2.bf16.msra.mxu1 %v7312_v61  ;;  %v8102_v2 = vld [vmem:[#allocation17 + $0x120] ss:$8 sps:$4 sm:$0xff]   ;;  %v8107_v61 = vld [vmem:[#allocation17 + $0x14] ss:$8 sps:$4 sm:$0xff]  }
0x1751   : > { %5211 = vmatprep.subr.bf16.mxu0 %v7303_v45  ;;  %5254 = vmatprep.subr.bf16.mxu1 %v7305_v59  ;;  %v8110_v45 = vld [vmem:[#allocation17 + $0x114] ss:$8 sps:$4 sm:$0xff]   ;;  %v8105_v59 = vld [vmem:[#allocation17 + $0x10] ss:$8 sps:$4 sm:$0xff]  }
0x1754   : > { %5212 = vmatpush2.bf16.msra.mxu0 %v7302_v16  ;;  %5255 = vmatpush2.bf16.msra.mxu1 %v7304_v13  ;;  %v8114_v16 = vld [vmem:[#allocation17 + $0x100] ss:$8 sps:$4 sm:$0xff]   ;;  %v8119_v13 = vld [vmem:[#allocation17 + $0xf4] ss:$8 sps:$4 sm:$0xff]  }
0x1755   : > { %5213 = vmatprep.subr.bf16.mxu0 %v7295_v17  ;;  %5256 = vmatprep.subr.bf16.mxu1 %v7297_v6  ;;  %v8122_v17 = vld [vmem:[#allocation17 + $0x1f4] ss:$8 sps:$4 sm:$0xff]   ;;  %v8117_v6 = vld [vmem:[#allocation17 + $0xf0] ss:$8 sps:$4 sm:$0xff]  }
0x1758   : > { %5214 = vmatpush2.bf16.msra.mxu0 %v7294_v11  ;;  %5257 = vmatpush2.bf16.msra.mxu1 %v7296_v32  ;;  %v8126_v11 = vld [vmem:[#allocation17 + $0x1e0] ss:$8 sps:$4 sm:$0xff]   ;;  %v8131_v32 = vld [vmem:[#allocation17 + $0xd4] ss:$8 sps:$4 sm:$0xff]  }
0x1759   : > { %5215 = vmatprep.subr.bf16.mxu0 %v7287_v34  ;;  %5258 = vmatprep.subr.bf16.mxu1 %v7289_v43  ;;  %v8134_v34 = vld [vmem:[#allocation17 + $0x1d4] ss:$8 sps:$4 sm:$0xff]   ;;  %v8129_v43 = vld [vmem:[#allocation17 + $0xd0] ss:$8 sps:$4 sm:$0xff]  }
0x175c   : > { %5216 = vmatpush2.bf16.msra.mxu0 %v7286_v39  ;;  %5259 = vmatpush2.bf16.msra.mxu1 %v7288_v36  ;;  %v8138_v39 = vld [vmem:[#allocation17 + $0x1c0] ss:$8 sps:$4 sm:$0xff]   ;;  %v8143_v36 = vld [vmem:[#allocation17 + $0xb4] ss:$8 sps:$4 sm:$0xff]  }
0x175d   : > { %5217 = vmatprep.subr.bf16.mxu0 %v7279_v58  ;;  %5260 = vmatprep.subr.bf16.mxu1 %v7281_v42  ;;  %v8146_v58 = vld [vmem:[#allocation17 + $0x1b4] ss:$8 sps:$4 sm:$0xff]   ;;  %v8141_v42 = vld [vmem:[#allocation17 + $0xb0] ss:$8 sps:$4 sm:$0xff]  }
0x1760   : > { %5218 = vmatpush2.bf16.msra.mxu0 %v7278_v49  ;;  %5261 = vmatpush2.bf16.msra.mxu1 %v7280_v12  ;;  %v8144_v49 = vld [vmem:[#allocation17 + $0x1b0] ss:$8 sps:$4 sm:$0xff]   ;;  %v8149_v12 = vld [vmem:[#allocation17 + $0xa4] ss:$8 sps:$4 sm:$0xff]  }
0x1761   : > { %6493 = vmatprep.subr.bf16.mxu0 %v8071_v14  ;;  %6536 = vmatprep.subr.bf16.mxu1 %v8074_v38  ;;  %v8152_v14 = vld [vmem:[#allocation17 + $0x1a4] ss:$8 sps:$4 sm:$0xff]   ;;  %v8147_v38 = vld [vmem:[#allocation17 + $0xa0] ss:$8 sps:$4 sm:$0xff]  }
0x1763   : > { %5220 = vmatmul.mubr.bf16.vlgmr.msra.gmra.mxu0 %v9710_v46  ;;  %5263 = vmatmul.mubr.bf16.vlgmr.msra.gmra.mxu1 %v9710_v46  ;;  %v8092_v46 = vld [vmem:[#allocation17 + $0x144] ss:$8 sps:$4 sm:$0xff]  }
0x1764   : > { %6494 = vmatpush1.bf16.msra.mxu0 %v8069_v10  ;;  %6537 = vmatpush1.bf16.msra.mxu1 %v8072_v35  ;;  %v8150_v10 = vld [vmem:[#allocation17 + $0x1a0] ss:$8 sps:$4 sm:$0xff]   ;;  %v8155_v35 = vld [vmem:[#allocation17 + $0x94] ss:$8 sps:$4 sm:$0xff]  }
0x1765   : > { %6495 = vmatprep.subr.bf16.mxu0 %v8077_v44  ;;  %6538 = vmatprep.subr.bf16.mxu1 %v8080_v31  ;;  %v8158_v44 = vld [vmem:[#allocation17 + $0x194] ss:$8 sps:$4 sm:$0xff]   ;;  %v8153_v31 = vld [vmem:[#allocation17 + $0x90] ss:$8 sps:$4 sm:$0xff]  }
0x1768   : > { %6496 = vmatpush1.bf16.msra.mxu0 %v8075_v51  ;;  %6539 = vmatpush1.bf16.msra.mxu1 %v8078_v3  ;;  %v8156_v51 = vld [vmem:[#allocation17 + $0x190] ss:$8 sps:$4 sm:$0xff]   ;;  %v8161_v3 = vld [vmem:[#allocation17 + $0x84] ss:$8 sps:$4 sm:$0xff]  }
0x1769   : > { %6497 = vmatprep.subr.bf16.mxu0 %v8083_v48  ;;  %6540 = vmatprep.subr.bf16.mxu1 %v8086_v52  ;;  %v8164_v48 = vld [vmem:[#allocation17 + $0x184] ss:$8 sps:$4 sm:$0xff]   ;;  %v8159_v52 = vld [vmem:[#allocation17 + $0x80] ss:$8 sps:$4 sm:$0xff]  }
0x176c   : > { %6498 = vmatpush1.bf16.msra.mxu0 %v8081_v63  ;;  %6541 = vmatpush1.bf16.msra.mxu1 %v8084_v54  ;;  %v8162_v63 = vld [vmem:[#allocation17 + $0x180] ss:$8 sps:$4 sm:$0xff]   ;;  %v8167_v54 = vld [vmem:[#allocation17 + $0x274] ss:$8 sps:$4 sm:$0xff]  }
0x176d   : > { %6499 = vmatprep.subr.bf16.mxu0 %v8089_v56  ;;  %6542 = vmatprep.subr.bf16.mxu1 %v8092_v46  ;;  %v8170_v56 = vld [vmem:[#allocation17 + $0x374] ss:$8 sps:$4 sm:$0xff]  }
0x176e   : > { %v9719_v46 = vld [vmem:[%s10235_s29] sm:$0xff] }
0x1770   : > { %6500 = vmatpush1.bf16.msra.mxu0 %v8087_v50  ;;  %6543 = vmatpush1.bf16.msra.mxu1 %v8090_v60  ;;  %v4424_v50 = vrot.slane %v9719_v46, %v9290_v15  ;;  %v4432_v60 = vrot.slane %v9719_v46, %v952_v9 }
0x1771   : > { %6501 = vmatprep.subr.bf16.mxu0 %v8095_v55  ;;  %6544 = vmatprep.subr.bf16.mxu1 %v8098_v19 }
0x1774   : > { %6502 = vmatpush1.bf16.msra.mxu0 %v8093_v0  ;;  %6545 = vmatpush1.bf16.msra.mxu1 %v8096_v29  ;;  %v4428_v0 = vrot.slane %v9719_v46, %v9406_v53  ;;  %v4436_v29 = vrot.slane %v9719_v46, %v956_v40 }
0x1775   : > { %6503 = vmatprep.subr.bf16.mxu0 %v8101_v1  ;;  %6546 = vmatprep.subr.bf16.mxu1 %v8104_v62 }
0x1778   : > { %6504 = vmatpush1.bf16.msra.mxu0 %v8099_v26  ;;  %6547 = vmatpush1.bf16.msra.mxu1 %v8102_v2 }
0x1779   : > { %6505 = vmatprep.subr.bf16.mxu0 %v8107_v61  ;;  %6548 = vmatprep.subr.bf16.mxu1 %v8110_v45 }
0x177c   : > { %6506 = vmatpush1.bf16.msra.mxu0 %v8105_v59  ;;  %6549 = vmatpush1.bf16.msra.mxu1 %v8108_v21 }
0x177d   : > { %6507 = vmatprep.subr.bf16.mxu0 %v8113_v18  ;;  %6550 = vmatprep.subr.bf16.mxu1 %v8116_v4 }
0x1780   : > { %6508 = vmatpush1.bf16.msra.mxu0 %v8111_v5  ;;  %6551 = vmatpush1.bf16.msra.mxu1 %v8114_v16 }
0x1781   : > { %6509 = vmatprep.subr.bf16.mxu0 %v8119_v13  ;;  %6552 = vmatprep.subr.bf16.mxu1 %v8122_v17 }
0x1784   : > { %6510 = vmatpush2.bf16.msra.mxu0 %v8117_v6  ;;  %6553 = vmatpush2.bf16.msra.mxu1 %v8120_v25 }
0x1785   : > { %6511 = vmatprep.subr.bf16.mxu0 %v8125_v33  ;;  %6554 = vmatprep.subr.bf16.mxu1 %v8128_v47 }
0x1788   : > { %6512 = vmatpush2.bf16.msra.mxu0 %v8123_v23  ;;  %6555 = vmatpush2.bf16.msra.mxu1 %v8126_v11 }
0x1789   : > { %6513 = vmatprep.subr.bf16.mxu0 %v8131_v32  ;;  %6556 = vmatprep.subr.bf16.mxu1 %v8134_v34 }
0x178c   : > { %6514 = vmatpush2.bf16.msra.mxu0 %v8129_v43  ;;  %6557 = vmatpush2.bf16.msra.mxu1 %v8132_v57 }
0x178d   : > { %6515 = vmatprep.subr.bf16.mxu0 %v8137_v30  ;;  %6558 = vmatprep.subr.bf16.mxu1 %v8140_v24 }
0x1790   : > { %6516 = vmatpush2.bf16.msra.mxu0 %v8135_v37  ;;  %6559 = vmatpush2.bf16.msra.mxu1 %v8138_v39 }
0x1791   : > { %6517 = vmatprep.subr.bf16.mxu0 %v8143_v36  ;;  %6560 = vmatprep.subr.bf16.mxu1 %v8146_v58 }
0x1794   : > { %6518 = vmatpush2.bf16.msra.mxu0 %v8141_v42  ;;  %6561 = vmatpush2.bf16.msra.mxu1 %v8144_v49 }
0x1795   : > { %6519 = vmatprep.subr.bf16.mxu0 %v8149_v12  ;;  %6562 = vmatprep.subr.bf16.mxu1 %v8152_v14 }
0x1798   : > { %6520 = vmatpush2.bf16.msra.mxu0 %v8147_v38  ;;  %6563 = vmatpush2.bf16.msra.mxu1 %v8150_v10 }
0x1799   : > { %6521 = vmatprep.subr.bf16.mxu0 %v8155_v35  ;;  %6564 = vmatprep.subr.bf16.mxu1 %v8158_v44 }
0x179c   : > { %6522 = vmatpush2.bf16.msra.mxu0 %v8153_v31  ;;  %6565 = vmatpush2.bf16.msra.mxu1 %v8156_v51 }
0x179d   : > { %6523 = vmatprep.subr.bf16.mxu0 %v8161_v3  ;;  %6566 = vmatprep.subr.bf16.mxu1 %v8164_v48 }
0x17a0   : > { %6524 = vmatpush2.bf16.msra.mxu0 %v8159_v52  ;;  %6567 = vmatpush2.bf16.msra.mxu1 %v8162_v63 }
0x17a1   : > { %6579 = vmatprep.subr.bf16.mxu0 %v8167_v54  ;;  %6622 = vmatprep.subr.bf16.mxu1 %v8170_v56 }
0x17e3   : > { %v5135_v55 = vpop.f32.mrf.mxu0  ;;  %v5178_v19 = vpop.f32.mrf.mxu1 }
0x17e4   : > { %v9731_v1 = vadd.f32 %v5135_v55, %v4424_v50  ;;  %v9733_v62 = vadd.f32 %v5178_v19, %v4432_v60 }
0x17e5   : > { %v5137_v26 = vpop.f32.mrf.mxu0  ;;  %v5180_v2 = vpop.f32.mrf.mxu1 }
0x17e6   : > { %v9736_v61 = vmul.f32 0.70710677, %v9731_v1  ;;  %v9739_v9 = vmul.f32 0.70710677, %v9733_v62  ;;  %v9741_v45 = vadd.f32 %v5137_v26, %v4428_v0  ;;  %v9743_v59 = vadd.f32 %v5180_v2, %v4436_v29 }
0x17e7   : > { %v5139_v13 = vpop.f32.mrf.mxu0  ;;  %v5182_v32 = vpop.f32.mrf.mxu1 }
0x17e8   : > { %v5289_v21 = vand.u32 2147483647, %v9736_v61  ;;  %v5291_v40 = vand.u32 2147483647, %v9739_v9  ;;  %v9748_v18 = vmul.f32 0.70710677, %v9741_v45  ;;  %v9758_v11 = vadd.f32 %v5139_v13, %v4424_v50 }
0x17e9   : > { %v9751_v4 = vmul.f32 0.70710677, %v9743_v59  ;;  %v5141_v34 = vpop.f32.mrf.mxu0  ;;  %v9763_v24 = vadd.f32 %v5182_v32, %v4432_v60  ;;  %v5184_v42 = vpop.f32.mrf.mxu1  ;;  %vm5609_vm3 = vcmp.ge.f32.partialorder %v9736_v61, 0.0  ;;  %vm5611_vm5 = vcmp.ge.f32.partialorder %v9739_v9, 0.0 }
0x17ea   : > { %v5305_v5 = vmul.f32 0.3275911, %v5289_v21  ;;  %v5307_v16 = vmul.f32 0.3275911, %v5291_v40  ;;  %v5290_v17 = vand.u32 2147483647, %v9748_v18  ;;  %v9765_v37 = vadd.f32 %v5141_v34, %v4428_v0 }
0x17eb   : > { %v9755_v6 = vand.u32 2147483647, %v9751_v4  ;;  %v9761_v30 = vmul.f32 0.70710677, %v9758_v11  ;;  %v9769_v36 = vmul.f32 0.70710677, %v9763_v24  ;;  %v9776_v10 = vadd.f32 %v5184_v42, %v4436_v29 }
0x17ec   : > { %v5321_v25 = vadd.f32 1.0, %v5305_v5  ;;  %v5323_v33 = vadd.f32 1.0, %v5307_v16  ;;  %v5306_v47 = vmul.f32 0.3275911, %v5290_v17  ;;  %v9772_v58 = vmul.f32 0.70710677, %v9765_v37 }
0x17ed   : > { %v5308_v23 = vmul.f32 0.3275911, %v9755_v6  ;;  %v5297_v39 = vand.u32 2147483647, %v9761_v30  ;;  %v5299_v12 = vand.u32 2147483647, %v9769_v36 }
0x17ee   : > { %8333 = vrcp.f32 %v5321_v25  ;;  %v5322_v43 = vadd.f32 1.0, %v5306_v47  ;;  %v5298_v14 = vand.u32 2147483647, %v9772_v58  ;;  %v5513_v31 = vsub.f32 0.0, %v5289_v21 }
0x17ef   : > { %8335 = vrcp.f32 %v5323_v33  ;;  %v5324_v57 = vadd.f32 1.0, %v5308_v23  ;;  %v5313_v49 = vmul.f32 0.3275911, %v5297_v39  ;;  %v5315_v35 = vmul.f32 0.3275911, %v5299_v12 }
0x17f0   : > { %8337 = vrcp.f32 %v5322_v43  ;;  %v5314_v44 = vmul.f32 0.3275911, %v5298_v14  ;;  %v9779_v51 = vmul.f32 0.70710677, %v9776_v10  ;;  %v5514_v3 = vsub.f32 0.0, %v5290_v17 }
0x17f1   : > { %8339 = vrcp.f32 %v5324_v57  ;;  %v5329_v38 = vadd.f32 1.0, %v5313_v49  ;;  %v5331_v48 = vadd.f32 1.0, %v5315_v35  ;;  %v5515_v56 = vsub.f32 0.0, %v5291_v40 }
0x17f2   : > { %v5330_v52 = vadd.f32 1.0, %v5314_v44  ;;  %v9782_v63 = vand.u32 2147483647, %v9779_v51  ;;  %v5529_v55 = vmul.f32 %v5513_v31, %v5289_v21  ;;  %v5530_v29 = vmul.f32 %v5514_v3, %v5290_v17 }
0x17f3   : > { %8341 = vrcp.f32 %v5329_v38  ;;  %v5521_v26 = vsub.f32 0.0, %v5297_v39  ;;  %v5531_v25 = vmul.f32 %v5515_v56, %v5291_v40  ;;  %v5516_v33 = vsub.f32 0.0, %v9755_v6 }
0x17f4   : > { %8343 = vrcp.f32 %v5331_v48  ;;  %v5316_v19 = vmul.f32 0.3275911, %v9782_v63  ;;  %v5545_v23 = vmul.f32 1.442695, %v5529_v55  ;;  %v5547_v17 = vmul.f32 1.442695, %v5530_v29 }
0x17f5   : > { %8345 = vrcp.f32 %v5330_v52  ;;  %v5537_v43 = vmul.f32 %v5521_v26, %v5297_v39  ;;  %v5523_v57 = vsub.f32 0.0, %v5299_v12  ;;  %v5549_v35 = vmul.f32 1.442695, %v5531_v25 }
0x17f6   : > { %v5332_v5 = vadd.f32 1.0, %v5316_v19  ;;  %v5532_v44 = vmul.f32 %v5516_v33, %v9755_v6  ;;  %v5522_v31 = vsub.f32 0.0, %v5298_v14  ;;  %vm5617_vm4 = vcmp.ge.f32.partialorder %v9761_v30, 0.0 }
0x17f7   : > { %v5539_v55 = vmul.f32 %v5523_v57, %v5299_v12  ;;  %vm5610_vm6 = vcmp.ge.f32.partialorder %v9748_v18, 0.0  ;;  %vm5612_vm7 = vcmp.ge.f32.partialorder %v9751_v4, 0.0  ;;  %vm5618_vm8 = vcmp.ge.f32.partialorder %v9772_v58, 0.0 }
0x17f8   : > { %8347 = vrcp.f32 %v5332_v5  ;;  %v5551_v26 = vmul.f32 1.442695, %v5532_v44  ;;  %vm5619_vm9 = vcmp.ge.f32.partialorder %v9769_v36, 0.0  ;;  %vm5620_vm10 = vcmp.ge.f32.partialorder %v9779_v51, 0.0 }
0x17f9   : > { %8349 = vpow2.f32 %v5545_v23 }
0x17fa   : > { %8351 = vpow2.f32 %v5547_v17 }
0x17fb   : > { %v9784_v54 = vpop.eup %8333  ;;  %8353 = vpow2.f32 %v5549_v35 }
0x17fc   : > { %v9786_v50 = vpop.eup %8335  ;;  %v5369_v60 = vmul.f32 1.0614054, %v9784_v54 }
0x17fd   : > { %v5371_v0 = vmul.f32 1.0614054, %v9786_v50  ;;  %v9791_v16 = vpop.eup %8337 }
0x17fe   : > { %v5385_v2 = vadd.f32 -1.4531521, %v5369_v60  ;;  %v5370_v21 = vmul.f32 1.0614054, %v9791_v16  ;;  %v9796_v32 = vpop.eup %8339  ;;  %v5561_v60 = vmul.f32 1.442695, %v5537_v43 }
0x17ff   : > { %v5387_v13 = vadd.f32 -1.4531521, %v5371_v0  ;;  %v5372_v38 = vmul.f32 1.0614054, %v9796_v32 }
0x1800   : > { %v5401_v47 = vmul.f32 %v9784_v54, %v5385_v2  ;;  %v5386_v49 = vadd.f32 -1.4531521, %v5370_v21  ;;  %v9803_v56 = vpop.eup %8341  ;;  %v5538_v2 = vmul.f32 %v5522_v31, %v5298_v14  ;;  %8355 = vpow2.f32 %v5561_v60 }
0x1801   : > { %v5403_v34 = vmul.f32 %v9786_v50, %v5387_v13  ;;  %v5388_v52 = vadd.f32 -1.4531521, %v5372_v38  ;;  %v5377_v6 = vmul.f32 1.0614054, %v9803_v56  ;;  %v9808_v5 = vpop.eup %8343  ;;  %v5565_v21 = vmul.f32 1.442695, %v5539_v55 }
0x1802   : > { %v5417_v42 = vadd.f32 1.4214138, %v5401_v47  ;;  %v5402_v48 = vmul.f32 %v9791_v16, %v5386_v49  ;;  %v9812_v23 = vpop.eup %8345  ;;  %v5379_v12 = vmul.f32 1.0614054, %v9808_v5  ;;  %8357 = vpow2.f32 %v5551_v26 }
0x1803   : > { %v5419_v40 = vadd.f32 1.4214138, %v5403_v34  ;;  %v5404_v29 = vmul.f32 %v9796_v32, %v5388_v52  ;;  %v5393_v47 = vadd.f32 -1.4531521, %v5377_v6  ;;  %v5524_v34 = vsub.f32 0.0, %v9782_v63 }
0x1804   : > { %v5433_v3 = vmul.f32 %v9784_v54, %v5417_v42  ;;  %v5418_v0 = vadd.f32 1.4214138, %v5402_v48  ;;  %v5395_v42 = vadd.f32 -1.4531521, %v5379_v12  ;;  %v5378_v49 = vmul.f32 1.0614054, %v9812_v23 }
0x1805   : > { %v5435_v39 = vmul.f32 %v9786_v50, %v5419_v40  ;;  %v5420_v33 = vadd.f32 1.4214138, %v5404_v29  ;;  %v5409_v57 = vmul.f32 %v9803_v56, %v5393_v47  ;;  %v5563_v38 = vmul.f32 1.442695, %v5538_v2 }
0x1806   : > { %v5449_v19 = vadd.f32 -0.28449672, %v5433_v3  ;;  %v5434_v25 = vmul.f32 %v9791_v16, %v5418_v0  ;;  %v9820_v3 = vpop.eup %8347  ;;  %v5411_v48 = vmul.f32 %v9808_v5, %v5395_v42  ;;  %8359 = vpow2.f32 %v5565_v21 }
0x1807   : > { %v5451_v17 = vadd.f32 -0.28449672, %v5435_v39  ;;  %v5436_v14 = vmul.f32 %v9796_v32, %v5420_v33  ;;  %v5425_v31 = vadd.f32 1.4214138, %v5409_v57  ;;  %v5394_v52 = vadd.f32 -1.4531521, %v5378_v49  ;;  %v8350_v33 = vpop.eup %8349 }
0x1808   : > { %v5465_v13 = vmul.f32 %v9784_v54, %v5449_v19  ;;  %v5450_v43 = vadd.f32 -0.28449672, %v5434_v25  ;;  %v5540_v39 = vmul.f32 %v5524_v34, %v9782_v63  ;;  %v5427_v29 = vadd.f32 1.4214138, %v5411_v48  ;;  %v8352_v34 = vpop.eup %8351 }
0x1809   : > { %v5452_v44 = vadd.f32 -0.28449672, %v5436_v14  ;;  %v5467_v60 = vmul.f32 %v9786_v50, %v5451_v17  ;;  %v5441_v0 = vmul.f32 %v9803_v56, %v5425_v31  ;;  %v5410_v6 = vmul.f32 %v9812_v23, %v5394_v52 }
0x180a   : > { %v5481_v40 = vadd.f32 0.2548296, %v5465_v13  ;;  %v5466_v35 = vmul.f32 %v9791_v16, %v5450_v43  ;;  %8361 = vpow2.f32 %v5563_v38  ;;  %v5380_v26 = vmul.f32 1.0614054, %v9820_v3  ;;  %v8354_v38 = vpop.eup %8353 }
0x180b   : > { %v5468_v19 = vmul.f32 %v9796_v32, %v5452_v44  ;;  %v5457_v25 = vadd.f32 -0.28449672, %v5441_v0  ;;  %v5443_v47 = vmul.f32 %v9808_v5, %v5427_v29  ;;  %v5426_v12 = vadd.f32 1.4214138, %v5410_v6 }
0x180c   : > { %v5482_v55 = vadd.f32 0.2548296, %v5466_v35  ;;  %v5497_v2 = vmul.f32 %v9784_v54, %v5481_v40  ;;  %v5396_v21 = vadd.f32 -1.4531521, %v5380_v26  ;;  %v5483_v17 = vadd.f32 0.2548296, %v5467_v60 }
0x180d   : > { %v5484_v63 = vadd.f32 0.2548296, %v5468_v19  ;;  %v5473_v43 = vmul.f32 %v9803_v56, %v5457_v25  ;;  %v5567_v14 = vmul.f32 1.442695, %v5540_v39  ;;  %v5459_v42 = vadd.f32 -0.28449672, %v5443_v47  ;;  %v8356_v39 = vpop.eup %8355 }
0x180e   : > { %v5498_v13 = vmul.f32 %v9791_v16, %v5482_v55  ;;  %v5442_v49 = vmul.f32 %v9812_v23, %v5426_v12  ;;  %v5412_v54 = vmul.f32 %v9820_v3, %v5396_v21  ;;  %v5577_v16 = vmul.f32 %v8350_v33, %v5497_v2 }
0x180f   : > { %v5489_v40 = vadd.f32 0.2548296, %v5473_v43  ;;  %v4447_v35 = vsub.s32 6, %v9276_v8  ;;  %v5500_v44 = vmul.f32 %v9796_v32, %v5484_v63  ;;  %v5475_v31 = vmul.f32 %v9808_v5, %v5459_v42  ;;  %v8358_v26 = vpop.eup %8357 }
0x1810   : > { %v5578_v57 = vmul.f32 %v8352_v34, %v5498_v13  ;;  %v5458_v48 = vadd.f32 -0.28449672, %v5442_v49  ;;  %v9840_v52 = vrot.slane %v9719_v46, %v9319_v20  ;;  %v5499_v60 = vmul.f32 %v9786_v50, %v5483_v17 }
0x1811   : > { %v5505_v55 = vmul.f32 %v9803_v56, %v5489_v40  ;;  %8363 = vpow2.f32 %v5567_v14  ;;  %v4451_v19 = vsub.s32 7, %v9276_v8  ;;  %v5491_v29 = vadd.f32 0.2548296, %v5475_v31 }
0x1812   : > { %v5594_v0 = vsub.f32 1.0, %v5578_v57  ;;  %v5474_v6 = vmul.f32 %v9812_v23, %v5458_v48  ;;  %v5428_v32 = vadd.f32 1.4214138, %v5412_v54  ;;  %v5593_v2 = vsub.f32 1.0, %v5577_v16 }
0x1813   : > { %v5585_v13 = vmul.f32 %v8356_v39, %v5505_v55  ;;  %v9847_v25 = vrot.slane %v9719_v46, %v4447_v35  ;;  %v9851_v20 = vrot.slane %v9719_v46, %v9446_v22  ;;  %v5580_v50 = vmul.f32 %v8358_v26, %v5500_v44  ;;  %v8360_v63 = vpop.eup %8359 }
0x1814   : > { %v5507_v56 = vmul.f32 %v9808_v5, %v5491_v29  ;;  %v5490_v33 = vadd.f32 0.2548296, %v5474_v6  ;;  %v5444_v8 = vmul.f32 %v9820_v3, %v5428_v32  ;;  %v5657_v47 = vmul.f32 0.5, %v9731_v1 }
0x1815   : > { %v5601_v12 = vsub.f32 1.0, %v5585_v13  ;;  %v9858_v21 = vrot.slane %v9719_v46, %v4451_v19  ;;  %v5579_v34 = vmul.f32 %v8354_v38, %v5499_v60  ;;  %v5626_v17 = vsub.f32 0.0, %v5594_v0 }
0x1816   : > { %v5587_v43 = vmul.f32 %v8360_v63, %v5507_v56  ;;  %v5506_v22 = vmul.f32 %v9812_v23, %v5490_v33  ;;  %v5625_v57 = vsub.f32 0.0, %v5593_v2  ;;  %v5658_v5 = vmul.f32 0.5, %v9741_v45 }
0x1817   : > { %v8362_v14 = vpop.eup %8361  ;;  %v5633_v42 = vsub.f32 0.0, %v5601_v12  ;;  %v5460_v49 = vadd.f32 -0.28449672, %v5444_v8  ;;  %v5596_v54 = vsub.f32 1.0, %v5580_v50  ;;  %v9866_v46 = vmul.f32 0.5, %v9743_v59 }
0x1818   : > { %v5603_v16 = vsub.f32 1.0, %v5587_v43  ;;  %v5586_v1 = vmul.f32 %v8362_v14, %v5506_v22  ;;  %v5595_v40 = vsub.f32 1.0, %v5579_v34  ;;  %v5642_v35 = vsel %vm5610_vm6, %v5594_v0, %v5626_v17  ;;  %v8165_v17 = vld [vmem:[#allocation17 + $0x270] ss:$8 sps:$4 sm:$0xff]  }
0x1819   : > { %v5649_v38 = vsel %vm5617_vm4, %v5601_v12, %v5633_v42  ;;  %v5476_v23 = vmul.f32 %v9820_v3, %v5460_v49  ;;  %v5641_v30 = vsel %vm5609_vm3, %v5593_v2, %v5625_v57  ;;  %v5665_v44 = vmul.f32 0.5, %v9758_v11  ;;  %v8173_v49 = vld [vmem:[#allocation17 + $0x264] ss:$8 sps:$4 sm:$0xff]  }
0x181a   : > { %v5602_v45 = vsub.f32 1.0, %v5586_v1  ;;  %v5667_v31 = vmul.f32 0.5, %v9763_v24  ;;  %v5628_v18 = vsub.f32 0.0, %v5596_v54  ;;  %v5681_v39 = vadd.f32 1.0, %v5649_v38 }
0x181b   : > { %v5492_v48 = vadd.f32 0.2548296, %v5476_v23  ;;  %v5635_v59 = vsub.f32 0.0, %v5603_v16  ;;  %v5674_v55 = vadd.f32 1.0, %v5642_v35  ;;  %v5666_v19 = vmul.f32 0.5, %v9765_v37 }
0x181c   : > { %v5634_v60 = vsub.f32 0.0, %v5602_v45  ;;  %v5673_v6 = vadd.f32 1.0, %v5641_v30  ;;  %v5627_v61 = vsub.f32 0.0, %v5595_v40  ;;  %v5644_v37 = vsel %vm5612_vm7, %v5596_v54, %v5628_v18 }
0x181d   : > { %v5508_v0 = vmul.f32 %v9820_v3, %v5492_v48  ;;  %v5697_v58 = vmul.f32 %v5681_v39, %v5665_v44  ;;  %v5651_v3 = vsel %vm5619_vm9, %v5603_v16, %v5635_v59  ;;  %v5690_v36 = vmul.f32 %v5674_v55, %v5658_v5  ;;  %v8171_v59 = vld [vmem:[#allocation17 + $0x260] ss:$8 sps:$4 sm:$0xff]  }
0x181e   : > { %v8364_v29 = vpop.eup %8363  ;;  %v5650_v11 = vsel %vm5618_vm8, %v5602_v45, %v5634_v60  ;;  %v5689_v12 = vmul.f32 %v5673_v6, %v5657_v47  ;;  %v5643_v34 = vsel %vm5611_vm5, %v5595_v40, %v5627_v61  ;;  %v5683_v14 = vadd.f32 1.0, %v5651_v3  ;;  %v8179_v6 = vld [vmem:[#allocation17 + $0x254] ss:$8 sps:$4 sm:$0xff]  }
0x181f   : > { %v5682_v26 = vadd.f32 1.0, %v5650_v11  ;;  %v5588_v2 = vmul.f32 %v8364_v29, %v5508_v0  ;;  %v5676_v54 = vadd.f32 1.0, %v5644_v37  ;;  %v5675_v1 = vadd.f32 1.0, %v5643_v34  ;;  %v8168_v11 = vld [vmem:[#allocation17 + $0x370] ss:$8 sps:$4 sm:$0xff]  }
0x1820   : > { %v5705_v47 = vpack.c.bf16 %v5697_v58, %v5689_v12  ;;  %v5668_v35 = vmul.f32 0.5, %v9776_v10  ;;  %v5659_v48 = vmul.f32 0.5, %v9733_v62  ;;  %v5699_v18 = vmul.f32 %v5683_v14, %v5667_v31  ;;  %v8177_v37 = vld [vmem:[#allocation17 + $0x250] ss:$8 sps:$4 sm:$0xff]  }
0x1821   : > { %v5698_v33 = vmul.f32 %v5682_v26, %v5666_v19  ;;  %v5604_v8 = vsub.f32 1.0, %v5588_v2  ;;  %v5692_v55 = vmul.f32 %v5676_v54, %v9866_v46  ;;  %v8176_v46 = vld [vmem:[#allocation17 + $0x364] ss:$8 sps:$4 sm:$0xff]  }
0x1822   : > { %v5691_v61 = vmul.f32 %v5675_v1, %v5659_v48  ;;  %v8188_v54 = vld [vmem:[#allocation17 + $0x344] ss:$8 sps:$4 sm:$0xff]  }
0x1823   : > { %v5221_v32 = vpop.f32.mrf.mxu0  ;;  %v5264_v24 = vpop.f32.mrf.mxu1  ;;  %v5636_v57 = vsub.f32 0.0, %v5604_v8  ;;  %v5706_v5 = vpack.c.bf16 %v5698_v33, %v5690_v36  ;;  %v8174_v33 = vld [vmem:[#allocation17 + $0x360] ss:$8 sps:$4 sm:$0xff]  }
0x1824   : > { %v9880_v13 = vadd.f32 %v5221_v32, %v9840_v52  ;;  %v9885_v50 = vadd.f32 %v5264_v24, %v9847_v25  ;;  %v5707_v24 = vpack.c.bf16 %v5699_v18, %v5691_v61 }
0x1825   : > { %v5223_v56 = vpop.f32.mrf.mxu0  ;;  %v5266_v22 = vpop.f32.mrf.mxu1  ;;  %v5652_v38 = vsel %vm5620_vm10, %v5604_v8, %v5636_v57  ;;  %6525 = vmatprep.mubr.bf16.mxu0 %v5706_v5 }
0x1826   : > { %v9888_v63 = vmul.f32 0.70710677, %v9880_v13  ;;  %v9893_v4 = vmul.f32 0.70710677, %v9885_v50  ;;  %v9896_v43 = vadd.f32 %v5223_v56, %v9851_v20  ;;  %v9911_v40 = vadd.f32 %v5266_v22, %v9858_v21  ;;  %6526 = vmatmul.mubr.bf16.vlgmr.msra.gmra.mxu0 %v5705_v47  ;;  %v8185_v56 = vld [vmem:[#allocation17 + $0x244] ss:$8 sps:$4 sm:$0xff]  }
0x1827   : > { %v5684_v45 = vadd.f32 1.0, %v5652_v38  ;;  %6580 = vmatpush1.bf16.msra.mxu0 %v8165_v17  ;;  %v5225_v60 = vpop.f32.mrf.mxu0  ;;  %v5268_v29 = vpop.f32.mrf.mxu1  ;;  %v8182_v17 = vld [vmem:[#allocation17 + $0x354] ss:$8 sps:$4 sm:$0xff]   ;;  %v8183_v22 = vld [vmem:[#allocation17 + $0x240] ss:$8 sps:$4 sm:$0xff]  }
0x1828   : > { %v9899_v42 = vand.u32 2147483647, %v9888_v63  ;;  %v9902_v9 = vand.u32 2147483647, %v9893_v4  ;;  %v9905_v16 = vmul.f32 0.70710677, %v9896_v43  ;;  %6581 = vmatprep.subr.bf16.mxu0 %v8173_v49  ;;  %v9929_v58 = vadd.f32 %v5225_v60, %v9840_v52 }
0x1829   : > { %v9920_v39 = vmul.f32 0.70710677, %v9911_v40  ;;  %v5700_v10 = vmul.f32 %v5684_v45, %v5668_v35  ;;  %v5227_v2 = vpop.f32.mrf.mxu0  ;;  %v5270_v3 = vpop.f32.mrf.mxu1  ;;  %v9935_v12 = vadd.f32 %v5268_v29, %v9847_v25  ;;  %v8191_v25 = vld [vmem:[#allocation17 + $0x234] ss:$8 sps:$4 sm:$0xff]   ;;  %v8189_v38 = vld [vmem:[#allocation17 + $0x230] ss:$8 sps:$4 sm:$0xff]  }
0x182a   : > { %v5309_v23 = vmul.f32 0.3275911, %v9899_v42  ;;  %v5311_v30 = vmul.f32 0.3275911, %v9902_v9  ;;  %v9916_v44 = vand.u32 2147483647, %v9905_v16  ;;  %v9938_v34 = vadd.f32 %v5227_v2, %v9851_v20 }
0x182b   : > { %v9925_v62 = vand.u32 2147483647, %v9920_v39  ;;  %v5708_v31 = vpack.c.bf16 %v5700_v10, %v5692_v55  ;;  %6582 = vmatpush1.bf16.msra.mxu0 %v8171_v59  ;;  %v9932_v8 = vmul.f32 0.70710677, %v9929_v58  ;;  %v9941_v52 = vadd.f32 %v5270_v3, %v9858_v21  ;;  %v8180_v20 = vld [vmem:[#allocation17 + $0x350] ss:$8 sps:$4 sm:$0xff]  }
0x182c   : > { %v5325_v51 = vadd.f32 1.0, %v5309_v23  ;;  %v5327_v19 = vadd.f32 1.0, %v5311_v30  ;;  %v5310_v0 = vmul.f32 0.3275911, %v9916_v44  ;;  %6583 = vmatprep.subr.bf16.mxu0 %v8179_v6  ;;  %v9947_v57 = vmul.f32 0.70710677, %v9935_v12 }
0x182d   : > { %v5312_v26 = vmul.f32 0.3275911, %v9925_v62  ;;  %6568 = vmatprep.mubr.bf16.mxu1 %v5708_v31  ;;  %v9944_v14 = vand.u32 2147483647, %v9932_v8  ;;  %v9950_v5 = vmul.f32 0.70710677, %v9938_v34 }
0x182e   : > { %8365 = vrcp.f32 %v5325_v51  ;;  %v5326_v32 = vadd.f32 1.0, %v5310_v0  ;;  %6569 = vmatmul.mubr.bf16.vlgmr.msra.gmra.mxu1 %v5707_v24  ;;  %v9954_v21 = vand.u32 2147483647, %v9947_v57  ;;  %v9960_v1 = vmul.f32 0.70710677, %v9941_v52 }
0x182f   : > { %8367 = vrcp.f32 %v5327_v19  ;;  %v5328_v36 = vadd.f32 1.0, %v5312_v26  ;;  %6623 = vmatpush1.bf16.msra.mxu1 %v8168_v11  ;;  %6584 = vmatpush1.bf16.msra.mxu0 %v8177_v37  ;;  %v5317_v49 = vmul.f32 0.3275911, %v9944_v14  ;;  %v9957_v47 = vand.u32 2147483647, %v9950_v5 }
0x1830   : > { %8369 = vrcp.f32 %v5326_v32  ;;  %6624 = vmatprep.subr.bf16.mxu1 %v8176_v46  ;;  %6585 = vmatprep.subr.bf16.mxu0 %v8185_v56  ;;  %v5319_v35 = vmul.f32 0.3275911, %v9954_v21  ;;  %v8186_v45 = vld [vmem:[#allocation17 + $0x340] ss:$8 sps:$4 sm:$0xff]   ;;  %v8197_v30 = vld [vmem:[#allocation17 + $0x224] ss:$8 sps:$4 sm:$0xff]  }
0x1831   : > { %8371 = vrcp.f32 %v5328_v36  ;;  %v5333_v23 = vadd.f32 1.0, %v5317_v49  ;;  %v5318_v48 = vmul.f32 0.3275911, %v9957_v47  ;;  %v9965_v18 = vand.u32 2147483647, %v9960_v1 }
0x1832   : > { %v8194_v51 = vld [vmem:[#allocation17 + $0x334] ss:$8 sps:$4 sm:$0xff]   ;;  %v5517_v60 = vsub.f32 0.0, %v9899_v42  ;;  %v5518_v55 = vsub.f32 0.0, %v9916_v44  ;;  %v5335_v10 = vadd.f32 1.0, %v5319_v35  ;;  %v5519_v24 = vsub.f32 0.0, %v9902_v9 }
0x1833   : > { %6625 = vmatpush1.bf16.msra.mxu1 %v8174_v33  ;;  %6586 = vmatpush1.bf16.msra.mxu0 %v8183_v22  ;;  %8373 = vrcp.f32 %v5333_v23  ;;  %v8195_v19 = vld [vmem:[#allocation17 + $0x220] ss:$8 sps:$4 sm:$0xff]   ;;  %v5334_v6 = vadd.f32 1.0, %v5318_v48  ;;  %v5320_v61 = vmul.f32 0.3275911, %v9965_v18  ;;  %v5520_v56 = vsub.f32 0.0, %v9925_v62 }
0x1834   : > { %6626 = vmatprep.subr.bf16.mxu1 %v8182_v17  ;;  %6587 = vmatprep.subr.bf16.mxu0 %v8191_v25  ;;  %v8203_v11 = vld [vmem:[#allocation17 + $0x214] ss:$8 sps:$4 sm:$0xff]   ;;  %8375 = vrcp.f32 %v5335_v10  ;;  %v5533_v2 = vmul.f32 %v5517_v60, %v9899_v42  ;;  %v5534_v3 = vmul.f32 %v5518_v55, %v9916_v44  ;;  %v8192_v36 = vld [vmem:[#allocation17 + $0x330] ss:$8 sps:$4 sm:$0xff]   ;;  %v8200_v22 = vld [vmem:[#allocation17 + $0x324] ss:$8 sps:$4 sm:$0xff]   ;;  %v5535_v23 = vmul.f32 %v5519_v24, %v9902_v9 }
0x1835   : > { %v5336_v26 = vadd.f32 1.0, %v5320_v61  ;;  %8377 = vrcp.f32 %v5334_v6  ;;  %v8201_v25 = vld [vmem:[#allocation17 + $0x210] ss:$8 sps:$4 sm:$0xff]   ;;  %v5525_v42 = vsub.f32 0.0, %v9944_v14  ;;  %v8198_v49 = vld [vmem:[#allocation17 + $0x320] ss:$8 sps:$4 sm:$0xff]   ;;  %v5536_v60 = vmul.f32 %v5520_v56, %v9925_v62 }
0x1836   : > { %v8209_v44 = vld [vmem:[#allocation17 + $0x204] ss:$8 sps:$4 sm:$0xff]   ;;  %v5555_v48 = vmul.f32 1.442695, %v5534_v3  ;;  %v8207_v9 = vld [vmem:[#allocation17 + $0x200] ss:$8 sps:$4 sm:$0xff]  }
0x1837   : > { %6627 = vmatpush1.bf16.msra.mxu1 %v8180_v20  ;;  %6588 = vmatpush1.bf16.msra.mxu0 %v8189_v38  ;;  %8379 = vrcp.f32 %v5336_v26  ;;  %v5541_v61 = vmul.f32 %v5525_v42, %v9944_v14  ;;  %vm5621_vm11 = vcmp.ge.f32.partialorder %v9932_v8, 0.0  ;;  %vm5613_vm12 = vcmp.ge.f32.partialorder %v9888_v63, 0.0  ;;  %v8246_v63 = vld [vmem:[#allocation17 + $0x3a0] ss:$8 sps:$4 sm:$0xff]  }
0x1838   : > { %6628 = vmatprep.subr.bf16.mxu1 %v8188_v54  ;;  %6589 = vmatprep.subr.bf16.mxu0 %v8197_v30  ;;  %v5553_v30 = vmul.f32 1.442695, %v5533_v2  ;;  %v5559_v2 = vmul.f32 1.442695, %v5536_v60  ;;  %vm5614_vm13 = vcmp.ge.f32.partialorder %v9905_v16, 0.0  ;;  %vm5615_vm14 = vcmp.ge.f32.partialorder %v9893_v4, 0.0 }
0x1839   : > { %v5569_v42 = vmul.f32 1.442695, %v5541_v61  ;;  %v8227_v61 = vld [vmem:[#allocation17 + $0x2d4] ss:$8 sps:$4 sm:$0xff]   ;;  %vm5616_vm15 = vcmp.ge.f32.partialorder %v9920_v39, 0.0  ;;  %vm5623_vm0 = vcmp.ge.f32.partialorder %v9947_v57, 0.0 }
0x183a   : > { %8381 = vpow2.f32 %v5553_v30  ;;  %vm5622_vm1 = vcmp.ge.f32.partialorder %v9950_v5, 0.0  ;;  %v5670_v39 = vmul.f32 0.5, %v9938_v34  ;;  %vm5624_vm2 = vcmp.ge.f32.partialorder %v9960_v1, 0.0 }
0x183b   : > { %v9967_v59 = vpop.eup %8365  ;;  %6629 = vmatpush1.bf16.msra.mxu1 %v8186_v45  ;;  %6590 = vmatpush1.bf16.msra.mxu0 %v8195_v19  ;;  %v8206_v45 = vld [vmem:[#allocation17 + $0x314] ss:$8 sps:$4 sm:$0xff]   ;;  %8383 = vpow2.f32 %v5555_v48 }
0x183c   : > { %v9971_v0 = vpop.eup %8367  ;;  %v5373_v29 = vmul.f32 1.0614054, %v9967_v59  ;;  %6630 = vmatprep.subr.bf16.mxu1 %v8194_v51  ;;  %6591 = vmatprep.subr.bf16.mxu0 %v8203_v11  ;;  %v8215_v11 = vld [vmem:[#allocation17 + $0x2f4] ss:$8 sps:$4 sm:$0xff]  }
0x183d   : > { %v5375_v31 = vmul.f32 1.0614054, %v9971_v0  ;;  %v9977_v46 = vpop.eup %8369  ;;  %v8218_v48 = vld [vmem:[#allocation17 + $0x3f4] ss:$8 sps:$4 sm:$0xff]  }
0x183e   : > { %v5389_v32 = vadd.f32 -1.4531521, %v5373_v29  ;;  %v5374_v17 = vmul.f32 1.0614054, %v9977_v46  ;;  %v9986_v54 = vpop.eup %8371  ;;  %v5527_v29 = vsub.f32 0.0, %v9954_v21 }
0x183f   : > { %v5391_v37 = vadd.f32 -1.4531521, %v5375_v31  ;;  %v5376_v51 = vmul.f32 1.0614054, %v9986_v54  ;;  %6631 = vmatpush1.bf16.msra.mxu1 %v8192_v36  ;;  %6592 = vmatpush1.bf16.msra.mxu0 %v8201_v25  ;;  %v5526_v31 = vsub.f32 0.0, %v9957_v47 }
0x1840   : > { %v5405_v33 = vmul.f32 %v9967_v59, %v5389_v32  ;;  %v5390_v35 = vadd.f32 -1.4531521, %v5374_v17  ;;  %6632 = vmatprep.subr.bf16.mxu1 %v8200_v22  ;;  %6593 = vmatprep.subr.bf16.mxu0 %v8209_v44  ;;  %v5557_v32 = vmul.f32 1.442695, %v5535_v23  ;;  %v9997_v3 = vpop.eup %8373  ;;  %v5543_v14 = vmul.f32 %v5527_v29, %v9954_v21  ;;  %v8213_v17 = vld [vmem:[#allocation17 + $0x2f0] ss:$8 sps:$4 sm:$0xff]  }
0x1841   : > { %v5407_v20 = vmul.f32 %v9971_v0, %v5391_v37  ;;  %v5392_v6 = vadd.f32 -1.4531521, %v5376_v51  ;;  %v8204_v37 = vld [vmem:[#allocation17 + $0x310] ss:$8 sps:$4 sm:$0xff]   ;;  %v8221_v22 = vld [vmem:[#allocation17 + $0x2e4] ss:$8 sps:$4 sm:$0xff]  }
0x1842   : > { %v5421_v38 = vadd.f32 1.4214138, %v5405_v33  ;;  %v5406_v19 = vmul.f32 %v9977_v46, %v5390_v35  ;;  %v8212_v33 = vld [vmem:[#allocation17 + $0x304] ss:$8 sps:$4 sm:$0xff]   ;;  %8385 = vpow2.f32 %v5557_v32  ;;  %v8210_v23 = vld [vmem:[#allocation17 + $0x300] ss:$8 sps:$4 sm:$0xff]   ;;  %v10005_v35 = vpop.eup %8375 }
0x1843   : > { %v5423_v10 = vadd.f32 1.4214138, %v5407_v20  ;;  %v5408_v26 = vmul.f32 %v9986_v54, %v5392_v6  ;;  %6633 = vmatpush1.bf16.msra.mxu1 %v8198_v49  ;;  %6594 = vmatpush1.bf16.msra.mxu0 %v8207_v9  ;;  %v5381_v20 = vmul.f32 1.0614054, %v9997_v3  ;;  %v5542_v49 = vmul.f32 %v5526_v31, %v9957_v47  ;;  %v8219_v51 = vld [vmem:[#allocation17 + $0x2e0] ss:$8 sps:$4 sm:$0xff]  }
0x1844   : > { %v5437_v55 = vmul.f32 %v9967_v59, %v5421_v38  ;;  %v5422_v62 = vadd.f32 1.4214138, %v5406_v19  ;;  %6634 = vmatprep.subr.bf16.mxu1 %v8206_v45  ;;  %6595 = vmatprep.subr.bf16.mxu0 %v8215_v11  ;;  %v5528_v38 = vsub.f32 0.0, %v9965_v18  ;;  %8387 = vpow2.f32 %v5559_v2  ;;  %v10011_v19 = vpop.eup %8377 }
0x1845   : > { %v5439_v56 = vmul.f32 %v9971_v0, %v5423_v10  ;;  %v5424_v25 = vadd.f32 1.4214138, %v5408_v26  ;;  %v5397_v30 = vadd.f32 -1.4531521, %v5381_v20  ;;  %v5573_v10 = vmul.f32 1.442695, %v5543_v14 }
0x1846   : > { %v5453_v24 = vadd.f32 -0.28449672, %v5437_v55  ;;  %v5438_v36 = vmul.f32 %v9977_v46, %v5422_v62  ;;  %v5383_v55 = vmul.f32 1.0614054, %v10005_v35  ;;  %8389 = vpow2.f32 %v5569_v42  ;;  %v8222_v20 = vld [vmem:[#allocation17 + $0x3e0] ss:$8 sps:$4 sm:$0xff]  }
0x1847   : > { %v5440_v45 = vmul.f32 %v9986_v54, %v5424_v25  ;;  %6635 = vmatpush1.bf16.msra.mxu1 %v8204_v37  ;;  %v5455_v60 = vadd.f32 -0.28449672, %v5439_v56  ;;  %6596 = vmatpush2.bf16.msra.mxu0 %v8213_v17  ;;  %v5413_v9 = vmul.f32 %v9997_v3, %v5397_v30  ;;  %v5571_v6 = vmul.f32 1.442695, %v5542_v49  ;;  %v8216_v56 = vld [vmem:[#allocation17 + $0x3f0] ss:$8 sps:$4 sm:$0xff]  }
0x1848   : > { %v5454_v44 = vadd.f32 -0.28449672, %v5438_v36  ;;  %v5469_v21 = vmul.f32 %v9967_v59, %v5453_v24  ;;  %6636 = vmatprep.subr.bf16.mxu1 %v8212_v33  ;;  %6597 = vmatprep.subr.bf16.mxu0 %v8221_v22  ;;  %v5399_v11 = vadd.f32 -1.4531521, %v5383_v55  ;;  %v5382_v32 = vmul.f32 1.0614054, %v10011_v19  ;;  %v10016_v24 = vpop.eup %8379 }
0x1849   : > { %v5456_v29 = vadd.f32 -0.28449672, %v5440_v45  ;;  %v5544_v62 = vmul.f32 %v5528_v38, %v9965_v18  ;;  %v5429_v37 = vadd.f32 1.4214138, %v5413_v9  ;;  %v5471_v36 = vmul.f32 %v9971_v0, %v5455_v60  ;;  %v8224_v17 = vld [vmem:[#allocation17 + $0x3e4] ss:$8 sps:$4 sm:$0xff]   ;;  %v8382_v60 = vpop.eup %8381 }
0x184a   : > { %v5470_v47 = vmul.f32 %v9977_v46, %v5454_v44  ;;  %v5485_v26 = vadd.f32 0.2548296, %v5469_v21  ;;  %v5415_v14 = vmul.f32 %v10005_v35, %v5399_v11  ;;  %8391 = vpow2.f32 %v5573_v10  ;;  %v8225_v22 = vld [vmem:[#allocation17 + $0x2d0] ss:$8 sps:$4 sm:$0xff]   ;;  %v8233_v42 = vld [vmem:[#allocation17 + $0x2c4] ss:$8 sps:$4 sm:$0xff]  }
0x184b   : > { %v5472_v2 = vmul.f32 %v9986_v54, %v5456_v29  ;;  %6637 = vmatpush1.bf16.msra.mxu1 %v8210_v23  ;;  %v5398_v33 = vadd.f32 -1.4531521, %v5382_v32  ;;  %6598 = vmatpush2.bf16.msra.mxu0 %v8219_v51  ;;  %v5445_v18 = vmul.f32 %v9997_v3, %v5429_v37  ;;  %8393 = vpow2.f32 %v5571_v6  ;;  %v8230_v21 = vld [vmem:[#allocation17 + $0x3d4] ss:$8 sps:$4 sm:$0xff]   ;;  %v8231_v29 = vld [vmem:[#allocation17 + $0x2c0] ss:$8 sps:$4 sm:$0xff]  }
0x184c   : > { %v5486_v31 = vadd.f32 0.2548296, %v5470_v47  ;;  %6638 = vmatprep.subr.bf16.mxu1 %v8218_v48  ;;  %v5384_v25 = vmul.f32 1.0614054, %v10016_v24  ;;  %6599 = vmatprep.subr.bf16.mxu0 %v8227_v61  ;;  %v5431_v44 = vadd.f32 1.4214138, %v5415_v14  ;;  %v5501_v45 = vmul.f32 %v9967_v59, %v5485_v26 }
0x184d   : > { %v5414_v38 = vmul.f32 %v10011_v19, %v5398_v33  ;;  %v5575_v23 = vmul.f32 1.442695, %v5544_v62  ;;  %v5488_v30 = vadd.f32 0.2548296, %v5472_v2  ;;  %v5461_v48 = vadd.f32 -0.28449672, %v5445_v18 }
0x184e   : > { %v5502_v49 = vmul.f32 %v9977_v46, %v5486_v31  ;;  %v5400_v51 = vadd.f32 -1.4531521, %v5384_v25  ;;  %v5487_v47 = vadd.f32 0.2548296, %v5471_v36  ;;  %v5447_v55 = vmul.f32 %v10005_v35, %v5431_v44  ;;  %v8384_v46 = vpop.eup %8383  ;;  %v8239_v6 = vld [vmem:[#allocation17 + $0x2b4] ss:$8 sps:$4 sm:$0xff]  }
0x184f   : > { %6639 = vmatpush2.bf16.msra.mxu1 %v8216_v56  ;;  %v5430_v10 = vadd.f32 1.4214138, %v5414_v38  ;;  %6600 = vmatpush2.bf16.msra.mxu0 %v8225_v22  ;;  %v5477_v9 = vmul.f32 %v9997_v3, %v5461_v48  ;;  %8395 = vpow2.f32 %v5575_v23  ;;  %v8386_v11 = vpop.eup %8385  ;;  %v10031_v32 = vmul.f32 %v8382_v60, %v5501_v45  ;;  %v8228_v37 = vld [vmem:[#allocation17 + $0x3d0] ss:$8 sps:$4 sm:$0xff]   ;;  %v8234_v45 = vld [vmem:[#allocation17 + $0x3c0] ss:$8 sps:$4 sm:$0xff]  }
0x1850   : > { %6640 = vmatprep.subr.bf16.mxu1 %v8224_v17  ;;  %6601 = vmatprep.subr.bf16.mxu0 %v8233_v42  ;;  %v10028_v61 = vmul.f32 %v8384_v46, %v5502_v49  ;;  %v5463_v59 = vadd.f32 -0.28449672, %v5447_v55  ;;  %v5504_v62 = vmul.f32 %v9986_v54, %v5488_v30  ;;  %v5416_v2 = vmul.f32 %v10016_v24, %v5400_v51  ;;  %v8236_v17 = vld [vmem:[#allocation17 + $0x3c4] ss:$8 sps:$4 sm:$0xff]   ;;  %v8237_v22 = vld [vmem:[#allocation17 + $0x2b0] ss:$8 sps:$4 sm:$0xff]  }
0x1851   : > { %v5446_v31 = vmul.f32 %v10011_v19, %v5430_v10  ;;  %v5493_v26 = vadd.f32 0.2548296, %v5477_v9  ;;  %v8388_v56 = vpop.eup %8387  ;;  %v5503_v36 = vmul.f32 %v9971_v0, %v5487_v47  ;;  %v8245_v54 = vld [vmem:[#allocation17 + $0x2a4] ss:$8 sps:$4 sm:$0xff]   ;;  %v5597_v0 = vsub.f32 1.0, %v10031_v32 }
0x1852   : > { %v5479_v14 = vmul.f32 %v10005_v35, %v5463_v59  ;;  %v5432_v25 = vadd.f32 1.4214138, %v5416_v2  ;;  %v5598_v49 = vsub.f32 1.0, %v10028_v61  ;;  %v10041_v38 = vmul.f32 %v8388_v56, %v5504_v62  ;;  %v8242_v51 = vld [vmem:[#allocation17 + $0x3b4] ss:$8 sps:$4 sm:$0xff]  }
0x1853   : > { %6641 = vmatpush2.bf16.msra.mxu1 %v8222_v20  ;;  %v5462_v33 = vadd.f32 -0.28449672, %v5446_v31  ;;  %6602 = vmatpush2.bf16.msra.mxu0 %v8231_v29  ;;  %v5509_v18 = vmul.f32 %v9997_v3, %v5493_v26  ;;  %v8390_v42 = vpop.eup %8389  ;;  %v10044_v30 = vmul.f32 %v8386_v11, %v5503_v36  ;;  %v8243_v60 = vld [vmem:[#allocation17 + $0x2a0] ss:$8 sps:$4 sm:$0xff]   ;;  %v8251_v29 = vld [vmem:[#allocation17 + $0x294] ss:$8 sps:$4 sm:$0xff]  }
0x1854   : > { %6642 = vmatprep.subr.bf16.mxu1 %v8230_v21  ;;  %6603 = vmatprep.subr.bf16.mxu0 %v8239_v6  ;;  %v5495_v20 = vadd.f32 0.2548296, %v5479_v14  ;;  %v5448_v21 = vmul.f32 %v10016_v24, %v5432_v25  ;;  %v5630_v9 = vsub.f32 0.0, %v5598_v49  ;;  %v8240_v59 = vld [vmem:[#allocation17 + $0x3b0] ss:$8 sps:$4 sm:$0xff]   ;;  %v5629_v31 = vsub.f32 0.0, %v5597_v0 }
0x1855   : > { %v5478_v44 = vmul.f32 %v10011_v19, %v5462_v33  ;;  %v5589_v23 = vmul.f32 %v8390_v42, %v5509_v18  ;;  %v5600_v11 = vsub.f32 1.0, %v10041_v38  ;;  %v8248_v62 = vld [vmem:[#allocation17 + $0x3a4] ss:$8 sps:$4 sm:$0xff]   ;;  %v5599_v26 = vsub.f32 1.0, %v10044_v30  ;;  %v8249_v56 = vld [vmem:[#allocation17 + $0x290] ss:$8 sps:$4 sm:$0xff]  }
0x1856   : > { %v5511_v3 = vmul.f32 %v10005_v35, %v5495_v20  ;;  %v5464_v10 = vadd.f32 -0.28449672, %v5448_v21  ;;  %v8257_v14 = vld [vmem:[#allocation17 + $0x284] ss:$8 sps:$4 sm:$0xff]   ;;  %v5646_v33 = vsel %vm5614_vm13, %v5598_v49, %v5630_v9  ;;  %v5645_v8 = vsel %vm5613_vm12, %v5597_v0, %v5629_v31  ;;  %v8254_v20 = vld [vmem:[#allocation17 + $0x394] ss:$8 sps:$4 sm:$0xff]  }
0x1857   : > { %6643 = vmatpush2.bf16.msra.mxu1 %v8228_v37  ;;  %v5494_v48 = vadd.f32 0.2548296, %v5478_v44  ;;  %6604 = vmatpush2.bf16.msra.mxu0 %v8237_v22  ;;  %v8392_v47 = vpop.eup %8391  ;;  %v5605_v55 = vsub.f32 1.0, %v5589_v23  ;;  %v5662_v25 = vmul.f32 0.5, %v9896_v43  ;;  %v5631_v16 = vsub.f32 0.0, %v5599_v26 }
0x1858   : > { %6644 = vmatprep.subr.bf16.mxu1 %v8236_v17  ;;  %6605 = vmatprep.subr.bf16.mxu0 %v8245_v54  ;;  %v8394_v46 = vpop.eup %8393  ;;  %v5591_v6 = vmul.f32 %v8392_v47, %v5511_v3  ;;  %v5480_v32 = vmul.f32 %v10016_v24, %v5464_v10  ;;  %v5632_v54 = vsub.f32 0.0, %v5600_v11  ;;  %v8255_v49 = vld [vmem:[#allocation17 + $0x280] ss:$8 sps:$4 sm:$0xff]   ;;  %v5678_v23 = vadd.f32 1.0, %v5646_v33  ;;  %v8260_v47 = vld [vmem:[#allocation17 + $0x384] ss:$8 sps:$4 sm:$0xff]  }
0x1859   : > { %v5510_v61 = vmul.f32 %v10011_v19, %v5494_v48  ;;  %v5637_v35 = vsub.f32 0.0, %v5605_v55  ;;  %v5677_v0 = vadd.f32 1.0, %v5645_v8  ;;  %v5647_v57 = vsel %vm5615_vm14, %v5599_v26, %v5631_v16 }
0x185a   : > { %v5607_v2 = vsub.f32 1.0, %v5591_v6  ;;  %v5496_v36 = vadd.f32 0.2548296, %v5480_v32  ;;  %v5648_v30 = vsel %vm5616_vm15, %v5600_v11, %v5632_v54  ;;  %v5679_v34 = vadd.f32 1.0, %v5647_v57 }
0x185b   : > { %6645 = vmatpush2.bf16.msra.mxu1 %v8234_v45  ;;  %v5590_v37 = vmul.f32 %v8394_v46, %v5510_v61  ;;  %6606 = vmatpush2.bf16.msra.mxu0 %v8243_v60  ;;  %v5653_v19 = vsel %vm5621_vm11, %v5605_v55, %v5637_v35  ;;  %v5661_v60 = vmul.f32 0.5, %v9880_v13  ;;  %v5694_v55 = vmul.f32 %v5678_v23, %v5662_v25  ;;  %v8258_v13 = vld [vmem:[#allocation17 + $0x380] ss:$8 sps:$4 sm:$0xff]  }
0x185c   : > { %6646 = vmatprep.subr.bf16.mxu1 %v8242_v51  ;;  %6607 = vmatprep.subr.bf16.mxu0 %v8251_v29  ;;  %v5639_v17 = vsub.f32 0.0, %v5607_v2  ;;  %v8396_v18 = vpop.eup %8395  ;;  %v5512_v42 = vmul.f32 %v10016_v24, %v5496_v36  ;;  %v5685_v44 = vadd.f32 1.0, %v5653_v19  ;;  %v5669_v24 = vmul.f32 0.5, %v9929_v58  ;;  %v8252_v51 = vld [vmem:[#allocation17 + $0x390] ss:$8 sps:$4 sm:$0xff]  }
0x185d   : > { %v5606_v22 = vsub.f32 1.0, %v5590_v37  ;;  %v5693_v46 = vmul.f32 %v5677_v0, %v5661_v60  ;;  %v5680_v9 = vadd.f32 1.0, %v5648_v30  ;;  %v5671_v6 = vmul.f32 0.5, %v9935_v12 }
0x185e   : > { %v5592_v43 = vmul.f32 %v8396_v18, %v5512_v42  ;;  %v5655_v21 = vsel %vm5623_vm0, %v5607_v2, %v5639_v17  ;;  %v5701_v5 = vmul.f32 %v5685_v44, %v5669_v24  ;;  %v5672_v11 = vmul.f32 0.5, %v9941_v52 }
0x185f   : > { %6647 = vmatpush2.bf16.msra.mxu1 %v8240_v59  ;;  %v5638_v38 = vsub.f32 0.0, %v5606_v22  ;;  %6608 = vmatpush2.bf16.msra.mxu0 %v8249_v56  ;;  %v5687_v58 = vadd.f32 1.0, %v5655_v21  ;;  %v5664_v59 = vmul.f32 0.5, %v9911_v40  ;;  %v5663_v32 = vmul.f32 0.5, %v9885_v50  ;;  %v5841_v40 = vld [vmem:[#allocation19] sm:$0x3] }
0x1860   : > { %6648 = vmatprep.subr.bf16.mxu1 %v8248_v62  ;;  %6609 = vmatprep.subr.bf16.mxu0 %v8257_v14  ;;  %v5608_v48 = vsub.f32 1.0, %v5592_v43  ;;  %v5709_v31 = vpack.c.bf16 %v5701_v5, %v5693_v46  ;;  %v5846_v52 = vrot.slane %v5841_v40, %v9290_v15  ;;  %v5850_v14 = vrot.slane %v5841_v40, %v9406_v53 }
0x1861   : > { %v5654_v45 = vsel %vm5622_vm1, %v5606_v22, %v5638_v38  ;;  %v5703_v62 = vmul.f32 %v5687_v58, %v5671_v6  ;;  %v5696_v26 = vmul.f32 %v5680_v9, %v5664_v59  ;;  %v5695_v2 = vmul.f32 %v5679_v34, %v5663_v32 }
0x1862   : > { %v5686_v3 = vadd.f32 1.0, %v5654_v45  ;;  %v5640_v29 = vsub.f32 0.0, %v5608_v48 }
0x1863   : > { %6649 = vmatpush2.bf16.msra.mxu1 %v8246_v63  ;;  %6610 = vmatpush2.bf16.msra.mxu0 %v8255_v49  ;;  %v5711_v37 = vpack.c.bf16 %v5703_v62, %v5695_v2 }
0x1864   : > { %6650 = vmatprep.subr.bf16.mxu1 %v8254_v20  ;;  %v5702_v10 = vmul.f32 %v5686_v3, %v5670_v39  ;;  %v5656_v61 = vsel %vm5624_vm2, %v5608_v48, %v5640_v29 }
0x1865   : > { %v5688_v35 = vadd.f32 1.0, %v5656_v61 }
0x1866   : > { %v5710_v4 = vpack.c.bf16 %v5702_v10, %v5694_v55 }
0x1867   : > { %6651 = vmatpush2.bf16.msra.mxu1 %v8252_v51  ;;  %v5704_v1 = vmul.f32 %v5688_v35, %v5672_v11 }
0x1868   : > { %6652 = vmatprep.subr.bf16.mxu1 %v8260_v47  ;;  %6611 = vmatprep.mubr.bf16.mxu0 %v5710_v4 }
0x1869   : > { %6612 = vmatmul.mubr.bf16.vlgmr.msra.gmra.mxu0 %v5709_v31  ;;  %v5712_v12 = vpack.c.bf16 %v5704_v1, %v5696_v26 }
0x186b   : > { %6653 = vmatpush2.bf16.msra.mxu1 %v8258_v13  ;;  %6654 = vmatprep.mubr.bf16.mxu1 %v5712_v12 }
0x186e   : > { %6655 = vmatmul.mubr.bf16.vlgmr.msra.gmra.mxu1 %v5711_v37  ;;  %v6669_v37 = vld [vmem:[%s10236_s26] sm:$0x3] }
0x186f   : > { %v6707_v40 = vrot.slane %v6669_v37, %v9290_v15 }
0x18e6   : > { %v6527_v56 = vpop.f32.mrf.mxu0 }
0x18e7   : > { %v6528_v17 = vadd.f32 %v6527_v56, %v5846_v52  ;;  %v6670_v56 = vld [vmem:[%s10237_s0] sm:$0x3] }
0x18e8   : > { %v6529_v19 = vpop.f32.mrf.mxu0 }
0x18e9   : > { %v6530_v22 = vadd.f32 %v6529_v19, %v5850_v14  ;;  %v6711_v19 = vrot.slane %v6669_v37, %v9406_v53 }
0x18ea   : > { %v6531_v50 = vpop.f32.mrf.mxu0 }
0x18eb   : > { %v6532_v54 = vadd.f32 %v6531_v50, %v5846_v52  ;;  %v6722_v52 = vrot.slane %v6670_v56, %v9290_v15 }
0x18ec   : > { %v6533_v18 = vpop.f32.mrf.mxu0 }
0x18ed   : > { %v6534_v20 = vadd.f32 %v6533_v18, %v5850_v14  ;;  %v6726_v14 = vrot.slane %v6670_v56, %v9406_v53 }
0x18ee   : > { %v6570_v36 = vpop.f32.mrf.mxu1 }
0x18ef   : > { %v6571_v25 = vadd.f32 %v6570_v36, %v6528_v17 }
0x18f0   : > { %v6572_v33 = vpop.f32.mrf.mxu1 }
0x18f1   : > { %v6573_v63 = vadd.f32 %v6572_v33, %v6530_v22 }
0x18f2   : > { %v6574_v8 = vpop.f32.mrf.mxu1 }
0x18f3   : > { %v6575_v49 = vadd.f32 %v6574_v8, %v6532_v54 }
0x18f4   : > { %v6576_v38 = vpop.f32.mrf.mxu1 }
0x18f5   : > { %v6577_v24 = vadd.f32 %v6576_v38, %v6534_v20 }
0x1929   : > { %v6613_v42 = vpop.f32.mrf.mxu0 }
0x192a   : > { %v6614_v16 = vadd.f32 %v6613_v42, %v6571_v25 }
0x192b   : > { %v6615_v44 = vpop.f32.mrf.mxu0 }
0x192c   : > { %v6616_v23 = vadd.f32 %v6615_v44, %v6573_v63 }
0x192d   : > { %v6617_v43 = vpop.f32.mrf.mxu0 }
0x192e   : > { %v6656_v0 = vpop.f32.mrf.mxu1  ;;  %v6618_v45 = vadd.f32 %v6617_v43, %v6575_v49 }
0x192f   : > { %v6657_v21 = vadd.f32 %v6656_v0, %v6614_v16  ;;  %v6619_v30 = vpop.f32.mrf.mxu0 }
0x1930   : > { %v6658_v39 = vpop.f32.mrf.mxu1  ;;  %v6620_v48 = vadd.f32 %v6619_v30, %v6577_v24 }
0x1931   : > { %v6659_v3 = vadd.f32 %v6658_v39, %v6616_v23  ;;  %v6665_v60 = vadd.f32 %v6657_v21, %v9702_v7 }
0x1932   : > { %v6660_v51 = vpop.f32.mrf.mxu1 }
0x1933   : > { %v6666_v57 = vadd.f32 %v6659_v3, %v9698_v41  ;;  %v6661_v5 = vadd.f32 %v6660_v51, %v6618_v45 }
0x1934   : > { %v6662_v47 = vpop.f32.mrf.mxu1 }
0x1935   : > { %v6663_v55 = vadd.f32 %v6662_v47, %v6620_v48  ;;  %v6671_v58 = vadd.f32 %v6666_v57, %v6665_v60  ;;  %v6667_v10 = vadd.f32 %v6661_v5, %v9704_v28 }
0x1937   : > { %v6668_v29 = vadd.f32 %v6663_v55, %v9700_v27  ;;  %6672 = vadd.xlane.f32.xlu0 %v6671_v58 }
0x1939   : > { %v6674_v46 = vadd.f32 %v6668_v29, %v6667_v10 }
0x193b   : > { %6675 = vadd.xlane.f32.xlu1 %v6674_v46 }
0x19c0   : > { %v6673_v9 = vpop.xlane.xlu0 %6672 }
0x19c1   : > { %v6677_v34 = vmul.f32 0.00390625, %v6673_v9 }
0x19c3   : > { %v6679_v6 = vsub.f32 %v6665_v60, %v6677_v34  ;;  %v6680_v61 = vsub.f32 %v6666_v57, %v6677_v34 }
0x19c4   : > { %v6676_v13 = vpop.xlane.xlu1 %6675 }
0x19c5   : > { %v6678_v4 = vmul.f32 0.00390625, %v6676_v13  ;;  %v6683_v7 = vmul.f32 %v6679_v6, %v6679_v6  ;;  %v6684_v59 = vmul.f32 %v6680_v61, %v6680_v61 }
0x19c7   : > { %v6681_v41 = vsub.f32 %v6667_v10, %v6678_v4  ;;  %v6682_v31 = vsub.f32 %v6668_v29, %v6678_v4  ;;  %v6687_v11 = vadd.f32 %v6684_v59, %v6683_v7 }
0x19c9   : > { %6688 = vadd.xlane.f32.xlu0 %v6687_v11  ;;  %v6685_v35 = vmul.f32 %v6681_v41, %v6681_v41  ;;  %v6686_v32 = vmul.f32 %v6682_v31, %v6682_v31 }
0x19cb   : > { %v6690_v28 = vadd.f32 %v6686_v32, %v6685_v35 }
0x19cd   : > { %6691 = vadd.xlane.f32.xlu1 %v6690_v28 }
0x1a52   : > { %v6689_v27 = vpop.xlane.xlu0 %6688 }
0x1a53   : > { %v6693_v62 = vmul.f32 0.00390625, %v6689_v27 }
0x1a55   : > { %v6695_v26 = vadd.f32 1e-05, %v6693_v62 }
0x1a56   : > { %v6692_v1 = vpop.xlane.xlu1 %6691 }
0x1a57   : > { %8397 = vrsqrt.f32 %v6695_v26  ;;  %v6694_v2 = vmul.f32 0.00390625, %v6692_v1 }
0x1a59   : > { %v6696_v12 = vadd.f32 1e-05, %v6694_v2 }
0x1a5b   : > { %8399 = vrsqrt.f32 %v6696_v12 }
0x1a64   : > { %v8398_v36 = vpop.eup %8397 }
0x1a65   : > { %v6699_v50 = vmul.f32 %v8398_v36, %v6679_v6  ;;  %v6700_v33 = vmul.f32 %v8398_v36, %v6680_v61 }
0x1a67   : > { %v6714_v17 = vmul.f32 %v6707_v40, %v6699_v50  ;;  %v6715_v22 = vmul.f32 %v6711_v19, %v6700_v33 }
0x1a68   : > { %v8400_v18 = vpop.eup %8399 }
0x1a69   : > { %v6729_v8 = vadd.f32 %v6722_v52, %v6714_v17  ;;  %v6730_v25 = vadd.f32 %v6726_v14, %v6715_v22  ;;  %v6701_v54 = vmul.f32 %v8400_v18, %v6681_v41  ;;  %v6702_v42 = vmul.f32 %v8400_v18, %v6682_v31 }
0x1a6b   : > { %6733 = vst [vmem:[%s834_s28] sm:$0xff] %v6729_v8  ;;  %6734 = vst [vmem:[%s834_s28 + $0x8] sm:$0xff] %v6730_v25  ;;  %v6716_v15 = vmul.f32 %v6707_v40, %v6701_v54  ;;  %v6717_v63 = vmul.f32 %v6711_v19, %v6702_v42 }
0x1a6d   : > { %v6731_v53 = vadd.f32 %v6722_v52, %v6716_v15  ;;  %v6732_v20 = vadd.f32 %v6726_v14, %v6717_v63 }
0x1a6f   : > { %6735 = vst [vmem:[%s834_s28 + $0x10] sm:$0xff] %v6731_v53  ;;  %6736 = vst [vmem:[%s834_s28 + $0x18] sm:$0xff] %v6732_v20 }
0x1a70   : > { %8760 = shalt.err (!%p8757_p1)
}
0x1a71   : > { %s8761_s23 = scalar_lea.hbm %s10092_s30, 512  ;;  %s8765_s7 = scalar_lea.hbm %s10238_s18, 1024 }
0x1a72   : > { %p8762_p3 = scmp.ne.s32.totalorder %s10092_s30, %s8761_s23  ;;  %p8766_p9 = scmp.lt.s32.totalorder %s10092_s30, %s10238_s18 }
0x1a73   : > { %p8767_p6 = scmp.lt.s32.totalorder %s8765_s7, %s8761_s23 }
0x1a74   : > { %p8763_p2 = pnand %p8762_p3, %p10239_p7 }
0x1a75   : > { %p8768_p4 = por %p8767_p6, %p8766_p9 }
0x1a76   : > { %p8764_p5 = pneg %p8763_p2 }
0x1a78   : > { %p8769_p8 = pnand %p8768_p4, %p8764_p5 }
0x1a7a   : > { %8772 = shalt.err (!%p8769_p8)
}
0x1a7b   : > { %s8870_s27 = smov 256   ;;  %s8871_s20 = smov 16  }
0x1a7c   : > { %7650 = dma.vmem_to_hbm [thread:$0]  (%p10239_p7), %s10094_s8, 512, %s10092_s30, %s6738_s3, %s8870_s27, %s8870_s27, %s8871_s20  }
0x1a7d PF: > { %s6766_s0 = sand.u32 1, %s8827_s1   ;;  %p10240_p13 = scmp.ne.s32.totalorder %s10215_s19, 0 }
0x1a7e   : > { %p10241_p0 = scmp.ge.s32.totalorder %s8839_s24, 2  ;;  %s6767_s21 = scalar_lea.sflag [#allocation4], %s6766_s0 }
0x1a80   : > { %p7694_p10 = pnand %p10241_p0, %p10240_p13 }
0x1a82   : > { %p7695_p11 = pneg %p7694_p10 }
0x1a84   : > { %8822 = dma.done.wait (%p7695_p11), %s6767_s21, 512  }
0x1a85   : > { %8824 = vsyncadd (%p7695_p11), %s6767_s21, 4294966784  ;;  %s10242_s24 = sld [smem:[#allocation34_spill]]  ;;  %s10245_s1 = smov %s8831_s22 }
0x1a86   : > { %s10243_s28 = sld [smem:[#allocation33_spill]] }
0x1a87   : > { %s10244_s23 = sld [smem:[#allocation35_spill]] }
0x1a8b   : > { %p41_p12 = scmp.ge.s32.totalorder %s10242_s24, 4  }
0x1a8c   : > { %s10246_s22 = smov %s10243_s28 }
0x1a8d   :  { %43 = sbr.rel (!%p41_p12) target bundleno = 31 (0x1f), region = 216 }
0x1a92   :  { %6772 = vsyncpa [#allocation3], 1 }
0x1a93   :  { %6774 = vsyncpa [#allocation3 + $0x1], 1 }
0x1a94   :  { %6775 = vsyncpa [#allocation6], 1 }
0x1a95   :  { %6777 = vsyncpa [#allocation6 + $0x1], 1 }
0x1a96   :  { %6778 = vsyncpa [#allocation9], 1 }
0x1a97   :  { %6779 = vsyncpa [#allocation12], 1 }
0x1a98   :  { %6780 = vsyncpa [#allocation15], 1 }
0x1a99   :  { %6781 = vsyncpa [#allocation18], 1 }
0x1a9a   :  { %6782 = vsyncpa [#allocation21], 1 }
0x1a9b   :  { %6783 = vsyncpa [#allocation4], 1 }
0x1a9c   :  { %6785 = vsyncpa [#allocation4 + $0x1], 1 }

</bundles_post_ra>
